<compile_context>
chip_gen: v7x
topology: tpu7x:2x2x1
jax: 0.10.0
libtpu: 0.0.40
codegen_flags: <defaults>
</compile_context>

<pallas_src>
import functools
import math

import jax
import jax.numpy as jnp
from jax.experimental import pallas as pl
from jax.experimental.pallas import tpu as pltpu

LN_EPS = 1e-5
MATMUL_DTYPE = jnp.bfloat16      # MXU-native operand dtype; accumulation f32.
WO_GROUP_TARGET = 128            # TODO(synk): raise to 256 on v6e/v7x (256-wide MXU).


def _layernorm(x, gamma, beta, eps):
    mu = jnp.mean(x, axis=-1, keepdims=True)
    var = jnp.mean(jnp.square(x - mu), axis=-1, keepdims=True)
    return (x - mu) * jax.lax.rsqrt(var + eps) * gamma + beta


@functools.lru_cache(maxsize=None)
def _vmem_limit_bytes():
    """~3/4 of physical VMEM (96 MiB v5e/v6e, 48 MiB v7x); None -> default."""
    try:
        cap = getattr(pltpu.get_tpu_info(), "vmem_capacity_bytes", None)
        if not cap:
            return None
        return int(min(cap * 3 // 4, 100 * 1024 * 1024))
    except Exception:
        return None


def _compiler_params():
    lim = _vmem_limit_bytes()
    if lim is None:
        return pltpu.CompilerParams(dimension_semantics=("parallel",))
    return pltpu.CompilerParams(dimension_semantics=("parallel",),
                                vmem_limit_bytes=lim)


@functools.lru_cache(maxsize=None)
def _buffered_one_supported():
    """Probe whether constant-index blocks can be single-buffered."""
    if not hasattr(pl, "Buffered"):
        return False
    try:
        w_spec = pl.BlockSpec((8, 128), lambda i: (0, 0),
                              pipeline_mode=pl.Buffered(1))

        def k(x_ref, w_ref, o_ref):
            o_ref[...] = x_ref[...] + w_ref[...]

        f = pl.pallas_call(
            k,
            out_shape=jax.ShapeDtypeStruct((16, 128), jnp.float32),
            grid=(2,),
            in_specs=[pl.BlockSpec((8, 128), lambda i: (i, 0)), w_spec],
            out_specs=pl.BlockSpec((8, 128), lambda i: (i, 0)),
        )
        jax.block_until_ready(f(jnp.zeros((16, 128), jnp.float32),
                                jnp.zeros((8, 128), jnp.float32)))
        return True
    except Exception:
        return False


def _const_spec(shape):
    """BlockSpec for weights/biases that are identical on every grid step
    (fetched once; single-buffered when the runtime supports it)."""
    nd = len(shape)
    imap = lambda i: (0,) * nd
    if _buffered_one_supported():
        return pl.BlockSpec(shape, imap, pipeline_mode=pl.Buffered(1))
    return pl.BlockSpec(shape, imap)


def _pick_tb(BS, S, tokens_cap=1024):
    """Sequences per grid step: largest divisor of BS with tb*S <= tokens_cap,
    preferring >= 2 grid steps so both v7x TensorCores get work."""
    cap = max(1, tokens_cap // S)
    divs = [t for t in range(1, BS + 1) if BS % t == 0 and t <= cap]
    best = divs[-1] if divs else 1
    if best == BS and BS > 1:
        smaller = [t for t in divs if t < BS]
        if smaller:
            best = smaller[-1]
    # TODO(synk): pad BS / add a remainder block when BS has no divisor near
    # the cap instead of collapsing to small tiles.
    return best


# ----------------------------------------------------------------------------
# Kernel 1/2: LN -> MHA over the sequence axis -> residual -> LN -> MLP -> res.
# Block = tb whole sequences of length S, flattened to (tb*S, E) for matmuls.
# ----------------------------------------------------------------------------
def _attn_mlp_kernel(x_ref, g1_ref, b1_ref, wqkv_ref, bqkv_ref, wo_ref, bo_ref,
                     g2_ref, b2_ref, w1_ref, bb1_ref, w2_ref, bb2_ref, o_ref,
                     *, n_heads, heads_per_group, eps):
    tb, S, E = x_ref.shape
    dh = E // n_heads
    gw = heads_per_group * dh
    scale = 1.0 / math.sqrt(dh)
    cdt = MATMUL_DTYPE

    x = x_ref[...].astype(jnp.float32).reshape(tb * S, E)        # (tb*S, E)
    xn = _layernorm(x, g1_ref[...], b1_ref[...], eps)

    # Fused QKV projection: one (tb*S, E) @ (E, 3E) bf16 matmul, f32 accumulate.
    qkv = jnp.dot(xn.astype(cdt), wqkv_ref[...],
                  preferred_element_type=jnp.float32) + bqkv_ref[...]

    # Output projection accumulated per head *group*: the Wo contraction spans
    # gw channels (instead of dh) for better MXU fill; no full lane concat of
    # all heads is ever materialized.
    attn = jnp.zeros((tb * S, E), jnp.float32) + bo_ref[...]
    # TODO(synk): for large n_heads use lax.fori_loop over head groups with
    # pl.ds / pl.multiple_of slices instead of a fully unrolled Python loop.
    for g in range(n_heads // heads_per_group):
        parts = []
        for hh in range(heads_per_group):
            h = g * heads_per_group + hh
            oq, ok_, ov = h * dh, E + h * dh, 2 * E + h * dh
            qh = qkv[:, oq:oq + dh].reshape(tb, S, dh).astype(cdt)
            kh = qkv[:, ok_:ok_ + dh].reshape(tb, S, dh).astype(cdt)
            vh = qkv[:, ov:ov + dh].reshape(tb, S, dh).astype(cdt)
            s = jnp.einsum("bqd,bkd->bqk", qh, kh,
                           preferred_element_type=jnp.float32) * scale
            s = s - jnp.max(s, axis=-1, keepdims=True)            # f32 stats
            p = jnp.exp(s)
            p = p * pl.reciprocal(jnp.sum(p, axis=-1, keepdims=True),
                                  approx=True)
            parts.append(jnp.einsum("bqk,bkd->bqd", p.astype(cdt), vh,
                                    preferred_element_type=jnp.float32))
        og = parts[0] if len(parts) == 1 else jnp.concatenate(parts, axis=-1)
        c0 = g * gw
        attn = attn + jnp.dot(og.reshape(tb * S, gw).astype(cdt),
                              wo_ref[c0:c0 + gw, :],
                              preferred_element_type=jnp.float32)

    y = x + attn                                                  # residual 1

    # Fused LayerNorm + MLP + residual (same VMEM block).
    yn = _layernorm(y, g2_ref[...], b2_ref[...], eps)
    hid = jnp.dot(yn.astype(cdt), w1_ref[...],
                  preferred_element_type=jnp.float32) + bb1_ref[...]
    hid = jax.nn.gelu(hid)      # TODO(synk): config.activation assumed == GELU
    y = y + jnp.dot(hid.astype(cdt), w2_ref[...],
                    preferred_element_type=jnp.float32) + bb2_ref[...]

    o_ref[...] = y.reshape(tb, S, E).astype(o_ref.dtype)


def ln_attn_mlp(x3, ln1, attn_p, ln2, mlp_p, *, n_heads, eps=LN_EPS):
    BS, S, E = x3.shape
    g1, b1 = ln1
    wqkv, bqkv, wo, bo = attn_p
    g2, b2 = ln2
    w1, bb1, w2, bb2 = mlp_p
    H = w1.shape[1]
    dh = E // n_heads
    heads_per_group = 1
    for g in range(1, n_heads + 1):
        if n_heads % g == 0 and g * dh <= WO_GROUP_TARGET:
            heads_per_group = g
    tb = _pick_tb(BS, S)
    cdt = MATMUL_DTYPE
    kern = functools.partial(_attn_mlp_kernel, n_heads=n_heads,
                             heads_per_group=heads_per_group, eps=eps)
    return pl.pallas_call(
        kern,
        out_shape=jax.ShapeDtypeStruct((BS, S, E), x3.dtype),
        grid=(BS // tb,),
        in_specs=[
            pl.BlockSpec((tb, S, E), lambda i: (i, 0, 0)),
            _const_spec((1, E)), _const_spec((1, E)),
            _const_spec((E, 3 * E)), _const_spec((1, 3 * E)),
            _const_spec((E, E)), _const_spec((1, E)),
            _const_spec((1, E)), _const_spec((1, E)),
            _const_spec((E, H)), _const_spec((1, H)),
            _const_spec((H, E)), _const_spec((1, E)),
        ],
        out_specs=pl.BlockSpec((tb, S, E), lambda i: (i, 0, 0)),
        compiler_params=_compiler_params(),
    )(x3, g1, b1, wqkv.astype(cdt), bqkv, wo.astype(cdt), bo,
      g2, b2, w1.astype(cdt), bb1, w2.astype(cdt), bb2)


# ----------------------------------------------------------------------------
# Kernel 3: LN -> 3x3 conv -> residual -> LN -> MLP -> residual
# ----------------------------------------------------------------------------
def _conv_mlp_kernel(x_ref, g1_ref, b1_ref, w_ref, cb_ref, g2_ref, b2_ref,
                     w1_ref, bb1_ref, w2_ref, bb2_ref, o_ref, *, eps):
    cdt = MATMUL_DTYPE
    x = x_ref[0].astype(jnp.float32)                    # (N, M, E)
    N, M, E = x.shape
    xn = _layernorm(x, g1_ref[...], b1_ref[...], eps)
    xp = jnp.pad(xn, ((1, 1), (1, 1), (0, 0))).astype(cdt)   # zero pad = 1

    acc = jnp.zeros((N * M, E), jnp.float32) + cb_ref[...]
    # 9 shifted matmuls with only 3 sublane shifts (one per kx); ky slices the
    # cheap major axis.  TODO(synk): at production N, M, E stream the taps over
    # a grid axis and tile N with a 1-row halo instead of a whole-image block.
    for kx in range(3):
        x_kx = xp[:, kx:kx + M, :]
        for ky in range(3):
            win = x_kx[ky:ky + N].reshape(N * M, E)
            acc = acc + jnp.dot(win, w_ref[ky * 3 + kx],
                                preferred_element_type=jnp.float32)

    y = x.reshape(N * M, E) + acc                       # residual (conv)

    yn = _layernorm(y, g2_ref[...], b2_ref[...], eps)
    hid = jnp.dot(yn.astype(cdt), w1_ref[...],
                  preferred_element_type=jnp.float32) + bb1_ref[...]
    hid = jax.nn.gelu(hid)
    y = y + jnp.dot(hid.astype(cdt), w2_ref[...],
                    preferred_element_type=jnp.float32) + bb2_ref[...]

    o_ref[0] = y.reshape(N, M, E).astype(o_ref.dtype)


def ln_conv_mlp(x4, ln1, conv_p, ln2, mlp_p, *, eps=LN_EPS):
    B, N, M, E = x4.shape
    g1, b1 = ln1
    w_taps, c_bias = conv_p
    g2, b2 = ln2
    w1, bb1, w2, bb2 = mlp_p
    H = w1.shape[1]
    cdt = MATMUL_DTYPE
    kern = functools.partial(_conv_mlp_kernel, eps=eps)
    return pl.pallas_call(
        kern,
        out_shape=jax.ShapeDtypeStruct((B, N, M, E), x4.dtype),
        grid=(B,),
        in_specs=[
            pl.BlockSpec((1, N, M, E), lambda b: (b, 0, 0, 0)),
            _const_spec((1, E)), _const_spec((1, E)),
            _const_spec((9, E, E)), _const_spec((1, E)),
            _const_spec((1, E)), _const_spec((1, E)),
            _const_spec((E, H)), _const_spec((1, H)),
            _const_spec((H, E)), _const_spec((1, E)),
        ],
        out_specs=pl.BlockSpec((1, N, M, E), lambda b: (b, 0, 0, 0)),
        compiler_params=_compiler_params(),
    )(x4, g1, b1, w_taps.astype(cdt), c_bias, g2, b2,
      w1.astype(cdt), bb1, w2.astype(cdt), bb2)


# ----------------------------------------------------------------------------
# Full block forward (glue reshapes / transposes in plain JAX)
# ----------------------------------------------------------------------------
def conv_transformer_block(x, p, *, n_heads):
    B, N, M, E = x.shape
    # 1+2) attention along N (rows) + MLP1: batch = B*M, seq = N
    # TODO(synk): replace the two HBM transposes with a lane-dense Pallas
    # transpose-copy (or fold them into kernel I/O) once Mosaic supports it.
    xr = jnp.transpose(x, (0, 2, 1, 3)).reshape(B * M, N, E)
    yr = ln_attn_mlp(xr, p["ln_attn_n"], p["attn_n"], p["ln_mlp_1"], p["mlp_1"],
                     n_heads=n_heads)
    x = jnp.transpose(yr.reshape(B, M, N, E), (0, 2, 1, 3))
    # 3+4) attention along M (cols) + MLP2: batch = B*N, seq = M (reshape only)
    yc = ln_attn_mlp(x.reshape(B * N, M, E), p["ln_attn_m"], p["attn_m"],
                     p["ln_mlp_2"], p["mlp_2"], n_heads=n_heads)
    x = yc.reshape(B, N, M, E)
    # 5+6) 3x3 conv on the N x M plane + MLP3
    x = ln_conv_mlp(x, p["ln_conv"], p["conv"], p["ln_mlp_3"], p["mlp_3"])
    return x


# ----------------------------------------------------------------------------
# Deterministic parameter init (mirrors module __init__ shapes; biases = 0,
# LN gamma = 1 / beta = 0, weights ~ N(0, init_std); QKV pre-fused to (E, 3E))
# ----------------------------------------------------------------------------
def init_params(key, E, n_heads, mult, init_std, dtype=jnp.float32):
    H = E * mult
    keys = jax.random.split(key, 6)

    def nrm(k, shape):
        return (init_std * jax.random.normal(k, shape)).astype(dtype)

    def ln():
        return (jnp.ones((1, E), dtype), jnp.zeros((1, E), dtype))

    def attn(k):
        ks = jax.random.split(k, 4)
        wqkv = jnp.concatenate(
            [nrm(ks[0], (E, E)), nrm(ks[1], (E, E)), nrm(ks[2], (E, E))], axis=1)
        return (wqkv, jnp.zeros((1, 3 * E), dtype),
                nrm(ks[3], (E, E)), jnp.zeros((1, E), dtype))

    def mlp(k):
        ks = jax.random.split(k, 2)
        return (nrm(ks[0], (E, H)), jnp.zeros((1, H), dtype),
                nrm(ks[1], (H, E)), jnp.zeros((1, E), dtype))

    # conv taps stored (ky, kx, Cin, Cout) -> flattened to (9, Cin, Cout)
    conv_w = nrm(keys[5], (3, 3, E, E)).reshape(9, E, E)
    return {
        "ln_attn_n": ln(), "ln_attn_m": ln(), "ln_conv": ln(),
        "ln_mlp_1": ln(), "ln_mlp_2": ln(), "ln_mlp_3": ln(),
        "attn_n": attn(keys[0]), "attn_m": attn(keys[1]),
        "mlp_1": mlp(keys[2]), "mlp_2": mlp(keys[3]), "mlp_3": mlp(keys[4]),
        "conv": (conv_w, jnp.zeros((1, E), dtype)),
    }


# ----------------------------------------------------------------------------
# Pure-JAX f32 reference (same math) for a correctness check
# ----------------------------------------------------------------------------
def ref_block(x, p, *, n_heads, eps=LN_EPS):
    def lnorm(v, g, b):
        mu = v.mean(-1, keepdims=True)
        var = ((v - mu) ** 2).mean(-1, keepdims=True)
        return (v - mu) / jnp.sqrt(var + eps) * g + b

    def attn(xs, prm):
        wqkv, bqkv, wo, bo = prm
        BSq, S, E = xs.shape
        dh = E // n_heads
        qkv = xs @ wqkv + bqkv
        q, k, v = qkv[..., :E], qkv[..., E:2 * E], qkv[..., 2 * E:]
        q = q.reshape(BSq, S, n_heads, dh).transpose(0, 2, 1, 3)
        k = k.reshape(BSq, S, n_heads, dh).transpose(0, 2, 1, 3)
        v = v.reshape(BSq, S, n_heads, dh).transpose(0, 2, 1, 3)
        s = jnp.einsum("bhqd,bhkd->bhqk", q, k) / math.sqrt(dh)
        pm = jax.nn.softmax(s, axis=-1)
        o = jnp.einsum("bhqk,bhkd->bhqd", pm, v).transpose(0, 2, 1, 3).reshape(BSq, S, E)
        return o @ wo + bo

    def mlp(xs, prm):
        w1, b1, w2, b2 = prm
        return jax.nn.gelu(xs @ w1 + b1) @ w2 + b2

    B, N, M, E = x.shape
    xn = lnorm(x, *p["ln_attn_n"])
    a = attn(jnp.transpose(xn, (0, 2, 1, 3)).reshape(B * M, N, E), p["attn_n"])
    x = x + jnp.transpose(a.reshape(B, M, N, E), (0, 2, 1, 3))
    x = x + mlp(lnorm(x, *p["ln_mlp_1"]), p["mlp_1"])
    xn = lnorm(x, *p["ln_attn_m"])
    x = x + attn(xn.reshape(B * N, M, E), p["attn_m"]).reshape(B, N, M, E)
    x = x + mlp(lnorm(x, *p["ln_mlp_2"]), p["mlp_2"])
    xn = lnorm(x, *p["ln_conv"])
    w_taps, c_bias = p["conv"]
    xp = jnp.pad(xn, ((0, 0), (1, 1), (1, 1), (0, 0)))
    conv = jnp.zeros_like(x) + c_bias
    for ky in range(3):
        for kx in range(3):
            conv = conv + jnp.einsum("bnme,ef->bnmf",
                                     xp[:, ky:ky + N, kx:kx + M, :],
                                     w_taps[ky * 3 + kx])
    x = x + conv
    x = x + mlp(lnorm(x, *p["ln_mlp_3"]), p["mlp_3"])
    return x


if __name__ == "__main__":
    B, N, M, E = 2, 8, 8, 32
    n_heads, mult, init_std = 4, 4, 0.02

    # Run probes once outside of jit tracing.
    _buffered_one_supported()
    _vmem_limit_bytes()

    key = jax.random.PRNGKey(0)
    kx_, kp = jax.random.split(key)
    x = jax.random.normal(kx_, (B, N, M, E), jnp.float32)
    params = init_params(kp, E, n_heads, mult, init_std)

    fwd = jax.jit(functools.partial(conv_transformer_block, n_heads=n_heads))
    out = jax.block_until_ready(fwd(x, params))

    ref = ref_block(x, params, n_heads=n_heads)
    err = float(jnp.max(jnp.abs(out - ref)))
    assert out.shape == (B, N, M, E)
    # bf16 matmul operands + approx-reciprocal softmax vs f32 reference.
    assert err < 3e-2, f"max abs err {err}"
    print("KERNEL_OK")
</pallas_src>

<mosaic_0001>
module attributes {stable_mosaic.version = 11 : i64} {
  func.func @k(%arg0: i32, %arg1: memref<8x128xf32, #tpu.memory_space<vmem>>, %arg2: memref<8x128xf32, #tpu.memory_space<vmem>>, %arg3: memref<8x128xf32, #tpu.memory_space<vmem>>) attributes {dimension_semantics = [#tpu.dimension_semantics<arbitrary>], iteration_bounds = array<i64: 2>, scalar_prefetch = 0 : i64, scratch_operands = 0 : i64, tpu.core_type = #tpu.core_type<tc>, window_params = [{transform_indices = @transform_0, window_bounds = array<i64: 8, 128>}, {pipeline_mode = #tpu.pipeline_mode<synchronous>, transform_indices = @transform_1, window_bounds = array<i64: 8, 128>}, {transform_indices = @transform_2, window_bounds = array<i64: 8, 128>}]} {
    %c0 = arith.constant 0 : index
    %c0_0 = arith.constant 0 : index
    %0 = vector.load %arg1[%c0, %c0_0] : memref<8x128xf32, #tpu.memory_space<vmem>>, vector<8x128xf32>
    %c0_1 = arith.constant 0 : index
    %c0_2 = arith.constant 0 : index
    %1 = vector.load %arg2[%c0_1, %c0_2] : memref<8x128xf32, #tpu.memory_space<vmem>>, vector<8x128xf32>
    %2 = arith.addf %0, %1 : vector<8x128xf32>
    %c0_3 = arith.constant 0 : index
    %c0_4 = arith.constant 0 : index
    %3 = vector.load %arg3[%c0_3, %c0_4] : memref<8x128xf32, #tpu.memory_space<vmem>>, vector<8x128xf32>
    tpu.vector_store %arg3[%c0_3, %c0_4], %2 {strides = array<i32>} : memref<8x128xf32, #tpu.memory_space<vmem>>, vector<8x128xf32>,
    return
  }
  func.func @transform_0(%arg0: i32) -> (i32, i32) {
    %c0_i32 = arith.constant 0 : i32
    %c0_i32_0 = arith.constant 0 : i32
    return %arg0, %c0_i32 : i32, i32
  }
  func.func @transform_1(%arg0: i32) -> (i32, i32) {
    %c0_i32 = arith.constant 0 : i32
    %c0_i32_0 = arith.constant 0 : i32
    %c0_i32_1 = arith.constant 0 : i32
    return %c0_i32, %c0_i32_0 : i32, i32
  }
  func.func @transform_2(%arg0: i32) -> (i32, i32) {
    %c0_i32 = arith.constant 0 : i32
    %c0_i32_0 = arith.constant 0 : i32
    return %arg0, %c0_i32 : i32, i32
  }
}

module attributes {stable_mosaic.version = 11 : i64} {
  func.func @_conv_mlp_kernel(%arg0: i32, %arg1: memref<1x8x8x32xf32, #tpu.memory_space<vmem>>, %arg2: memref<1x32xf32, #tpu.memory_space<vmem>>, %arg3: memref<1x32xf32, #tpu.memory_space<vmem>>, %arg4: memref<9x32x32xbf16, #tpu.memory_space<vmem>>, %arg5: memref<1x32xf32, #tpu.memory_space<vmem>>, %arg6: memref<1x32xf32, #tpu.memory_space<vmem>>, %arg7: memref<1x32xf32, #tpu.memory_space<vmem>>, %arg8: memref<32x128xbf16, #tpu.memory_space<vmem>>, %arg9: memref<1x128xf32, #tpu.memory_space<vmem>>, %arg10: memref<128x32xbf16, #tpu.memory_space<vmem>>, %arg11: memref<1x32xf32, #tpu.memory_space<vmem>>, %arg12: memref<1x8x8x32xf32, #tpu.memory_space<vmem>>) attributes {dimension_semantics = [#tpu.dimension_semantics<parallel>], iteration_bounds = array<i64: 2>, scalar_prefetch = 0 : i64, scratch_operands = 0 : i64, tpu.core_type = #tpu.core_type<tc>, window_params = [{transform_indices = @transform_0, window_bounds = array<i64: 1, 8, 8, 32>}, {pipeline_mode = #tpu.pipeline_mode<synchronous>, transform_indices = @transform_1, window_bounds = array<i64: 1, 32>}, {pipeline_mode = #tpu.pipeline_mode<synchronous>, transform_indices = @transform_2, window_bounds = array<i64: 1, 32>}, {pipeline_mode = #tpu.pipeline_mode<synchronous>, transform_indices = @transform_3, window_bounds = array<i64: 9, 32, 32>}, {pipeline_mode = #tpu.pipeline_mode<synchronous>, transform_indices = @transform_4, window_bounds = array<i64: 1, 32>}, {pipeline_mode = #tpu.pipeline_mode<synchronous>, transform_indices = @transform_5, window_bounds = array<i64: 1, 32>}, {pipeline_mode = #tpu.pipeline_mode<synchronous>, transform_indices = @transform_6, window_bounds = array<i64: 1, 32>}, {pipeline_mode = #tpu.pipeline_mode<synchronous>, transform_indices = @transform_7, window_bounds = array<i64: 32, 128>}, {pipeline_mode = #tpu.pipeline_mode<synchronous>, transform_indices = @transform_8, window_bounds = array<i64: 1, 128>}, {pipeline_mode = #tpu.pipeline_mode<synchronous>, transform_indices = @transform_9, window_bounds = array<i64: 128, 32>}, {pipeline_mode = #tpu.pipeline_mode<synchronous>, transform_indices = @transform_10, window_bounds = array<i64: 1, 32>}, {transform_indices = @transform_11, window_bounds = array<i64: 1, 8, 8, 32>}]} {
    %c0 = arith.constant 0 : index
    %c0_0 = arith.constant 0 : index
    %c0_1 = arith.constant 0 : index
    %c0_2 = arith.constant 0 : index
    %0 = vector.load %arg1[%c0, %c0_0, %c0_1, %c0_2] : memref<1x8x8x32xf32, #tpu.memory_space<vmem>>, vector<1x8x8x32xf32>
    %1 = vector.shape_cast %0 : vector<1x8x8x32xf32> to vector<8x8x32xf32>
    %c0_3 = arith.constant 0 : index
    %c0_4 = arith.constant 0 : index
    %2 = vector.load %arg2[%c0_3, %c0_4] : memref<1x32xf32, #tpu.memory_space<vmem>>, vector<1x32xf32>
    %c0_5 = arith.constant 0 : index
    %c0_6 = arith.constant 0 : index
    %3 = vector.load %arg3[%c0_5, %c0_6] : memref<1x32xf32, #tpu.memory_space<vmem>>, vector<1x32xf32>
    %cst = arith.constant dense<0.000000e+00> : vector<8x8xf32>
    %4 = vector.multi_reduction <add>, %1, %cst [2] : vector<8x8x32xf32> to vector<8x8xf32>
    %5 = vector.shape_cast %4 : vector<8x8xf32> to vector<8x8x1xf32>
    %cst_7 = arith.constant 3.200000e+01 : f32
    %6 = vector.broadcast %cst_7 : f32 to vector<8x8x1xf32>
    %7 = arith.divf %5, %6 : vector<8x8x1xf32>
    %8 = vector.broadcast %7 : vector<8x8x1xf32> to vector<8x8x32xf32>
    %9 = arith.subf %1, %8 : vector<8x8x32xf32>
    %10 = arith.mulf %9, %9 : vector<8x8x32xf32>
    %cst_8 = arith.constant dense<0.000000e+00> : vector<8x8xf32>
    %11 = vector.multi_reduction <add>, %10, %cst_8 [2] : vector<8x8x32xf32> to vector<8x8xf32>
    %12 = vector.shape_cast %11 : vector<8x8xf32> to vector<8x8x1xf32>
    %cst_9 = arith.constant 3.200000e+01 : f32
    %13 = vector.broadcast %cst_9 : f32 to vector<8x8x1xf32>
    %14 = arith.divf %12, %13 : vector<8x8x1xf32>
    %15 = vector.broadcast %7 : vector<8x8x1xf32> to vector<8x8x32xf32>
    %16 = arith.subf %1, %15 : vector<8x8x32xf32>
    %cst_10 = arith.constant 9.99999974E-6 : f32
    %17 = vector.broadcast %cst_10 : f32 to vector<8x8x1xf32>
    %18 = arith.addf %14, %17 : vector<8x8x1xf32>
    %19 = math.rsqrt %18 : vector<8x8x1xf32>
    %20 = vector.broadcast %19 : vector<8x8x1xf32> to vector<8x8x32xf32>
    %21 = arith.mulf %16, %20 : vector<8x8x32xf32>
    %22 = vector.shape_cast %2 : vector<1x32xf32> to vector<1x1x32xf32>
    %23 = vector.broadcast %22 : vector<1x1x32xf32> to vector<8x8x32xf32>
    %24 = arith.mulf %21, %23 : vector<8x8x32xf32>
    %25 = vector.shape_cast %3 : vector<1x32xf32> to vector<1x1x32xf32>
    %26 = vector.broadcast %25 : vector<1x1x32xf32> to vector<8x8x32xf32>
    %27 = arith.addf %24, %26 : vector<8x8x32xf32>
    %c0_i32 = arith.constant 0 : i32
    %28 = arith.sitofp %c0_i32 : i32 to f32
    %29 = vector.broadcast %28 : f32 to vector<1x8x32xf32>
    %30 = tpu.concatenate %29, %27 in 0 : vector<1x8x32xf32>, vector<8x8x32xf32> -> vector<9x8x32xf32>
    %31 = vector.broadcast %28 : f32 to vector<1x8x32xf32>
    %32 = tpu.concatenate %30, %31 in 0 : vector<9x8x32xf32>, vector<1x8x32xf32> -> vector<10x8x32xf32>
    %33 = vector.broadcast %28 : f32 to vector<10x1x32xf32>
    %34 = tpu.concatenate %33, %32 in 1 : vector<10x1x32xf32>, vector<10x8x32xf32> -> vector<10x9x32xf32>
    %35 = vector.broadcast %28 : f32 to vector<10x1x32xf32>
    %36 = tpu.concatenate %34, %35 in 1 : vector<10x9x32xf32>, vector<10x1x32xf32> -> vector<10x10x32xf32>
    %37 = arith.truncf %36 : vector<10x10x32xf32> to vector<10x10x32xbf16>
    %cst_11 = arith.constant 0.000000e+00 : f32
    %38 = vector.broadcast %cst_11 : f32 to vector<64x32xf32>
    %c0_12 = arith.constant 0 : index
    %c0_13 = arith.constant 0 : index
    %39 = vector.load %arg5[%c0_12, %c0_13] : memref<1x32xf32, #tpu.memory_space<vmem>>, vector<1x32xf32>
    %40 = vector.broadcast %39 : vector<1x32xf32> to vector<64x32xf32>
    %41 = arith.addf %38, %40 : vector<64x32xf32>
    %42 = vector.extract_strided_slice %37 {offsets = [0, 0, 0], sizes = [10, 8, 32], strides = [1, 1, 1]} : vector<10x10x32xbf16> to vector<10x8x32xbf16>
    %43 = vector.extract_strided_slice %42 {offsets = [0, 0, 0], sizes = [8, 8, 32], strides = [1, 1, 1]} : vector<10x8x32xbf16> to vector<8x8x32xbf16>
    %44 = vector.shape_cast %43 : vector<8x8x32xbf16> to vector<64x32xbf16>
    %c0_14 = arith.constant 0 : index
    %c0_15 = arith.constant 0 : index
    %c0_16 = arith.constant 0 : index
    %45 = vector.load %arg4[%c0_14, %c0_15, %c0_16] : memref<9x32x32xbf16, #tpu.memory_space<vmem>>, vector<1x32x32xbf16>
    %46 = vector.shape_cast %45 : vector<1x32x32xbf16> to vector<32x32xbf16>
    %cst_17 = arith.constant dense<0.000000e+00> : vector<64x32xf32>
    %47 = tpu.matmul %44, %46, %cst_17 {dimension_numbers = #tpu.dot_dimension_numbers<[1], [0], [0], [1], [0, 0, 1, 1], [], []>} : vector<64x32xbf16>, vector<32x32xbf16>, vector<64x32xf32> -> vector<64x32xf32>
    %48 = arith.addf %41, %47 : vector<64x32xf32>
    %49 = vector.extract_strided_slice %42 {offsets = [1, 0, 0], sizes = [8, 8, 32], strides = [1, 1, 1]} : vector<10x8x32xbf16> to vector<8x8x32xbf16>
    %50 = vector.shape_cast %49 : vector<8x8x32xbf16> to vector<64x32xbf16>
    %c3 = arith.constant 3 : index
    %c0_18 = arith.constant 0 : index
    %c0_19 = arith.constant 0 : index
    %51 = vector.load %arg4[%c3, %c0_18, %c0_19] : memref<9x32x32xbf16, #tpu.memory_space<vmem>>, vector<1x32x32xbf16>
    %52 = vector.shape_cast %51 : vector<1x32x32xbf16> to vector<32x32xbf16>
    %cst_20 = arith.constant dense<0.000000e+00> : vector<64x32xf32>
    %53 = tpu.matmul %50, %52, %cst_20 {dimension_numbers = #tpu.dot_dimension_numbers<[1], [0], [0], [1], [0, 0, 1, 1], [], []>} : vector<64x32xbf16>, vector<32x32xbf16>, vector<64x32xf32> -> vector<64x32xf32>
    %54 = arith.addf %48, %53 : vector<64x32xf32>
    %55 = vector.extract_strided_slice %42 {offsets = [2, 0, 0], sizes = [8, 8, 32], strides = [1, 1, 1]} : vector<10x8x32xbf16> to vector<8x8x32xbf16>
    %56 = vector.shape_cast %55 : vector<8x8x32xbf16> to vector<64x32xbf16>
    %c6 = arith.constant 6 : index
    %c0_21 = arith.constant 0 : index
    %c0_22 = arith.constant 0 : index
    %57 = vector.load %arg4[%c6, %c0_21, %c0_22] : memref<9x32x32xbf16, #tpu.memory_space<vmem>>, vector<1x32x32xbf16>
    %58 = vector.shape_cast %57 : vector<1x32x32xbf16> to vector<32x32xbf16>
    %cst_23 = arith.constant dense<0.000000e+00> : vector<64x32xf32>
    %59 = tpu.matmul %56, %58, %cst_23 {dimension_numbers = #tpu.dot_dimension_numbers<[1], [0], [0], [1], [0, 0, 1, 1], [], []>} : vector<64x32xbf16>, vector<32x32xbf16>, vector<64x32xf32> -> vector<64x32xf32>
    %60 = arith.addf %54, %59 : vector<64x32xf32>
    %61 = vector.extract_strided_slice %37 {offsets = [0, 1, 0], sizes = [10, 8, 32], strides = [1, 1, 1]} : vector<10x10x32xbf16> to vector<10x8x32xbf16>
    %62 = vector.extract_strided_slice %61 {offsets = [0, 0, 0], sizes = [8, 8, 32], strides = [1, 1, 1]} : vector<10x8x32xbf16> to vector<8x8x32xbf16>
    %63 = vector.shape_cast %62 : vector<8x8x32xbf16> to vector<64x32xbf16>
    %c1 = arith.constant 1 : index
    %c0_24 = arith.constant 0 : index
    %c0_25 = arith.constant 0 : index
    %64 = vector.load %arg4[%c1, %c0_24, %c0_25] : memref<9x32x32xbf16, #tpu.memory_space<vmem>>, vector<1x32x32xbf16>
    %65 = vector.shape_cast %64 : vector<1x32x32xbf16> to vector<32x32xbf16>
    %cst_26 = arith.constant dense<0.000000e+00> : vector<64x32xf32>
    %66 = tpu.matmul %63, %65, %cst_26 {dimension_numbers = #tpu.dot_dimension_numbers<[1], [0], [0], [1], [0, 0, 1, 1], [], []>} : vector<64x32xbf16>, vector<32x32xbf16>, vector<64x32xf32> -> vector<64x32xf32>
    %67 = arith.addf %60, %66 : vector<64x32xf32>
    %68 = vector.extract_strided_slice %61 {offsets = [1, 0, 0], sizes = [8, 8, 32], strides = [1, 1, 1]} : vector<10x8x32xbf16> to vector<8x8x32xbf16>
    %69 = vector.shape_cast %68 : vector<8x8x32xbf16> to vector<64x32xbf16>
    %c4 = arith.constant 4 : index
    %c0_27 = arith.constant 0 : index
    %c0_28 = arith.constant 0 : index
    %70 = vector.load %arg4[%c4, %c0_27, %c0_28] : memref<9x32x32xbf16, #tpu.memory_space<vmem>>, vector<1x32x32xbf16>
    %71 = vector.shape_cast %70 : vector<1x32x32xbf16> to vector<32x32xbf16>
    %cst_29 = arith.constant dense<0.000000e+00> : vector<64x32xf32>
    %72 = tpu.matmul %69, %71, %cst_29 {dimension_numbers = #tpu.dot_dimension_numbers<[1], [0], [0], [1], [0, 0, 1, 1], [], []>} : vector<64x32xbf16>, vector<32x32xbf16>, vector<64x32xf32> -> vector<64x32xf32>
    %73 = arith.addf %67, %72 : vector<64x32xf32>
    %74 = vector.extract_strided_slice %61 {offsets = [2, 0, 0], sizes = [8, 8, 32], strides = [1, 1, 1]} : vector<10x8x32xbf16> to vector<8x8x32xbf16>
    %75 = vector.shape_cast %74 : vector<8x8x32xbf16> to vector<64x32xbf16>
    %c7 = arith.constant 7 : index
    %c0_30 = arith.constant 0 : index
    %c0_31 = arith.constant 0 : index
    %76 = vector.load %arg4[%c7, %c0_30, %c0_31] : memref<9x32x32xbf16, #tpu.memory_space<vmem>>, vector<1x32x32xbf16>
    %77 = vector.shape_cast %76 : vector<1x32x32xbf16> to vector<32x32xbf16>
    %cst_32 = arith.constant dense<0.000000e+00> : vector<64x32xf32>
    %78 = tpu.matmul %75, %77, %cst_32 {dimension_numbers = #tpu.dot_dimension_numbers<[1], [0], [0], [1], [0, 0, 1, 1], [], []>} : vector<64x32xbf16>, vector<32x32xbf16>, vector<64x32xf32> -> vector<64x32xf32>
    %79 = arith.addf %73, %78 : vector<64x32xf32>
    %80 = vector.extract_strided_slice %37 {offsets = [0, 2, 0], sizes = [10, 8, 32], strides = [1, 1, 1]} : vector<10x10x32xbf16> to vector<10x8x32xbf16>
    %81 = vector.extract_strided_slice %80 {offsets = [0, 0, 0], sizes = [8, 8, 32], strides = [1, 1, 1]} : vector<10x8x32xbf16> to vector<8x8x32xbf16>
    %82 = vector.shape_cast %81 : vector<8x8x32xbf16> to vector<64x32xbf16>
    %c2 = arith.constant 2 : index
    %c0_33 = arith.constant 0 : index
    %c0_34 = arith.constant 0 : index
    %83 = vector.load %arg4[%c2, %c0_33, %c0_34] : memref<9x32x32xbf16, #tpu.memory_space<vmem>>, vector<1x32x32xbf16>
    %84 = vector.shape_cast %83 : vector<1x32x32xbf16> to vector<32x32xbf16>
    %cst_35 = arith.constant dense<0.000000e+00> : vector<64x32xf32>
    %85 = tpu.matmul %82, %84, %cst_35 {dimension_numbers = #tpu.dot_dimension_numbers<[1], [0], [0], [1], [0, 0, 1, 1], [], []>} : vector<64x32xbf16>, vector<32x32xbf16>, vector<64x32xf32> -> vector<64x32xf32>
    %86 = arith.addf %79, %85 : vector<64x32xf32>
    %87 = vector.extract_strided_slice %80 {offsets = [1, 0, 0], sizes = [8, 8, 32], strides = [1, 1, 1]} : vector<10x8x32xbf16> to vector<8x8x32xbf16>
    %88 = vector.shape_cast %87 : vector<8x8x32xbf16> to vector<64x32xbf16>
    %c5 = arith.constant 5 : index
    %c0_36 = arith.constant 0 : index
    %c0_37 = arith.constant 0 : index
    %89 = vector.load %arg4[%c5, %c0_36, %c0_37] : memref<9x32x32xbf16, #tpu.memory_space<vmem>>, vector<1x32x32xbf16>
    %90 = vector.shape_cast %89 : vector<1x32x32xbf16> to vector<32x32xbf16>
    %cst_38 = arith.constant dense<0.000000e+00> : vector<64x32xf32>
    %91 = tpu.matmul %88, %90, %cst_38 {dimension_numbers = #tpu.dot_dimension_numbers<[1], [0], [0], [1], [0, 0, 1, 1], [], []>} : vector<64x32xbf16>, vector<32x32xbf16>, vector<64x32xf32> -> vector<64x32xf32>
    %92 = arith.addf %86, %91 : vector<64x32xf32>
    %93 = vector.extract_strided_slice %80 {offsets = [2, 0, 0], sizes = [8, 8, 32], strides = [1, 1, 1]} : vector<10x8x32xbf16> to vector<8x8x32xbf16>
    %94 = vector.shape_cast %93 : vector<8x8x32xbf16> to vector<64x32xbf16>
    %c8 = arith.constant 8 : index
    %c0_39 = arith.constant 0 : index
    %c0_40 = arith.constant 0 : index
    %95 = vector.load %arg4[%c8, %c0_39, %c0_40] : memref<9x32x32xbf16, #tpu.memory_space<vmem>>, vector<1x32x32xbf16>
    %96 = vector.shape_cast %95 : vector<1x32x32xbf16> to vector<32x32xbf16>
    %cst_41 = arith.constant dense<0.000000e+00> : vector<64x32xf32>
    %97 = tpu.matmul %94, %96, %cst_41 {dimension_numbers = #tpu.dot_dimension_numbers<[1], [0], [0], [1], [0, 0, 1, 1], [], []>} : vector<64x32xbf16>, vector<32x32xbf16>, vector<64x32xf32> -> vector<64x32xf32>
    %98 = arith.addf %92, %97 : vector<64x32xf32>
    %99 = vector.shape_cast %1 : vector<8x8x32xf32> to vector<64x32xf32>
    %100 = arith.addf %99, %98 : vector<64x32xf32>
    %c0_42 = arith.constant 0 : index
    %c0_43 = arith.constant 0 : index
    %101 = vector.load %arg6[%c0_42, %c0_43] : memref<1x32xf32, #tpu.memory_space<vmem>>, vector<1x32xf32>
    %c0_44 = arith.constant 0 : index
    %c0_45 = arith.constant 0 : index
    %102 = vector.load %arg7[%c0_44, %c0_45] : memref<1x32xf32, #tpu.memory_space<vmem>>, vector<1x32xf32>
    %cst_46 = arith.constant dense<0.000000e+00> : vector<64xf32>
    %103 = vector.multi_reduction <add>, %100, %cst_46 [1] : vector<64x32xf32> to vector<64xf32>
    %104 = vector.shape_cast %103 : vector<64xf32> to vector<64x1xf32>
    %cst_47 = arith.constant 3.200000e+01 : f32
    %105 = vector.broadcast %cst_47 : f32 to vector<64x1xf32>
    %106 = arith.divf %104, %105 : vector<64x1xf32>
    %107 = vector.broadcast %106 : vector<64x1xf32> to vector<64x32xf32>
    %108 = arith.subf %100, %107 : vector<64x32xf32>
    %109 = arith.mulf %108, %108 : vector<64x32xf32>
    %cst_48 = arith.constant dense<0.000000e+00> : vector<64xf32>
    %110 = vector.multi_reduction <add>, %109, %cst_48 [1] : vector<64x32xf32> to vector<64xf32>
    %111 = vector.shape_cast %110 : vector<64xf32> to vector<64x1xf32>
    %cst_49 = arith.constant 3.200000e+01 : f32
    %112 = vector.broadcast %cst_49 : f32 to vector<64x1xf32>
    %113 = arith.divf %111, %112 : vector<64x1xf32>
    %114 = vector.broadcast %106 : vector<64x1xf32> to vector<64x32xf32>
    %115 = arith.subf %100, %114 : vector<64x32xf32>
    %cst_50 = arith.constant 9.99999974E-6 : f32
    %116 = vector.broadcast %cst_50 : f32 to vector<64x1xf32>
    %117 = arith.addf %113, %116 : vector<64x1xf32>
    %118 = math.rsqrt %117 : vector<64x1xf32>
    %119 = vector.broadcast %118 : vector<64x1xf32> to vector<64x32xf32>
    %120 = arith.mulf %115, %119 : vector<64x32xf32>
    %121 = vector.broadcast %101 : vector<1x32xf32> to vector<64x32xf32>
    %122 = arith.mulf %120, %121 : vector<64x32xf32>
    %123 = vector.broadcast %102 : vector<1x32xf32> to vector<64x32xf32>
    %124 = arith.addf %122, %123 : vector<64x32xf32>
    %125 = arith.truncf %124 : vector<64x32xf32> to vector<64x32xbf16>
    %c0_51 = arith.constant 0 : index
    %c0_52 = arith.constant 0 : index
    %126 = vector.load %arg8[%c0_51, %c0_52] : memref<32x128xbf16, #tpu.memory_space<vmem>>, vector<32x128xbf16>
    %cst_53 = arith.constant dense<0.000000e+00> : vector<64x128xf32>
    %127 = tpu.matmul %125, %126, %cst_53 {dimension_numbers = #tpu.dot_dimension_numbers<[1], [0], [0], [1], [0, 0, 1, 1], [], []>} : vector<64x32xbf16>, vector<32x128xbf16>, vector<64x128xf32> -> vector<64x128xf32>
    %c0_54 = arith.constant 0 : index
    %c0_55 = arith.constant 0 : index
    %128 = vector.load %arg9[%c0_54, %c0_55] : memref<1x128xf32, #tpu.memory_space<vmem>>, vector<1x128xf32>
    %129 = vector.broadcast %128 : vector<1x128xf32> to vector<64x128xf32>
    %130 = arith.addf %127, %129 : vector<64x128xf32>
    %131 = arith.mulf %130, %130 : vector<64x128xf32>
    %132 = arith.mulf %130, %131 : vector<64x128xf32>
    %cst_56 = arith.constant 4.471500e-02 : f32
    %133 = vector.broadcast %cst_56 : f32 to vector<64x128xf32>
    %134 = arith.mulf %133, %132 : vector<64x128xf32>
    %135 = arith.addf %130, %134 : vector<64x128xf32>
    %cst_57 = arith.constant 0.797884583 : f32
    %136 = vector.broadcast %cst_57 : f32 to vector<64x128xf32>
    %137 = arith.mulf %136, %135 : vector<64x128xf32>
    %138 = math.tanh %137 : vector<64x128xf32>
    %cst_58 = arith.constant 1.000000e+00 : f32
    %139 = vector.broadcast %cst_58 : f32 to vector<64x128xf32>
    %140 = arith.addf %139, %138 : vector<64x128xf32>
    %cst_59 = arith.constant 5.000000e-01 : f32
    %141 = vector.broadcast %cst_59 : f32 to vector<64x128xf32>
    %142 = arith.mulf %141, %140 : vector<64x128xf32>
    %143 = arith.mulf %130, %142 : vector<64x128xf32>
    %144 = arith.truncf %143 : vector<64x128xf32> to vector<64x128xbf16>
    %c0_60 = arith.constant 0 : index
    %c0_61 = arith.constant 0 : index
    %145 = vector.load %arg10[%c0_60, %c0_61] : memref<128x32xbf16, #tpu.memory_space<vmem>>, vector<128x32xbf16>
    %cst_62 = arith.constant dense<0.000000e+00> : vector<64x32xf32>
    %146 = tpu.matmul %144, %145, %cst_62 {dimension_numbers = #tpu.dot_dimension_numbers<[1], [0], [0], [1], [0, 0, 1, 1], [], []>} : vector<64x128xbf16>, vector<128x32xbf16>, vector<64x32xf32> -> vector<64x32xf32>
    %147 = arith.addf %100, %146 : vector<64x32xf32>
    %c0_63 = arith.constant 0 : index
    %c0_64 = arith.constant 0 : index
    %148 = vector.load %arg11[%c0_63, %c0_64] : memref<1x32xf32, #tpu.memory_space<vmem>>, vector<1x32xf32>
    %149 = vector.broadcast %148 : vector<1x32xf32> to vector<64x32xf32>
    %150 = arith.addf %147, %149 : vector<64x32xf32>
    %151 = vector.shape_cast %150 : vector<64x32xf32> to vector<8x8x32xf32>
    %c0_65 = arith.constant 0 : index
    %c0_66 = arith.constant 0 : index
    %c0_67 = arith.constant 0 : index
    %c0_68 = arith.constant 0 : index
    %152 = vector.load %arg12[%c0_65, %c0_66, %c0_67, %c0_68] : memref<1x8x8x32xf32, #tpu.memory_space<vmem>>, vector<1x8x8x32xf32>
    %153 = vector.shape_cast %152 : vector<1x8x8x32xf32> to vector<8x8x32xf32>
    %154 = vector.shape_cast %151 : vector<8x8x32xf32> to vector<1x8x8x32xf32>
    tpu.vector_store %arg12[%c0_65, %c0_66, %c0_67, %c0_68], %154 {strides = array<i32>} : memref<1x8x8x32xf32, #tpu.memory_space<vmem>>, vector<1x8x8x32xf32>,
    return
  }
  func.func @transform_0(%arg0: i32) -> (i32, i32, i32, i32) {
    %c0_i32 = arith.constant 0 : i32
    %c0_i32_0 = arith.constant 0 : i32
    %c0_i32_1 = arith.constant 0 : i32
    %c0_i32_2 = arith.constant 0 : i32
    return %arg0, %c0_i32, %c0_i32_0, %c0_i32_1 : i32, i32, i32, i32
  }
  func.func @transform_1(%arg0: i32) -> (i32, i32) {
    %c0_i32 = arith.constant 0 : i32
    %c0_i32_0 = arith.constant 0 : i32
    %c0_i32_1 = arith.constant 0 : i32
    return %c0_i32, %c0_i32_0 : i32, i32
  }
  func.func @transform_2(%arg0: i32) -> (i32, i32) {
    %c0_i32 = arith.constant 0 : i32
    %c0_i32_0 = arith.constant 0 : i32
    %c0_i32_1 = arith.constant 0 : i32
    return %c0_i32, %c0_i32_0 : i32, i32
  }
  func.func @transform_3(%arg0: i32) -> (i32, i32, i32) {
    %c0_i32 = arith.constant 0 : i32
    %c0_i32_0 = arith.constant 0 : i32
    %c0_i32_1 = arith.constant 0 : i32
    %c0_i32_2 = arith.constant 0 : i32
    return %c0_i32, %c0_i32_0, %c0_i32_1 : i32, i32, i32
  }
  func.func @transform_4(%arg0: i32) -> (i32, i32) {
    %c0_i32 = arith.constant 0 : i32
    %c0_i32_0 = arith.constant 0 : i32
    %c0_i32_1 = arith.constant 0 : i32
    return %c0_i32, %c0_i32_0 : i32, i32
  }
  func.func @transform_5(%arg0: i32) -> (i32, i32) {
    %c0_i32 = arith.constant 0 : i32
    %c0_i32_0 = arith.constant 0 : i32
    %c0_i32_1 = arith.constant 0 : i32
    return %c0_i32, %c0_i32_0 : i32, i32
  }
  func.func @transform_6(%arg0: i32) -> (i32, i32) {
    %c0_i32 = arith.constant 0 : i32
    %c0_i32_0 = arith.constant 0 : i32
    %c0_i32_1 = arith.constant 0 : i32
    return %c0_i32, %c0_i32_0 : i32, i32
  }
  func.func @transform_7(%arg0: i32) -> (i32, i32) {
    %c0_i32 = arith.constant 0 : i32
    %c0_i32_0 = arith.constant 0 : i32
    %c0_i32_1 = arith.constant 0 : i32
    return %c0_i32, %c0_i32_0 : i32, i32
  }
  func.func @transform_8(%arg0: i32) -> (i32, i32) {
    %c0_i32 = arith.constant 0 : i32
    %c0_i32_0 = arith.constant 0 : i32
    %c0_i32_1 = arith.constant 0 : i32
    return %c0_i32, %c0_i32_0 : i32, i32
  }
  func.func @transform_9(%arg0: i32) -> (i32, i32) {
    %c0_i32 = arith.constant 0 : i32
    %c0_i32_0 = arith.constant 0 : i32
    %c0_i32_1 = arith.constant 0 : i32
    return %c0_i32, %c0_i32_0 : i32, i32
  }
  func.func @transform_10(%arg0: i32) -> (i32, i32) {
    %c0_i32 = arith.constant 0 : i32
    %c0_i32_0 = arith.constant 0 : i32
    %c0_i32_1 = arith.constant 0 : i32
    return %c0_i32, %c0_i32_0 : i32, i32
  }
  func.func @transform_11(%arg0: i32) -> (i32, i32, i32, i32) {
    %c0_i32 = arith.constant 0 : i32
    %c0_i32_0 = arith.constant 0 : i32
    %c0_i32_1 = arith.constant 0 : i32
    %c0_i32_2 = arith.constant 0 : i32
    return %arg0, %c0_i32, %c0_i32_0, %c0_i32_1 : i32, i32, i32, i32
  }
}

module attributes {stable_mosaic.version = 11 : i64} {
  func.func @_attn_mlp_kernel(%arg0: i32, %arg1: memref<8x8x32xf32, #tpu.memory_space<vmem>>, %arg2: memref<1x32xf32, #tpu.memory_space<vmem>>, %arg3: memref<1x32xf32, #tpu.memory_space<vmem>>, %arg4: memref<32x96xbf16, #tpu.memory_space<vmem>>, %arg5: memref<1x96xf32, #tpu.memory_space<vmem>>, %arg6: memref<32x32xbf16, #tpu.memory_space<vmem>>, %arg7: memref<1x32xf32, #tpu.memory_space<vmem>>, %arg8: memref<1x32xf32, #tpu.memory_space<vmem>>, %arg9: memref<1x32xf32, #tpu.memory_space<vmem>>, %arg10: memref<32x128xbf16, #tpu.memory_space<vmem>>, %arg11: memref<1x128xf32, #tpu.memory_space<vmem>>, %arg12: memref<128x32xbf16, #tpu.memory_space<vmem>>, %arg13: memref<1x32xf32, #tpu.memory_space<vmem>>, %arg14: memref<8x8x32xf32, #tpu.memory_space<vmem>>) attributes {dimension_semantics = [#tpu.dimension_semantics<parallel>], iteration_bounds = array<i64: 2>, scalar_prefetch = 0 : i64, scratch_operands = 0 : i64, tpu.core_type = #tpu.core_type<tc>, window_params = [{transform_indices = @transform_0, window_bounds = array<i64: 8, 8, 32>}, {pipeline_mode = #tpu.pipeline_mode<synchronous>, transform_indices = @transform_1, window_bounds = array<i64: 1, 32>}, {pipeline_mode = #tpu.pipeline_mode<synchronous>, transform_indices = @transform_2, window_bounds = array<i64: 1, 32>}, {pipeline_mode = #tpu.pipeline_mode<synchronous>, transform_indices = @transform_3, window_bounds = array<i64: 32, 96>}, {pipeline_mode = #tpu.pipeline_mode<synchronous>, transform_indices = @transform_4, window_bounds = array<i64: 1, 96>}, {pipeline_mode = #tpu.pipeline_mode<synchronous>, transform_indices = @transform_5, window_bounds = array<i64: 32, 32>}, {pipeline_mode = #tpu.pipeline_mode<synchronous>, transform_indices = @transform_6, window_bounds = array<i64: 1, 32>}, {pipeline_mode = #tpu.pipeline_mode<synchronous>, transform_indices = @transform_7, window_bounds = array<i64: 1, 32>}, {pipeline_mode = #tpu.pipeline_mode<synchronous>, transform_indices = @transform_8, window_bounds = array<i64: 1, 32>}, {pipeline_mode = #tpu.pipeline_mode<synchronous>, transform_indices = @transform_9, window_bounds = array<i64: 32, 128>}, {pipeline_mode = #tpu.pipeline_mode<synchronous>, transform_indices = @transform_10, window_bounds = array<i64: 1, 128>}, {pipeline_mode = #tpu.pipeline_mode<synchronous>, transform_indices = @transform_11, window_bounds = array<i64: 128, 32>}, {pipeline_mode = #tpu.pipeline_mode<synchronous>, transform_indices = @transform_12, window_bounds = array<i64: 1, 32>}, {transform_indices = @transform_13, window_bounds = array<i64: 8, 8, 32>}]} {
    %c0 = arith.constant 0 : index
    %c0_0 = arith.constant 0 : index
    %c0_1 = arith.constant 0 : index
    %0 = vector.load %arg1[%c0, %c0_0, %c0_1] : memref<8x8x32xf32, #tpu.memory_space<vmem>>, vector<8x8x32xf32>
    %1 = vector.shape_cast %0 : vector<8x8x32xf32> to vector<64x32xf32>
    %c0_2 = arith.constant 0 : index
    %c0_3 = arith.constant 0 : index
    %2 = vector.load %arg2[%c0_2, %c0_3] : memref<1x32xf32, #tpu.memory_space<vmem>>, vector<1x32xf32>
    %c0_4 = arith.constant 0 : index
    %c0_5 = arith.constant 0 : index
    %3 = vector.load %arg3[%c0_4, %c0_5] : memref<1x32xf32, #tpu.memory_space<vmem>>, vector<1x32xf32>
    %cst = arith.constant dense<0.000000e+00> : vector<64xf32>
    %4 = vector.multi_reduction <add>, %1, %cst [1] : vector<64x32xf32> to vector<64xf32>
    %5 = vector.shape_cast %4 : vector<64xf32> to vector<64x1xf32>
    %cst_6 = arith.constant 3.200000e+01 : f32
    %6 = vector.broadcast %cst_6 : f32 to vector<64x1xf32>
    %7 = arith.divf %5, %6 : vector<64x1xf32>
    %8 = vector.broadcast %7 : vector<64x1xf32> to vector<64x32xf32>
    %9 = arith.subf %1, %8 : vector<64x32xf32>
    %10 = arith.mulf %9, %9 : vector<64x32xf32>
    %cst_7 = arith.constant dense<0.000000e+00> : vector<64xf32>
    %11 = vector.multi_reduction <add>, %10, %cst_7 [1] : vector<64x32xf32> to vector<64xf32>
    %12 = vector.shape_cast %11 : vector<64xf32> to vector<64x1xf32>
    %cst_8 = arith.constant 3.200000e+01 : f32
    %13 = vector.broadcast %cst_8 : f32 to vector<64x1xf32>
    %14 = arith.divf %12, %13 : vector<64x1xf32>
    %15 = vector.broadcast %7 : vector<64x1xf32> to vector<64x32xf32>
    %16 = arith.subf %1, %15 : vector<64x32xf32>
    %cst_9 = arith.constant 9.99999974E-6 : f32
    %17 = vector.broadcast %cst_9 : f32 to vector<64x1xf32>
    %18 = arith.addf %14, %17 : vector<64x1xf32>
    %19 = math.rsqrt %18 : vector<64x1xf32>
    %20 = vector.broadcast %19 : vector<64x1xf32> to vector<64x32xf32>
    %21 = arith.mulf %16, %20 : vector<64x32xf32>
    %22 = vector.broadcast %2 : vector<1x32xf32> to vector<64x32xf32>
    %23 = arith.mulf %21, %22 : vector<64x32xf32>
    %24 = vector.broadcast %3 : vector<1x32xf32> to vector<64x32xf32>
    %25 = arith.addf %23, %24 : vector<64x32xf32>
    %26 = arith.truncf %25 : vector<64x32xf32> to vector<64x32xbf16>
    %c0_10 = arith.constant 0 : index
    %c0_11 = arith.constant 0 : index
    %27 = vector.load %arg4[%c0_10, %c0_11] : memref<32x96xbf16, #tpu.memory_space<vmem>>, vector<32x96xbf16>
    %cst_12 = arith.constant dense<0.000000e+00> : vector<64x96xf32>
    %28 = tpu.matmul %26, %27, %cst_12 {dimension_numbers = #tpu.dot_dimension_numbers<[1], [0], [0], [1], [0, 0, 1, 1], [], []>} : vector<64x32xbf16>, vector<32x96xbf16>, vector<64x96xf32> -> vector<64x96xf32>
    %c0_13 = arith.constant 0 : index
    %c0_14 = arith.constant 0 : index
    %29 = vector.load %arg5[%c0_13, %c0_14] : memref<1x96xf32, #tpu.memory_space<vmem>>, vector<1x96xf32>
    %30 = vector.broadcast %29 : vector<1x96xf32> to vector<64x96xf32>
    %31 = arith.addf %28, %30 : vector<64x96xf32>
    %cst_15 = arith.constant 0.000000e+00 : f32
    %32 = vector.broadcast %cst_15 : f32 to vector<64x32xf32>
    %c0_16 = arith.constant 0 : index
    %c0_17 = arith.constant 0 : index
    %33 = vector.load %arg7[%c0_16, %c0_17] : memref<1x32xf32, #tpu.memory_space<vmem>>, vector<1x32xf32>
    %34 = vector.broadcast %33 : vector<1x32xf32> to vector<64x32xf32>
    %35 = arith.addf %32, %34 : vector<64x32xf32>
    %36 = vector.extract_strided_slice %31 {offsets = [0, 0], sizes = [64, 8], strides = [1, 1]} : vector<64x96xf32> to vector<64x8xf32>
    %37 = vector.shape_cast %36 : vector<64x8xf32> to vector<8x8x8xf32>
    %38 = arith.truncf %37 : vector<8x8x8xf32> to vector<8x8x8xbf16>
    %39 = vector.extract_strided_slice %31 {offsets = [0, 32], sizes = [64, 8], strides = [1, 1]} : vector<64x96xf32> to vector<64x8xf32>
    %40 = vector.shape_cast %39 : vector<64x8xf32> to vector<8x8x8xf32>
    %41 = arith.truncf %40 : vector<8x8x8xf32> to vector<8x8x8xbf16>
    %42 = vector.extract_strided_slice %31 {offsets = [0, 64], sizes = [64, 8], strides = [1, 1]} : vector<64x96xf32> to vector<64x8xf32>
    %43 = vector.shape_cast %42 : vector<64x8xf32> to vector<8x8x8xf32>
    %44 = arith.truncf %43 : vector<8x8x8xf32> to vector<8x8x8xbf16>
    "tpu.trace_start"() <{level = 10 : i32, message = "bqd,bkd->bqk"}> : () -> ()
    %cst_18 = arith.constant dense<0.000000e+00> : vector<8x8x8xf32>
    %45 = tpu.matmul %38, %41, %cst_18 {dimension_numbers = #tpu.dot_dimension_numbers<[2], [2], [1], [1], [0, 0, 0, 1, 1, 1], [0], [0]>} : vector<8x8x8xbf16>, vector<8x8x8xbf16>, vector<8x8x8xf32> -> vector<8x8x8xf32>
    "tpu.trace_stop"() : () -> ()
    %cst_19 = arith.constant 0.353553385 : f32
    %46 = vector.broadcast %cst_19 : f32 to vector<8x8x8xf32>
    %47 = arith.mulf %45, %46 : vector<8x8x8xf32>
    %cst_20 = arith.constant dense<0xFF800000> : vector<8x8xf32>
    %48 = vector.multi_reduction <maximumf>, %47, %cst_20 [2] : vector<8x8x8xf32> to vector<8x8xf32>
    %49 = vector.shape_cast %48 : vector<8x8xf32> to vector<8x8x1xf32>
    %50 = vector.broadcast %49 : vector<8x8x1xf32> to vector<8x8x8xf32>
    %51 = arith.subf %47, %50 : vector<8x8x8xf32>
    %52 = math.exp %51 : vector<8x8x8xf32>
    %cst_21 = arith.constant dense<0.000000e+00> : vector<8x8xf32>
    %53 = vector.multi_reduction <add>, %52, %cst_21 [2] : vector<8x8x8xf32> to vector<8x8xf32>
    %54 = vector.shape_cast %53 : vector<8x8xf32> to vector<8x8x1xf32>
    %55 = tpu.reciprocal %54 {approx = true} : vector<8x8x1xf32> -> vector<8x8x1xf32>
    %56 = vector.broadcast %55 : vector<8x8x1xf32> to vector<8x8x8xf32>
    %57 = arith.mulf %52, %56 : vector<8x8x8xf32>
    %58 = arith.truncf %57 : vector<8x8x8xf32> to vector<8x8x8xbf16>
    "tpu.trace_start"() <{level = 10 : i32, message = "bqk,bkd->bqd"}> : () -> ()
    %cst_22 = arith.constant dense<0.000000e+00> : vector<8x8x8xf32>
    %59 = tpu.matmul %58, %44, %cst_22 {dimension_numbers = #tpu.dot_dimension_numbers<[2], [1], [1], [2], [0, 0, 0, 1, 1, 2], [0], [0]>} : vector<8x8x8xbf16>, vector<8x8x8xbf16>, vector<8x8x8xf32> -> vector<8x8x8xf32>
    "tpu.trace_stop"() : () -> ()
    %60 = vector.extract_strided_slice %31 {offsets = [0, 8], sizes = [64, 8], strides = [1, 1]} : vector<64x96xf32> to vector<64x8xf32>
    %61 = vector.shape_cast %60 : vector<64x8xf32> to vector<8x8x8xf32>
    %62 = arith.truncf %61 : vector<8x8x8xf32> to vector<8x8x8xbf16>
    %63 = vector.extract_strided_slice %31 {offsets = [0, 40], sizes = [64, 8], strides = [1, 1]} : vector<64x96xf32> to vector<64x8xf32>
    %64 = vector.shape_cast %63 : vector<64x8xf32> to vector<8x8x8xf32>
    %65 = arith.truncf %64 : vector<8x8x8xf32> to vector<8x8x8xbf16>
    %66 = vector.extract_strided_slice %31 {offsets = [0, 72], sizes = [64, 8], strides = [1, 1]} : vector<64x96xf32> to vector<64x8xf32>
    %67 = vector.shape_cast %66 : vector<64x8xf32> to vector<8x8x8xf32>
    %68 = arith.truncf %67 : vector<8x8x8xf32> to vector<8x8x8xbf16>
    "tpu.trace_start"() <{level = 10 : i32, message = "bqd,bkd->bqk"}> : () -> ()
    %cst_23 = arith.constant dense<0.000000e+00> : vector<8x8x8xf32>
    %69 = tpu.matmul %62, %65, %cst_23 {dimension_numbers = #tpu.dot_dimension_numbers<[2], [2], [1], [1], [0, 0, 0, 1, 1, 1], [0], [0]>} : vector<8x8x8xbf16>, vector<8x8x8xbf16>, vector<8x8x8xf32> -> vector<8x8x8xf32>
    "tpu.trace_stop"() : () -> ()
    %cst_24 = arith.constant 0.353553385 : f32
    %70 = vector.broadcast %cst_24 : f32 to vector<8x8x8xf32>
    %71 = arith.mulf %69, %70 : vector<8x8x8xf32>
    %cst_25 = arith.constant dense<0xFF800000> : vector<8x8xf32>
    %72 = vector.multi_reduction <maximumf>, %71, %cst_25 [2] : vector<8x8x8xf32> to vector<8x8xf32>
    %73 = vector.shape_cast %72 : vector<8x8xf32> to vector<8x8x1xf32>
    %74 = vector.broadcast %73 : vector<8x8x1xf32> to vector<8x8x8xf32>
    %75 = arith.subf %71, %74 : vector<8x8x8xf32>
    %76 = math.exp %75 : vector<8x8x8xf32>
    %cst_26 = arith.constant dense<0.000000e+00> : vector<8x8xf32>
    %77 = vector.multi_reduction <add>, %76, %cst_26 [2] : vector<8x8x8xf32> to vector<8x8xf32>
    %78 = vector.shape_cast %77 : vector<8x8xf32> to vector<8x8x1xf32>
    %79 = tpu.reciprocal %78 {approx = true} : vector<8x8x1xf32> -> vector<8x8x1xf32>
    %80 = vector.broadcast %79 : vector<8x8x1xf32> to vector<8x8x8xf32>
    %81 = arith.mulf %76, %80 : vector<8x8x8xf32>
    %82 = arith.truncf %81 : vector<8x8x8xf32> to vector<8x8x8xbf16>
    "tpu.trace_start"() <{level = 10 : i32, message = "bqk,bkd->bqd"}> : () -> ()
    %cst_27 = arith.constant dense<0.000000e+00> : vector<8x8x8xf32>
    %83 = tpu.matmul %82, %68, %cst_27 {dimension_numbers = #tpu.dot_dimension_numbers<[2], [1], [1], [2], [0, 0, 0, 1, 1, 2], [0], [0]>} : vector<8x8x8xbf16>, vector<8x8x8xbf16>, vector<8x8x8xf32> -> vector<8x8x8xf32>
    "tpu.trace_stop"() : () -> ()
    %84 = vector.extract_strided_slice %31 {offsets = [0, 16], sizes = [64, 8], strides = [1, 1]} : vector<64x96xf32> to vector<64x8xf32>
    %85 = vector.shape_cast %84 : vector<64x8xf32> to vector<8x8x8xf32>
    %86 = arith.truncf %85 : vector<8x8x8xf32> to vector<8x8x8xbf16>
    %87 = vector.extract_strided_slice %31 {offsets = [0, 48], sizes = [64, 8], strides = [1, 1]} : vector<64x96xf32> to vector<64x8xf32>
    %88 = vector.shape_cast %87 : vector<64x8xf32> to vector<8x8x8xf32>
    %89 = arith.truncf %88 : vector<8x8x8xf32> to vector<8x8x8xbf16>
    %90 = vector.extract_strided_slice %31 {offsets = [0, 80], sizes = [64, 8], strides = [1, 1]} : vector<64x96xf32> to vector<64x8xf32>
    %91 = vector.shape_cast %90 : vector<64x8xf32> to vector<8x8x8xf32>
    %92 = arith.truncf %91 : vector<8x8x8xf32> to vector<8x8x8xbf16>
    "tpu.trace_start"() <{level = 10 : i32, message = "bqd,bkd->bqk"}> : () -> ()
    %cst_28 = arith.constant dense<0.000000e+00> : vector<8x8x8xf32>
    %93 = tpu.matmul %86, %89, %cst_28 {dimension_numbers = #tpu.dot_dimension_numbers<[2], [2], [1], [1], [0, 0, 0, 1, 1, 1], [0], [0]>} : vector<8x8x8xbf16>, vector<8x8x8xbf16>, vector<8x8x8xf32> -> vector<8x8x8xf32>
    "tpu.trace_stop"() : () -> ()
    %cst_29 = arith.constant 0.353553385 : f32
    %94 = vector.broadcast %cst_29 : f32 to vector<8x8x8xf32>
    %95 = arith.mulf %93, %94 : vector<8x8x8xf32>
    %cst_30 = arith.constant dense<0xFF800000> : vector<8x8xf32>
    %96 = vector.multi_reduction <maximumf>, %95, %cst_30 [2] : vector<8x8x8xf32> to vector<8x8xf32>
    %97 = vector.shape_cast %96 : vector<8x8xf32> to vector<8x8x1xf32>
    %98 = vector.broadcast %97 : vector<8x8x1xf32> to vector<8x8x8xf32>
    %99 = arith.subf %95, %98 : vector<8x8x8xf32>
    %100 = math.exp %99 : vector<8x8x8xf32>
    %cst_31 = arith.constant dense<0.000000e+00> : vector<8x8xf32>
    %101 = vector.multi_reduction <add>, %100, %cst_31 [2] : vector<8x8x8xf32> to vector<8x8xf32>
    %102 = vector.shape_cast %101 : vector<8x8xf32> to vector<8x8x1xf32>
    %103 = tpu.reciprocal %102 {approx = true} : vector<8x8x1xf32> -> vector<8x8x1xf32>
    %104 = vector.broadcast %103 : vector<8x8x1xf32> to vector<8x8x8xf32>
    %105 = arith.mulf %100, %104 : vector<8x8x8xf32>
    %106 = arith.truncf %105 : vector<8x8x8xf32> to vector<8x8x8xbf16>
    "tpu.trace_start"() <{level = 10 : i32, message = "bqk,bkd->bqd"}> : () -> ()
    %cst_32 = arith.constant dense<0.000000e+00> : vector<8x8x8xf32>
    %107 = tpu.matmul %106, %92, %cst_32 {dimension_numbers = #tpu.dot_dimension_numbers<[2], [1], [1], [2], [0, 0, 0, 1, 1, 2], [0], [0]>} : vector<8x8x8xbf16>, vector<8x8x8xbf16>, vector<8x8x8xf32> -> vector<8x8x8xf32>
    "tpu.trace_stop"() : () -> ()
    %108 = vector.extract_strided_slice %31 {offsets = [0, 24], sizes = [64, 8], strides = [1, 1]} : vector<64x96xf32> to vector<64x8xf32>
    %109 = vector.shape_cast %108 : vector<64x8xf32> to vector<8x8x8xf32>
    %110 = arith.truncf %109 : vector<8x8x8xf32> to vector<8x8x8xbf16>
    %111 = vector.extract_strided_slice %31 {offsets = [0, 56], sizes = [64, 8], strides = [1, 1]} : vector<64x96xf32> to vector<64x8xf32>
    %112 = vector.shape_cast %111 : vector<64x8xf32> to vector<8x8x8xf32>
    %113 = arith.truncf %112 : vector<8x8x8xf32> to vector<8x8x8xbf16>
    %114 = vector.extract_strided_slice %31 {offsets = [0, 88], sizes = [64, 8], strides = [1, 1]} : vector<64x96xf32> to vector<64x8xf32>
    %115 = vector.shape_cast %114 : vector<64x8xf32> to vector<8x8x8xf32>
    %116 = arith.truncf %115 : vector<8x8x8xf32> to vector<8x8x8xbf16>
    "tpu.trace_start"() <{level = 10 : i32, message = "bqd,bkd->bqk"}> : () -> ()
    %cst_33 = arith.constant dense<0.000000e+00> : vector<8x8x8xf32>
    %117 = tpu.matmul %110, %113, %cst_33 {dimension_numbers = #tpu.dot_dimension_numbers<[2], [2], [1], [1], [0, 0, 0, 1, 1, 1], [0], [0]>} : vector<8x8x8xbf16>, vector<8x8x8xbf16>, vector<8x8x8xf32> -> vector<8x8x8xf32>
    "tpu.trace_stop"() : () -> ()
    %cst_34 = arith.constant 0.353553385 : f32
    %118 = vector.broadcast %cst_34 : f32 to vector<8x8x8xf32>
    %119 = arith.mulf %117, %118 : vector<8x8x8xf32>
    %cst_35 = arith.constant dense<0xFF800000> : vector<8x8xf32>
    %120 = vector.multi_reduction <maximumf>, %119, %cst_35 [2] : vector<8x8x8xf32> to vector<8x8xf32>
    %121 = vector.shape_cast %120 : vector<8x8xf32> to vector<8x8x1xf32>
    %122 = vector.broadcast %121 : vector<8x8x1xf32> to vector<8x8x8xf32>
    %123 = arith.subf %119, %122 : vector<8x8x8xf32>
    %124 = math.exp %123 : vector<8x8x8xf32>
    %cst_36 = arith.constant dense<0.000000e+00> : vector<8x8xf32>
    %125 = vector.multi_reduction <add>, %124, %cst_36 [2] : vector<8x8x8xf32> to vector<8x8xf32>
    %126 = vector.shape_cast %125 : vector<8x8xf32> to vector<8x8x1xf32>
    %127 = tpu.reciprocal %126 {approx = true} : vector<8x8x1xf32> -> vector<8x8x1xf32>
    %128 = vector.broadcast %127 : vector<8x8x1xf32> to vector<8x8x8xf32>
    %129 = arith.mulf %124, %128 : vector<8x8x8xf32>
    %130 = arith.truncf %129 : vector<8x8x8xf32> to vector<8x8x8xbf16>
    "tpu.trace_start"() <{level = 10 : i32, message = "bqk,bkd->bqd"}> : () -> ()
    %cst_37 = arith.constant dense<0.000000e+00> : vector<8x8x8xf32>
    %131 = tpu.matmul %130, %116, %cst_37 {dimension_numbers = #tpu.dot_dimension_numbers<[2], [1], [1], [2], [0, 0, 0, 1, 1, 2], [0], [0]>} : vector<8x8x8xbf16>, vector<8x8x8xbf16>, vector<8x8x8xf32> -> vector<8x8x8xf32>
    "tpu.trace_stop"() : () -> ()
    %132 = tpu.concatenate %59, %83, %107, %131 in 2 : vector<8x8x8xf32>, vector<8x8x8xf32>, vector<8x8x8xf32>, vector<8x8x8xf32> -> vector<8x8x32xf32>
    %133 = vector.shape_cast %132 : vector<8x8x32xf32> to vector<64x32xf32>
    %134 = arith.truncf %133 : vector<64x32xf32> to vector<64x32xbf16>
    %c0_38 = arith.constant 0 : index
    %c0_39 = arith.constant 0 : index
    %135 = vector.load %arg6[%c0_38, %c0_39] : memref<32x32xbf16, #tpu.memory_space<vmem>>, vector<32x32xbf16>
    %cst_40 = arith.constant dense<0.000000e+00> : vector<64x32xf32>
    %136 = tpu.matmul %134, %135, %cst_40 {dimension_numbers = #tpu.dot_dimension_numbers<[1], [0], [0], [1], [0, 0, 1, 1], [], []>} : vector<64x32xbf16>, vector<32x32xbf16>, vector<64x32xf32> -> vector<64x32xf32>
    %137 = arith.addf %35, %136 : vector<64x32xf32>
    %138 = arith.addf %1, %137 : vector<64x32xf32>
    %c0_41 = arith.constant 0 : index
    %c0_42 = arith.constant 0 : index
    %139 = vector.load %arg8[%c0_41, %c0_42] : memref<1x32xf32, #tpu.memory_space<vmem>>, vector<1x32xf32>
    %c0_43 = arith.constant 0 : index
    %c0_44 = arith.constant 0 : index
    %140 = vector.load %arg9[%c0_43, %c0_44] : memref<1x32xf32, #tpu.memory_space<vmem>>, vector<1x32xf32>
    %cst_45 = arith.constant dense<0.000000e+00> : vector<64xf32>
    %141 = vector.multi_reduction <add>, %138, %cst_45 [1] : vector<64x32xf32> to vector<64xf32>
    %142 = vector.shape_cast %141 : vector<64xf32> to vector<64x1xf32>
    %cst_46 = arith.constant 3.200000e+01 : f32
    %143 = vector.broadcast %cst_46 : f32 to vector<64x1xf32>
    %144 = arith.divf %142, %143 : vector<64x1xf32>
    %145 = vector.broadcast %144 : vector<64x1xf32> to vector<64x32xf32>
    %146 = arith.subf %138, %145 : vector<64x32xf32>
    %147 = arith.mulf %146, %146 : vector<64x32xf32>
    %cst_47 = arith.constant dense<0.000000e+00> : vector<64xf32>
    %148 = vector.multi_reduction <add>, %147, %cst_47 [1] : vector<64x32xf32> to vector<64xf32>
    %149 = vector.shape_cast %148 : vector<64xf32> to vector<64x1xf32>
    %cst_48 = arith.constant 3.200000e+01 : f32
    %150 = vector.broadcast %cst_48 : f32 to vector<64x1xf32>
    %151 = arith.divf %149, %150 : vector<64x1xf32>
    %152 = vector.broadcast %144 : vector<64x1xf32> to vector<64x32xf32>
    %153 = arith.subf %138, %152 : vector<64x32xf32>
    %cst_49 = arith.constant 9.99999974E-6 : f32
    %154 = vector.broadcast %cst_49 : f32 to vector<64x1xf32>
    %155 = arith.addf %151, %154 : vector<64x1xf32>
    %156 = math.rsqrt %155 : vector<64x1xf32>
    %157 = vector.broadcast %156 : vector<64x1xf32> to vector<64x32xf32>
    %158 = arith.mulf %153, %157 : vector<64x32xf32>
    %159 = vector.broadcast %139 : vector<1x32xf32> to vector<64x32xf32>
    %160 = arith.mulf %158, %159 : vector<64x32xf32>
    %161 = vector.broadcast %140 : vector<1x32xf32> to vector<64x32xf32>
    %162 = arith.addf %160, %161 : vector<64x32xf32>
    %163 = arith.truncf %162 : vector<64x32xf32> to vector<64x32xbf16>
    %c0_50 = arith.constant 0 : index
    %c0_51 = arith.constant 0 : index
    %164 = vector.load %arg10[%c0_50, %c0_51] : memref<32x128xbf16, #tpu.memory_space<vmem>>, vector<32x128xbf16>
    %cst_52 = arith.constant dense<0.000000e+00> : vector<64x128xf32>
    %165 = tpu.matmul %163, %164, %cst_52 {dimension_numbers = #tpu.dot_dimension_numbers<[1], [0], [0], [1], [0, 0, 1, 1], [], []>} : vector<64x32xbf16>, vector<32x128xbf16>, vector<64x128xf32> -> vector<64x128xf32>
    %c0_53 = arith.constant 0 : index
    %c0_54 = arith.constant 0 : index
    %166 = vector.load %arg11[%c0_53, %c0_54] : memref<1x128xf32, #tpu.memory_space<vmem>>, vector<1x128xf32>
    %167 = vector.broadcast %166 : vector<1x128xf32> to vector<64x128xf32>
    %168 = arith.addf %165, %167 : vector<64x128xf32>
    %169 = arith.mulf %168, %168 : vector<64x128xf32>
    %170 = arith.mulf %168, %169 : vector<64x128xf32>
    %cst_55 = arith.constant 4.471500e-02 : f32
    %171 = vector.broadcast %cst_55 : f32 to vector<64x128xf32>
    %172 = arith.mulf %171, %170 : vector<64x128xf32>
    %173 = arith.addf %168, %172 : vector<64x128xf32>
    %cst_56 = arith.constant 0.797884583 : f32
    %174 = vector.broadcast %cst_56 : f32 to vector<64x128xf32>
    %175 = arith.mulf %174, %173 : vector<64x128xf32>
    %176 = math.tanh %175 : vector<64x128xf32>
    %cst_57 = arith.constant 1.000000e+00 : f32
    %177 = vector.broadcast %cst_57 : f32 to vector<64x128xf32>
    %178 = arith.addf %177, %176 : vector<64x128xf32>
    %cst_58 = arith.constant 5.000000e-01 : f32
    %179 = vector.broadcast %cst_58 : f32 to vector<64x128xf32>
    %180 = arith.mulf %179, %178 : vector<64x128xf32>
    %181 = arith.mulf %168, %180 : vector<64x128xf32>
    %182 = arith.truncf %181 : vector<64x128xf32> to vector<64x128xbf16>
    %c0_59 = arith.constant 0 : index
    %c0_60 = arith.constant 0 : index
    %183 = vector.load %arg12[%c0_59, %c0_60] : memref<128x32xbf16, #tpu.memory_space<vmem>>, vector<128x32xbf16>
    %cst_61 = arith.constant dense<0.000000e+00> : vector<64x32xf32>
    %184 = tpu.matmul %182, %183, %cst_61 {dimension_numbers = #tpu.dot_dimension_numbers<[1], [0], [0], [1], [0, 0, 1, 1], [], []>} : vector<64x128xbf16>, vector<128x32xbf16>, vector<64x32xf32> -> vector<64x32xf32>
    %185 = arith.addf %138, %184 : vector<64x32xf32>
    %c0_62 = arith.constant 0 : index
    %c0_63 = arith.constant 0 : index
    %186 = vector.load %arg13[%c0_62, %c0_63] : memref<1x32xf32, #tpu.memory_space<vmem>>, vector<1x32xf32>
    %187 = vector.broadcast %186 : vector<1x32xf32> to vector<64x32xf32>
    %188 = arith.addf %185, %187 : vector<64x32xf32>
    %189 = vector.shape_cast %188 : vector<64x32xf32> to vector<8x8x32xf32>
    %c0_64 = arith.constant 0 : index
    %c0_65 = arith.constant 0 : index
    %c0_66 = arith.constant 0 : index
    %190 = vector.load %arg14[%c0_64, %c0_65, %c0_66] : memref<8x8x32xf32, #tpu.memory_space<vmem>>, vector<8x8x32xf32>
    tpu.vector_store %arg14[%c0_64, %c0_65, %c0_66], %189 {strides = array<i32>} : memref<8x8x32xf32, #tpu.memory_space<vmem>>, vector<8x8x32xf32>,
    return
  }
  func.func @transform_0(%arg0: i32) -> (i32, i32, i32) {
    %c0_i32 = arith.constant 0 : i32
    %c0_i32_0 = arith.constant 0 : i32
    %c0_i32_1 = arith.constant 0 : i32
    return %arg0, %c0_i32, %c0_i32_0 : i32, i32, i32
  }
  func.func @transform_1(%arg0: i32) -> (i32, i32) {
    %c0_i32 = arith.constant 0 : i32
    %c0_i32_0 = arith.constant 0 : i32
    %c0_i32_1 = arith.constant 0 : i32
    return %c0_i32, %c0_i32_0 : i32, i32
  }
  func.func @transform_2(%arg0: i32) -> (i32, i32) {
    %c0_i32 = arith.constant 0 : i32
    %c0_i32_0 = arith.constant 0 : i32
    %c0_i32_1 = arith.constant 0 : i32
    return %c0_i32, %c0_i32_0 : i32, i32
  }
  func.func @transform_3(%arg0: i32) -> (i32, i32) {
    %c0_i32 = arith.constant 0 : i32
    %c0_i32_0 = arith.constant 0 : i32
    %c0_i32_1 = arith.constant 0 : i32
    return %c0_i32, %c0_i32_0 : i32, i32
  }
  func.func @transform_4(%arg0: i32) -> (i32, i32) {
    %c0_i32 = arith.constant 0 : i32
    %c0_i32_0 = arith.constant 0 : i32
    %c0_i32_1 = arith.constant 0 : i32
    return %c0_i32, %c0_i32_0 : i32, i32
  }
  func.func @transform_5(%arg0: i32) -> (i32, i32) {
    %c0_i32 = arith.constant 0 : i32
    %c0_i32_0 = arith.constant 0 : i32
    %c0_i32_1 = arith.constant 0 : i32
    return %c0_i32, %c0_i32_0 : i32, i32
  }
  func.func @transform_6(%arg0: i32) -> (i32, i32) {
    %c0_i32 = arith.constant 0 : i32
    %c0_i32_0 = arith.constant 0 : i32
    %c0_i32_1 = arith.constant 0 : i32
    return %c0_i32, %c0_i32_0 : i32, i32
  }
  func.func @transform_7(%arg0: i32) -> (i32, i32) {
    %c0_i32 = arith.constant 0 : i32
    %c0_i32_0 = arith.constant 0 : i32
    %c0_i32_1 = arith.constant 0 : i32
    return %c0_i32, %c0_i32_0 : i32, i32
  }
  func.func @transform_8(%arg0: i32) -> (i32, i32) {
    %c0_i32 = arith.constant 0 : i32
    %c0_i32_0 = arith.constant 0 : i32
    %c0_i32_1 = arith.constant 0 : i32
    return %c0_i32, %c0_i32_0 : i32, i32
  }
  func.func @transform_9(%arg0: i32) -> (i32, i32) {
    %c0_i32 = arith.constant 0 : i32
    %c0_i32_0 = arith.constant 0 : i32
    %c0_i32_1 = arith.constant 0 : i32
    return %c0_i32, %c0_i32_0 : i32, i32
  }
  func.func @transform_10(%arg0: i32) -> (i32, i32) {
    %c0_i32 = arith.constant 0 : i32
    %c0_i32_0 = arith.constant 0 : i32
    %c0_i32_1 = arith.constant 0 : i32
    return %c0_i32, %c0_i32_0 : i32, i32
  }
  func.func @transform_11(%arg0: i32) -> (i32, i32) {
    %c0_i32 = arith.constant 0 : i32
    %c0_i32_0 = arith.constant 0 : i32
    %c0_i32_1 = arith.constant 0 : i32
    return %c0_i32, %c0_i32_0 : i32, i32
  }
  func.func @transform_12(%arg0: i32) -> (i32, i32) {
    %c0_i32 = arith.constant 0 : i32
    %c0_i32_0 = arith.constant 0 : i32
    %c0_i32_1 = arith.constant 0 : i32
    return %c0_i32, %c0_i32_0 : i32, i32
  }
  func.func @transform_13(%arg0: i32) -> (i32, i32, i32) {
    %c0_i32 = arith.constant 0 : i32
    %c0_i32_0 = arith.constant 0 : i32
    %c0_i32_1 = arith.constant 0 : i32
    return %arg0, %c0_i32, %c0_i32_0 : i32, i32, i32
  }
}

</mosaic_0001>

<bundles_post_ra>
// kernel: tpu_custom_call.1
= control target key start
LH: loop header
LB: loop body
LE: loop exit
PB: predicated region body
PF: predicated region fallthrough
CT: control target
= control target key end

     0   :  { %7 = vsyncpa [#allocation3], 0  ;;  %s690_s0 = inlined_call_operand.hbm [shape: f32[16,128], index: 0, kind: input, shape index: {}]   ;;  %s691_s1 = inlined_call_operand.hbm [shape: f32[8,128], index: 1, kind: input, shape index: {}]   ;;  %s692_s2 = inlined_call_operand.hbm [shape: f32[16,128], index: 2, kind: output, shape index: {}]  }
   0x1   :  { %9 = vsyncpa [#allocation3 + $0x1], 0 }
   0x2   :  { %10 = vsyncpa [#allocation6], 0 }
   0x3   :  { %11 = vsyncpa [#allocation4], 0 }
   0x4   :  { %13 = vsyncpa [#allocation4 + $0x1], 0  ;;  %s489_s9 = smov 0   ;;  %s491_s10 = smov 0  }
   0x5   :  { %s493_s11 = smov 0   ;;  %s495_s12 = smov 0  }
   0x6 LB: > { %s510_s13 = sadd.s32 4294967295, %s469_s12   ;;  %s270_s14 = sadd.s32 4294967294, %s469_s12   ;;  %s469_s12 = sphi %s495_s12, %s716_s12   ;;  %s465_s11 = sphi %s493_s11, %s715_s11   ;;  %s461_s10 = sphi %s491_s10, %s714_s10   ;;  %s457_s9 = sphi %s489_s9, %s713_s9  }
   0x7   : > { %p39_p0 = scmp.ne.s32.totalorder %s461_s10, %s457_s9  ;;  %p693_p1 = scmp.eq.s32.totalorder %s510_s13, 0 }
   0x8   : > { %p90_p3 = scmp.eq.s32.totalorder %s270_s14, 1  ;;  %p271_p5 = scmp.ge.s32.totalorder %s469_s12, 1 }
   0x9   : > { %p519_p4 = por %p693_p1, %p39_p0  ;;  %p97_p7 = scmp.lt.s32.totalorder %s469_s12, 3 }
   0xa   : > { %p524_p6 = por %p90_p3, %p39_p0  ;;  %s471_s18 = smov [#allocation5]  }
   0xb   : > { %s696_s15 = scalar_select %p519_p4, 1, 0 }
   0xc   : > { %s697_s16 = scalar_select %p524_p6, 1, 0 }
   0xd   : > { %p529_p8 = pnand %p271_p5, %p97_p7  ;;  %s110_s19 = sshll.u32 %s471_s18, 4  ;;  %s111_s19 = int_to_ptr.vmem [resolvable:$true] %s110_s19 }
   0xe   : > { %s537_s20 = sadd.s32 1, %s469_s12   ;;  %s26_s24 = sadd.s32 1, %s465_s11 }
   0xf   : > { %s698_s17 = scalar_select %p529_p8, 1, 0 }
  0x10   : > { %p292_p10 = pneg %p529_p8  ;;  %s23_s22 = ssub.s32 %s469_s12, %s537_s20 }
  0x11   : > { %p547_p12 = scmp.eq.s32.totalorder %s23_s22, 0  ;;  %s341_s27 = scalar_lea.hbm %s691_s1, 128 }
  0x12   : > { %p541_p11 = pnand %p292_p10, %p693_p1  ;;  %p342_p0 = scmp.ne.s32.totalorder %s691_s1, %s341_s27 }
  0x13   : > { %s700_s23 = scalar_select %p547_p12, 1, 0 }
  0x14   : > { %p343_p3 = pneg %p541_p11  ;;  %p348_p10 = scmp.lt.u32.totalorder %s341_s27, %s691_s1 }
  0x16   : > { %p344_p5 = pnand %p343_p3, %p342_p0 }
  0x18   : > { %p345_p7 = pneg %p344_p5 }
  0x1a   : > { %p350_p9 = pnand %p348_p10, %p345_p7 }
  0x1c   : > { %353 = shalt.err (!%p350_p9)
}
  0x1d   : > { %s354_s4 = scalar_lea.vmem %s111_s19, 128  ;;  %p362_p6 = scmp.lt.s32.totalorder %s111_s19, %s111_s19 }
  0x1e   : > { %p355_p1 = scmp.ne.s32.totalorder %s111_s19, %s354_s4  ;;  %p363_p4 = scmp.lt.s32.totalorder %s354_s4, %s354_s4 }
  0x20   : > { %p357_p2 = pnand %p355_p1, %p343_p3  ;;  %p364_p8 = por %p363_p4, %p362_p6 }
  0x22   : > { %p358_p13 = pneg %p357_p2 }
  0x24   : > { %p365_p12 = pnand %p364_p8, %p358_p13 }
  0x26   : > { %368 = shalt.err (!%p365_p12)
}
  0x27   : > { %295 = dma.hbm_to_vmem [thread:$0]  (!%p541_p11), %s691_s1, 128, %s111_s19, [#allocation6]  }
  0x28   : > { %p701_p1 = scmp.ne.s32.totalorder %s700_s23, 0  ;;  %p34_p2 = scmp.eq.s32.totalorder %s469_s12, 0 }
  0x29   : > { %p702_p4 = scmp.ne.s32.totalorder %s465_s11, %s461_s10  ;;  %p703_p6 = scmp.eq.s32.totalorder %s510_s13, 1 }
  0x2a   : > { %s573_s7 = scalar_select %p701_p1, %s465_s11, %s26_s24  }
  0x2b   : > { %p581_p8 = por %p703_p6, %p702_p4  ;;  %p305_p9 = scmp.lt.s32.totalorder %s469_s12, 2 }
  0x2c   : > { %s121_s14 = sand.u32 1, %s465_s11   ;;  %p705_p12 = pmov %p702_p4 }
  0x2d   : > { %s274_s18 = sshll.u32 %s121_s14, 3  ;;  %s275_s21 = sshll.u32 %s469_s12, 7 }
  0x2e   : > { %p35_p13 = por %p34_p2, %p705_p12  ;;  %s594_s19 = scalar_lea.hbm %s690_s0, %s275_s21 }
  0x2f   : > { %s125_s23 = scalar_lea.vmem [#allocation2], %s274_s18  ;;  %s122_s27 = scalar_lea.sflag [#allocation3], %s121_s14 }
  0x30   : > { %s132_s24 = sshll.u32 %s125_s23, 4  ;;  %p596_p11 = pnand %p305_p9, %p35_p13  ;;  %s600_s24 = int_to_ptr.vmem [resolvable:$true] %s132_s24 }
  0x31   : > { %s369_s28 = scalar_lea.hbm %s594_s19, 128  ;;  %s374_s3 = scalar_lea.hbm %s690_s0, 256 }
  0x32   : > { %p370_p0 = scmp.ne.s32.totalorder %s594_s19, %s369_s28  ;;  %p371_p3 = pneg %p596_p11 }
  0x33   : > { %p375_p10 = scmp.lt.u32.totalorder %s594_s19, %s690_s0  ;;  %p376_p1 = scmp.lt.u32.totalorder %s374_s3, %s369_s28 }
  0x34   : > { %p372_p5 = pnand %p371_p3, %p370_p0  ;;  %p378_p4 = scmp.lt.u32.totalorder %s369_s28, %s594_s19 }
  0x35   : > { %p377_p2 = por %p376_p1, %p375_p10 }
  0x36   : > { %p373_p7 = pneg %p372_p5 }
  0x37   : > { %p379_p6 = por %p378_p4, %p377_p2 }
  0x39   : > { %p380_p9 = pnand %p379_p6, %p373_p7 }
  0x3b   : > { %383 = shalt.err (!%p380_p9)
}
  0x3c   : > { %s384_s6 = scalar_lea.vmem %s600_s24, 128  ;;  %s472_s14 = smov [#allocation2]  }
  0x3d   : > { %p385_p12 = scmp.ne.s32.totalorder %s600_s24, %s384_s6  ;;  %s389_s18 = sshll.u32 %s472_s14, 4  ;;  %s390_s18 = int_to_ptr.vmem [resolvable:$false] %s389_s18 }
  0x3e   : > { %s391_s21 = scalar_lea.vmem %s390_s18, 256  ;;  %p392_p5 = scmp.lt.s32.totalorder %s600_s24, %s390_s18 }
  0x3f   : > { %p387_p13 = pnand %p385_p12, %p371_p3  ;;  %p393_p10 = scmp.lt.s32.totalorder %s391_s21, %s384_s6 }
  0x41   : > { %p388_p0 = pneg %p387_p13  ;;  %p394_p1 = por %p393_p10, %p392_p5 }
  0x43   : > { %p395_p2 = pnand %p394_p1, %p388_p0 }
  0x45   : > { %398 = shalt.err (!%p395_p2)
}
  0x46   : > { %299 = dma.hbm_to_vmem [thread:$0]  (!%p596_p11), %s594_s19, 128, %s600_s24, %s122_s27  }
  0x47   : > { %p707_p7 = scmp.ne.s32.totalorder %s698_s17, 0 }
  0x48   : > { %s630_s22 = sand.u32 (!%p707_p7), 1, %s461_s10   ;;  %p708_p3 = scmp.ne.s32.totalorder (!%p707_p7), %s696_s15, 0 }
  0x49   : > { %141 = sbr.rel (%p707_p7) target bundleno = 109 (0x6d), region = 28  ;;  %s277_s25 = sshll.u32 (!%p707_p7), %s630_s22, 3 }
  0x4a   : > { %s144_s23 = scalar_lea.sflag (!%p707_p7), [#allocation3], %s630_s22  ;;  %s147_s28 = scalar_lea.vmem (!%p707_p7), [#allocation2], %s277_s25 }
  0x50   : > { %444 = dma.done.wait (%p708_p3), %s144_s23, 128  }
  0x51   : > { %446 = vsyncadd (%p708_p3), %s144_s23, 4294967168  ;;  %p709_p4 = scmp.eq.s32.totalorder %s510_s13, 0 }
  0x53   : > { %448 = dma.done.wait (%p709_p4), [#allocation6], 128   ;;  %p710_p11 = pmov %p709_p4 }
  0x54   : > { %s171_s17 = scalar_lea.vmem [#allocation7], %s277_s25  ;;  %s281_s24 = sshll.u32 %s510_s13, 7  ;;  %v172_v0 = vld [vmem:[%s147_s28] sm:$0xff]  ;;  %v173_v1 = vld [vmem:[#allocation5] sm:$0xff] }
  0x55   : > { %450 = vsyncadd (%p710_p11), [#allocation6], 4294967168  ;;  %s190_s19 = sshll.u32 %s171_s17, 4  ;;  %v174_v2 = vadd.f32 %v173_v1, %v172_v0  ;;  %s648_s27 = scalar_lea.hbm %s692_s2, %s281_s24  ;;  %s643_s19 = int_to_ptr.vmem [resolvable:$true] %s190_s19 }
  0x56   : > { %s177_s29 = scalar_lea.sflag [#allocation4], %s630_s22  ;;  %s399_s30 = scalar_lea.vmem %s643_s19, 128 }
  0x57   : > { %175 = vst [vmem:[%s171_s17] sm:$0xff] %v174_v2  ;;  %p400_p6 = scmp.ne.s32.totalorder %s643_s19, %s399_s30  ;;  %s473_s13 = smov [#allocation7]  }
  0x58   : > { %s403_s3 = sshll.u32 %s473_s13, 4  ;;  %s404_s3 = int_to_ptr.vmem [resolvable:$false] %s403_s3 }
  0x59   : > { %p401_p9 = pnand %p400_p6, %p581_p8  ;;  %s405_s4 = scalar_lea.vmem %s404_s3, 256 }
  0x5a   : > { %p406_p13 = scmp.lt.s32.totalorder %s643_s19, %s404_s3  ;;  %p407_p0 = scmp.lt.s32.totalorder %s405_s4, %s399_s30 }
  0x5b   : > { %p402_p12 = pneg %p401_p9 }
  0x5c   : > { %p408_p5 = por %p407_p0, %p406_p13 }
  0x5e   : > { %p409_p10 = pnand %p408_p5, %p402_p12 }
  0x60   : > { %412 = shalt.err (!%p409_p10)
}
  0x61   : > { %s413_s5 = scalar_lea.hbm %s648_s27, 128  ;;  %s417_s18 = scalar_lea.hbm %s692_s2, 256 }
  0x62   : > { %p414_p1 = scmp.ne.s32.totalorder %s648_s27, %s413_s5  ;;  %p418_p3 = scmp.lt.u32.totalorder %s648_s27, %s692_s2 }
  0x63   : > { %p419_p4 = scmp.lt.u32.totalorder %s417_s18, %s413_s5  ;;  %p421_p6 = scmp.lt.u32.totalorder %s413_s5, %s648_s27 }
  0x64   : > { %p415_p2 = pnand %p414_p1, %p581_p8 }
  0x65   : > { %p420_p11 = por %p419_p4, %p418_p3 }
  0x66   : > { %p416_p7 = pneg %p415_p2 }
  0x67   : > { %p422_p9 = por %p421_p6, %p420_p11 }
  0x69   : > { %p423_p12 = pnand %p422_p9, %p416_p7 }
  0x6b   : > { %426 = shalt.err (!%p423_p12)
}
  0x6c   : > { %290 = dma.vmem_to_hbm [thread:$0]  (%p581_p8), %s643_s19, 128, %s648_s27, %s177_s29  }
  0x6d PF: > { %s202_s25 = sand.u32 1, %s457_s9   ;;  %p711_p13 = scmp.ne.s32.totalorder %s697_s16, 0 }
  0x6e   : > { %p712_p0 = scmp.ge.s32.totalorder %s469_s12, 2  ;;  %s203_s23 = scalar_lea.sflag [#allocation4], %s202_s25 }
  0x70   : > { %p301_p5 = pnand %p712_p0, %p711_p13 }
  0x72   : > { %452 = dma.done.wait (!%p301_p5), %s203_s23, 128  }
  0x73   : > { %454 = vsyncadd (!%p301_p5), %s203_s23, 4294967168  ;;  %p16_p10 = scmp.ge.s32.totalorder %s537_s20, 4   ;;  %s713_s9 = smov %s461_s10 }
  0x74   : > { %s714_s10 = smov %s465_s11  ;;  %s715_s11 = smov %s573_s7 }
  0x75   : > { %s716_s12 = smov %s537_s20  ;;  %18 = sbr.rel (!%p16_p10) target bundleno = 6 (0x6), region = 77 }
  0x7c   :  { %208 = vsyncpa [#allocation3], 1 }
  0x7d   :  { %210 = vsyncpa [#allocation3 + $0x1], 1 }
  0x7e   :  { %211 = vsyncpa [#allocation6], 1 }
  0x7f   :  { %212 = vsyncpa [#allocation4], 1 }
  0x80   :  { %214 = vsyncpa [#allocation4 + $0x1], 1 }

// kernel: conv_transformer_block.5
= control target key start
LH: loop header
LB: loop body
LE: loop exit
PB: predicated region body
PF: predicated region fallthrough
CT: control target
= control target key end

     0   :  { %16 = vsyncpa [#allocation3], 0  ;;  %s3859_s0 = inlined_call_operand.vmem [shape: f32[2,8,8,32], index: 0, kind: input, shape index: {}]   ;;  %s3860_s1 = inlined_call_operand.vmem [shape: f32[1,32], index: 1, kind: input, shape index: {}]   ;;  %s3861_s2 = inlined_call_operand.vmem [shape: f32[1,32], index: 2, kind: input, shape index: {}]   ;;  %s3862_s3 = inlined_call_operand.vmem [shape: bf16[9,32,32], index: 3, kind: input, shape index: {}]   ;;  %s3863_s4 = inlined_call_operand.vmem [shape: f32[1,32], index: 4, kind: input, shape index: {}]   ;;  %s3864_s5 = inlined_call_operand.vmem [shape: f32[1,32], index: 5, kind: input, shape index: {}]   ;;  %s3865_s6 = inlined_call_operand.vmem [shape: f32[1,32], index: 6, kind: input, shape index: {}]   ;;  %s3866_s7 = inlined_call_operand.vmem [shape: bf16[32,128], index: 7, kind: input, shape index: {}]   ;;  %s3867_s8 = inlined_call_operand.vmem [shape: f32[1,128], index: 8, kind: input, shape index: {}]   ;;  %s3868_s9 = inlined_call_operand.vmem [shape: bf16[128,32], index: 9, kind: input, shape index: {}]   ;;  %s3869_s10 = inlined_call_operand.vmem [shape: f32[1,32], index: 10, kind: input, shape index: {}]   ;;  %s3870_s11 = inlined_call_operand.hbm [shape: f32[2,8,8,32], index: 11, kind: output, shape index: {}]  }
   0x1   :  { %18 = vsyncpa [#allocation3 + $0x1], 0  ;;  %s3035_s17 = smov 0   ;;  %s3037_s18 = smov 0  }
   0x2   :  { %s3039_s19 = smov 0   ;;  %s3041_s20 = smov 0  }
   0x3 LB: > { %s3056_s21 = sadd.s32 4294967295, %s2969_s20   ;;  %s2299_s22 = sadd.s32 4294967294, %s2969_s20   ;;  %s2969_s20 = sphi %s3041_s20, %s3880_s20   ;;  %s2965_s19 = sphi %s3039_s19, %s3879_s19   ;;  %s2961_s18 = sphi %s3037_s18, %s3878_s18   ;;  %s2957_s17 = sphi %s3035_s17, %s3877_s17  }
   0x4   : > { %s3060_s23 = sadd.s32 1, %s2969_s20   ;;  %s267_s24 = sadd.s32 1, %s2965_s19 }
   0x5   : > { %s264_s25 = ssub.s32 %s2969_s20, %s3060_s23  ;;  %p277_p0 = scmp.ne.s32.totalorder %s2965_s19, %s2961_s18 }
   0x6   : > { %p265_p1 = scmp.eq.s32.totalorder %s264_s25, 0  ;;  %p278_p2 = scmp.eq.s32.totalorder %s3056_s21, 1 }
   0x7   : > { %p283_p3 = scmp.ne.s32.totalorder %s2961_s18, %s2957_s17  ;;  %p284_p4 = scmp.eq.s32.totalorder %s2299_s22, 1 }
   0x8   : > { %s3071_s26 = scalar_select %p265_p1, %s2965_s19, %s267_s24  }
   0x9   : > { %p3073_p5 = por %p278_p2, %p277_p0  ;;  %p3077_p6 = por %p284_p4, %p283_p3 }
   0xa   : > { %p2302_p7 = scmp.ge.s32.totalorder %s2969_s20, 1  ;;  %p340_p8 = scmp.lt.s32.totalorder %s2969_s20, 3 }
   0xc   : > { %p341_p9 = pnand %p2302_p7, %p340_p8 }
   0xd   : > { %p380_p10 = scmp.lt.s32.totalorder (!%p341_p9), %s3056_s21, 1  ;;  %vm396_vm0 = vcmask (!%p341_p9), 261120   ;;  %v2831_v56 = vld [vmem:[%s3862_s3] sm:$0xff] (!%p341_p9)   ;;  %v2832_v57 = vld [vmem:[%s3862_s3 + $0x8] sm:$0xff] (!%p341_p9)   ;;  %v2833_v58 = vld [vmem:[%s3862_s3 + $0x10] sm:$0xff] (!%p341_p9)   ;;  %vm557_vm1 = vcmask (!%p341_p9), 1040384  }
   0xe   : > { %344 = sbr.rel (%p341_p9) target bundleno = 1484 (0x5cc), region = 64  ;;  %2573 = vmatprep.subr.bf16.mxu1 (!%p341_p9), %v2831_v56  ;;  %2609 = vmatprep.subr.bf16.mxu0 (!%p341_p9), %v2833_v58  ;;  %v2834_v59 = vld [vmem:[%s3862_s3 + $0x18] sm:$0xff] (!%p341_p9)   ;;  %v3183_v60 = vld [vmem:[%s3862_s3 + $0x30] sm:$0xff] (!%p341_p9)   ;;  %v3189_v61 = vld [vmem:[%s3862_s3 + $0x40] sm:$0xff] (!%p341_p9)   ;;  %vm1387_vm2 = vcmask (!%p341_p9), 1042432   ;;  %vm1388_vm6 = vcmask (!%p341_p9), 1046532  }
   0xf   : > { %2574 = vmatpush3.bf16.msra.mxu1 (!%p341_p9), %v2831_v56  ;;  %2610 = vmatpush3.bf16.msra.mxu0 (!%p341_p9), %v2833_v58  ;;  %vm940_vm3 = vsmask.f32 (!%p341_p9), 3328  ;;  %vm941_vm4 = vsmask.f32 (!%p341_p9), 7440  ;;  %vm3342_vm7 = vmor (!%p341_p9), %vm1387_vm2, %vm1388_vm6  ;;  %s377_s13 = sand.u32 (!%p341_p9), 1, %s2961_s18   ;;  %s2500_s24 = sshll.u32 (!%p341_p9), %s3056_s21, 10 }
  0x10   : > { %2575 = vmatprep.subr.bf16.mxu1 (!%p341_p9), %v2832_v57  ;;  %2611 = vmatprep.subr.bf16.mxu0 (!%p341_p9), %v2834_v59  ;;  %vm3327_vm5 = vmor (!%p341_p9), %vm940_vm3, %vm941_vm4  ;;  %s3809_s12 = scalar_lea.hbm (!%p341_p9), %s3870_s11, %s2500_s24  ;;  %s2972_s15 = smov (!%p341_p9), [#allocation2]  }
  0x11   : > { %s2911_s16 = sshll.u32 (!%p341_p9), %s2972_s15, 4  ;;  %s2912_s16 = int_to_ptr.vmem [resolvable:$false] %s2911_s16 }
  0x12   : > { %s2913_s24 = scalar_lea.vmem (!%p341_p9), %s2912_s16, 2048 }
  0x13   : > { %2576 = vmatpush3.bf16.msra.mxu1 (!%p341_p9), %v2832_v57  ;;  %2612 = vmatpush3.bf16.msra.mxu0 (!%p341_p9), %v2834_v59 }
  0x14   : > { %2585 = vmatprep.subr.bf16.mxu1 (!%p341_p9), %v3183_v60  ;;  %2621 = vmatprep.subr.bf16.mxu0 (!%p341_p9), %v3189_v61 }
  0x15   : > { %s381_s29 = scalar_select %p380_p10, %s3056_s21, 1 }
  0x16   : > { %s3818_s21 = scalar_lea.sflag [#allocation3], %s377_s13 }
  0x17   : > { %s2472_s30 = sshll.u32 %s381_s29, 6 }
  0x18   : > { %s384_s14 = scalar_lea.vmem %s3859_s0, %s2472_s30 }
  0x19   : > { %v3088_v0 = vld [vmem:[%s384_s14] sm:$0xff]  ;;  %v3090_v1 = vld [vmem:[%s384_s14 + $0x10] sm:$0xff]  ;;  %v3092_v2 = vld [vmem:[%s384_s14 + $0x8] sm:$0xff] }
  0x1a   : > { %v397_v3 = vsel %vm396_vm0, %v3088_v0, 0.0  ;;  %v403_v4 = vsel %vm396_vm0, %v3090_v1, 0.0  ;;  %v3098_v5 = vld [vmem:[%s384_s14 + $0x18] sm:$0xff]  ;;  %v3100_v6 = vld [vmem:[%s384_s14 + $0x20] sm:$0xff]  ;;  %v3102_v7 = vld [vmem:[%s384_s14 + $0x28] sm:$0xff]  ;;  %v400_v8 = vsel %vm396_vm0, %v3092_v2, 0.0 }
  0x1b   : > { %398 = vadd.xlane.f32.xlu0 %v397_v3  ;;  %404 = vadd.xlane.f32.xlu1 %v403_v4  ;;  %v406_v9 = vsel %vm396_vm0, %v3098_v5, 0.0  ;;  %v409_v10 = vsel %vm396_vm0, %v3100_v6, 0.0  ;;  %v412_v11 = vsel %vm396_vm0, %v3102_v7, 0.0  ;;  %v3112_v12 = vld [vmem:[%s384_s14 + $0x30] sm:$0xff]  ;;  %v3114_v13 = vld [vmem:[%s384_s14 + $0x38] sm:$0xff]  ;;  %s2303_s14 = sshll.u32 %s377_s13, 6 }
  0x1c   : > { %v415_v14 = vsel %vm396_vm0, %v3112_v12, 0.0  ;;  %v418_v15 = vsel %vm396_vm0, %v3114_v13, 0.0  ;;  %s379_s22 = scalar_lea.vmem [#allocation2], %s2303_s14 }
  0x1d   : > { %s2237_s25 = sshll.u32 %s379_s22, 4  ;;  %s3811_s25 = int_to_ptr.vmem [resolvable:$true] %s2237_s25 }
  0x1e   : > { %s2907_s14 = scalar_lea.vmem %s3811_s25, 1024  ;;  %p2914_p0 = scmp.lt.s32.totalorder %s3811_s25, %s2912_s16 }
  0x1f   : > { %401 = vadd.xlane.f32.xlu0 %v400_v8  ;;  %407 = vadd.xlane.f32.xlu1 %v406_v9  ;;  %p2908_p11 = scmp.ne.s32.totalorder %s3811_s25, %s2907_s14  ;;  %p2915_p1 = scmp.lt.s32.totalorder %s2913_s24, %s2907_s14 }
  0x21   : > { %p2909_p12 = pnand %p2908_p11, %p3073_p5  ;;  %p2916_p2 = por %p2915_p1, %p2914_p0 }
  0x23   : > { %410 = vadd.xlane.f32.xlu0 %v409_v10  ;;  %413 = vadd.xlane.f32.xlu1 %v412_v11  ;;  %p2910_p13 = pneg %p2909_p12 }
  0x25   : > { %p2917_p3 = pnand %p2916_p2, %p2910_p13 }
  0x27   : > { %416 = vadd.xlane.f32.xlu0 %v415_v14  ;;  %419 = vadd.xlane.f32.xlu1 %v418_v15 }
  0xa8   : > { %v399_v16 = vpop.xlane.xlu0 %398  ;;  %v405_v17 = vpop.xlane.xlu1 %404 }
  0xa9   : > { %v422_v18 = vmul.f32 0.03125, %v399_v16  ;;  %v424_v19 = vmul.f32 0.03125, %v405_v17 }
  0xab   : > { %v3121_v20 = vsub.f32 %v3088_v0, %v422_v18  ;;  %v3124_v21 = vsub.f32 %v3090_v1, %v424_v19 }
  0xac   : > { %v402_v22 = vpop.xlane.xlu0 %401  ;;  %v408_v23 = vpop.xlane.xlu1 %407 }
  0xad   : > { %v423_v24 = vmul.f32 0.03125, %v402_v22  ;;  %v425_v25 = vmul.f32 0.03125, %v408_v23  ;;  %v438_v26 = vmul.f32 %v3121_v20, %v3121_v20  ;;  %v440_v27 = vmul.f32 %v3124_v21, %v3124_v21 }
  0xaf   : > { %v3131_v28 = vsub.f32 %v3092_v2, %v423_v24  ;;  %v3134_v29 = vsub.f32 %v3098_v5, %v425_v25  ;;  %v446_v30 = vsel %vm396_vm0, %v438_v26, 0.0  ;;  %v452_v33 = vsel %vm396_vm0, %v440_v27, 0.0 }
  0xb0   : > { %447 = vadd.xlane.f32.xlu0 %v446_v30  ;;  %v411_v31 = vpop.xlane.xlu0 %410  ;;  %v414_v32 = vpop.xlane.xlu1 %413  ;;  %v2971_v26 = vmov 0.0  }
  0xb1   : > { %v426_v34 = vmul.f32 0.03125, %v411_v31  ;;  %v427_v35 = vmul.f32 0.03125, %v414_v32  ;;  %v439_v36 = vmul.f32 %v3131_v28, %v3131_v28  ;;  %v441_v37 = vmul.f32 %v3134_v29, %v3134_v29  ;;  %v3195_v31 = vld [vmem:[%s3860_s1] ss:$0 sm:$0xff] }
  0xb2   : > { %v539_v27 = vrot.slane %v2971_v26, 7 }
  0xb3   : > { %v3143_v38 = vsub.f32 %v3100_v6, %v426_v34  ;;  %v3146_v39 = vsub.f32 %v3102_v7, %v427_v35  ;;  %v449_v40 = vsel %vm396_vm0, %v439_v36, 0.0  ;;  %v455_v43 = vsel %vm396_vm0, %v441_v37, 0.0  ;;  %v3201_v35 = vld [vmem:[%s3861_s2] ss:$0 sm:$0xff] }
  0xb4   : > { %453 = vadd.xlane.f32.xlu0 %v452_v33  ;;  %450 = vadd.xlane.f32.xlu1 %v449_v40  ;;  %v417_v41 = vpop.xlane.xlu0 %416  ;;  %v420_v42 = vpop.xlane.xlu1 %419  ;;  %v3205_v37 = vsel %vm557_vm1, 0.0, %v539_v27  ;;  %v567_v56 = vsel %vm557_vm1, %v539_v27, 0.0 }
  0xb5   : > { %v428_v44 = vmul.f32 0.03125, %v417_v41  ;;  %v429_v45 = vmul.f32 0.03125, %v420_v42  ;;  %v442_v46 = vmul.f32 %v3143_v38, %v3143_v38  ;;  %v443_v47 = vmul.f32 %v3146_v39, %v3146_v39 }
  0xb7   : > { %v3155_v48 = vsub.f32 %v3112_v12, %v428_v44  ;;  %v3158_v49 = vsub.f32 %v3114_v13, %v429_v45  ;;  %v458_v50 = vsel %vm396_vm0, %v442_v46, 0.0  ;;  %v461_v51 = vsel %vm396_vm0, %v443_v47, 0.0 }
  0xb8   : > { %456 = vadd.xlane.f32.xlu1 %v455_v43  ;;  %459 = vadd.xlane.f32.xlu0 %v458_v50  ;;  %v3212_v45 = vpack.c.bf16 %v3205_v37, %v3205_v37 }
  0xb9   : > { %v444_v52 = vmul.f32 %v3155_v48, %v3155_v48  ;;  %v445_v53 = vmul.f32 %v3158_v49, %v3158_v49 }
  0xba   : > { %v944_v58 = vshrl.u32 %v3212_v45, 16 }
  0xbb   : > { %v464_v54 = vsel %vm396_vm0, %v444_v52, 0.0  ;;  %v467_v55 = vsel %vm396_vm0, %v445_v53, 0.0 }
  0xbc   : > { %462 = vadd.xlane.f32.xlu1 %v461_v51  ;;  %465 = vadd.xlane.f32.xlu0 %v464_v54 }
  0xc0   : > { %468 = vadd.xlane.f32.xlu1 %v467_v55 }
 0x13d   : > { %v448_v62 = vpop.xlane.xlu0 %447 }
 0x13e   : > { %v470_v63 = vmul.f32 0.03125, %v448_v62 }
 0x140   : > { %v478_v3 = vadd.f32 1e-05, %v470_v63 }
 0x141   : > { %v451_v4 = vpop.xlane.xlu1 %450  ;;  %v454_v8 = vpop.xlane.xlu0 %453 }
 0x142   : > { %2859 = vrsqrt.f32 %v478_v3  ;;  %v471_v9 = vmul.f32 0.03125, %v451_v4  ;;  %v472_v10 = vmul.f32 0.03125, %v454_v8 }
 0x144   : > { %v479_v11 = vadd.f32 1e-05, %v471_v9  ;;  %v480_v14 = vadd.f32 1e-05, %v472_v10 }
 0x145   : > { %v457_v15 = vpop.xlane.xlu1 %456  ;;  %v460_v16 = vpop.xlane.xlu0 %459 }
 0x146   : > { %2861 = vrsqrt.f32 %v479_v11  ;;  %v473_v17 = vmul.f32 0.03125, %v457_v15  ;;  %v474_v18 = vmul.f32 0.03125, %v460_v16 }
 0x147   : > { %2863 = vrsqrt.f32 %v480_v14  ;;  %v3238_v14 = vpack.c.bf16 %v567_v56, %v567_v56 }
 0x148   : > { %v481_v19 = vadd.f32 1e-05, %v473_v17  ;;  %v482_v22 = vadd.f32 1e-05, %v474_v18 }
 0x149   : > { %v463_v23 = vpop.xlane.xlu1 %462  ;;  %v466_v24 = vpop.xlane.xlu0 %465 }
 0x14a   : > { %2865 = vrsqrt.f32 %v481_v19  ;;  %v476_v25 = vmul.f32 0.03125, %v466_v24  ;;  %v475_v4 = vmul.f32 0.03125, %v463_v23  ;;  %v946_v19 = vrot.slane %v944_v58, 4 }
 0x14b   : > { %2867 = vrsqrt.f32 %v482_v22 }
 0x14c   : > { %v2860_v30 = vpop.eup %2859  ;;  %v484_v32 = vadd.f32 1e-05, %v476_v25  ;;  %v2837_v25 = vld [vmem:[%s3862_s3 + $0x38] sm:$0xff]   ;;  %v483_v26 = vadd.f32 1e-05, %v475_v4 }
 0x14d   : > { %v469_v33 = vpop.xlane.xlu1 %468  ;;  %v494_v34 = vmul.f32 %v2860_v30, %v3121_v20 }
 0x14e   : > { %2869 = vrsqrt.f32 %v484_v32  ;;  %v477_v41 = vmul.f32 0.03125, %v469_v33  ;;  %v2401_v33 = vrot.slane %v3212_v45, 9 }
 0x14f   : > { %v508_v36 = vmul.f32 %v3195_v31, %v494_v34  ;;  %v1392_v34 = vrot.slane %v3238_v14, 5 }
 0x150   : > { %v2862_v40 = vpop.eup %2861  ;;  %v485_v51 = vadd.f32 1e-05, %v477_v41 }
 0x151   : > { %v2864_v42 = vpop.eup %2863  ;;  %v495_v43 = vmul.f32 %v2862_v40, %v3131_v28  ;;  %v522_v44 = vadd.f32 %v3201_v35, %v508_v36 }
 0x152   : > { %v496_v20 = vmul.f32 %v2864_v42, %v3124_v21  ;;  %2871 = vrsqrt.f32 %v485_v51 }
 0x153   : > { %v509_v46 = vmul.f32 %v3195_v31, %v495_v43  ;;  %v540_v47 = vrot.slane %v522_v44, 7  ;;  %2873 = vrsqrt.f32 %v483_v26 }
 0x154   : > { %v2866_v50 = vpop.eup %2865  ;;  %v510_v52 = vmul.f32 %v3195_v31, %v496_v20 }
 0x155   : > { %v2868_v53 = vpop.eup %2867  ;;  %v497_v54 = vmul.f32 %v2866_v50, %v3134_v29  ;;  %v523_v28 = vadd.f32 %v3201_v35, %v509_v46  ;;  %v3219_v55 = vsel %vm557_vm1, 0.0, %v540_v47  ;;  %v947_v29 = vshll.u32 %v3212_v45, 16 }
 0x156   : > { %v498_v21 = vmul.f32 %v2868_v53, %v3143_v38  ;;  %v2473_v57 = vpack.c.bf16 %v3219_v55, %v3205_v37  ;;  %v524_v62 = vadd.f32 %v3201_v35, %v510_v52  ;;  %v3242_v15 = vpack.c.bf16 %v3219_v55, %v3219_v55 }
 0x157   : > { %v541_v59 = vrot.slane %v523_v28, 7  ;;  %v511_v63 = vmul.f32 %v3195_v31, %v497_v54  ;;  %v949_v22 = vrot.slane %v947_v29, 5  ;;  %v953_v46 = vshll.u32 %v3238_v14, 16 }
 0x158   : > { %2577 = vmatprep.mubr.msk.bf16.mxu1 %vm396_vm0, %v2473_v57  ;;  %v512_v3 = vmul.f32 %v3195_v31, %v498_v21  ;;  %v2870_v38 = vpop.eup %2869  ;;  %v542_v9 = vrot.slane %v524_v62, 7  ;;  %v958_v36 = vshrl.u32 %v3242_v15, 16  ;;  %v961_v54 = vshll.u32 %v3242_v15, 16 }
 0x159   : > { %v3232_v8 = vsel %vm557_vm1, 0.0, %v541_v59  ;;  %v3235_v10 = vadd.f32 %v3201_v35, %v511_v63  ;;  %v500_v11 = vmul.f32 %v2870_v38, %v3155_v48  ;;  %v568_v48 = vsel %vm557_vm1, %v540_v47, 0.0  ;;  %v3295_v47 = vld [vmem:[%s3862_s3 + $0x60] sm:$0xff]  }
 0x15a   : > { %v3245_v16 = vadd.f32 %v3201_v35, %v512_v3  ;;  %v3248_v17 = vsel %vm557_vm1, 0.0, %v542_v9  ;;  %v3274_v40 = vpack.c.bf16 %v568_v48, %v568_v48  ;;  %v3278_v41 = vpack.c.bf16 %v3232_v8, %v3232_v8 }
 0x15b   : > { %v543_v18 = vrot.slane %v3235_v10, 7  ;;  %v514_v23 = vmul.f32 %v3195_v31, %v500_v11  ;;  %v3255_v24 = vpack.c.bf16 %v3248_v17, %v3232_v8  ;;  %v950_v43 = vor.u32 %v949_v22, %v946_v19  ;;  %v2844_v11 = vld [vmem:[%s3862_s3 + $0x28] sm:$0xff]  }
 0x15c   : > { %v544_v27 = vrot.slane %v3245_v16, 7  ;;  %v569_v20 = vsel %vm557_vm1, %v541_v59, 0.0  ;;  %v3299_v50 = vpack.c.bf16 %v3248_v17, %v3248_v17  ;;  %v570_v52 = vsel %vm557_vm1, %v542_v9, 0.0 }
 0x15d   : > { %v3264_v30 = vsel %vm557_vm1, 0.0, %v543_v18  ;;  %v3267_v32 = vadd.f32 %v3201_v35, %v514_v23  ;;  %2578 = vmatmul.mubr.msk.bf16.vlgmr.msra.gmra.mrb[0].mxu1 %vm396_vm0, %v3255_v24  ;;  %v960_v53 = vrot.slane %v958_v36, 4  ;;  %v3306_v28 = vpack.c.bf16 %v569_v20, %v569_v20 }
 0x15e   : > { %v3283_v42 = vsel %vm557_vm1, 0.0, %v544_v27  ;;  %2586 = vmatpush3.bf16.msra.mxu1 %v3183_v60  ;;  %v2872_v60 = vpop.eup %2871  ;;  %v951_v21 = vrot.slane %v950_v43, 4  ;;  %v967_v56 = vshll.u32 %v3274_v40, 16  ;;  %v972_v57 = vshrl.u32 %v3278_v41, 16 }
 0x15f   : > { %v3288_v44 = vpack.c.bf16 %v3283_v42, %v3264_v30  ;;  %2587 = vmatprep.subr.bf16.mxu1 %v2837_v25  ;;  %v546_v51 = vrot.slane %v3267_v32, 7  ;;  %v3312_v58 = vpack.c.bf16 %v3264_v30, %v3264_v30  ;;  %v955_v59 = vrot.slane %v953_v46, 5 }
 0x160   : > { %v963_v62 = vrot.slane %v961_v54, 5  ;;  %v975_v63 = vshll.u32 %v3278_v41, 16  ;;  %v501_v29 = vmul.f32 %v2872_v60, %v3158_v49  ;;  %v3317_v3 = vpack.c.bf16 %v570_v52, %v570_v52 }
 0x161   : > { %2581 = vmatprep.mubr.msk.bf16.mxu1 %vm396_vm0, %v3288_v44  ;;  %v974_v38 = vrot.slane %v972_v57, 4  ;;  %v986_v4 = vshrl.u32 %v3299_v50, 16  ;;  %v3323_v9 = vsel %vm557_vm1, 0.0, %v546_v51  ;;  %v969_v49 = vrot.slane %v967_v56, 5 }
 0x162   : > { %2588 = vmatpush3.bf16.msra.mxu1 %v2837_v25  ;;  %v964_v19 = vor.u32 %v963_v62, %v960_v53  ;;  %v977_v22 = vrot.slane %v975_v63, 5  ;;  %v981_v23 = vshll.u32 %v3306_v28, 16  ;;  %v989_v25 = vshll.u32 %v3299_v50, 16  ;;  %v2874_v62 = vpop.eup %2873 }
 0x163   : > { %2597 = vmatprep.subr.bf16.mxu1 %v3295_v47  ;;  %v988_v48 = vrot.slane %v986_v4, 4  ;;  %v1000_v43 = vshrl.u32 %v3312_v58, 16  ;;  %v1003_v20 = vshll.u32 %v3312_v58, 16  ;;  %v515_v46 = vmul.f32 %v3195_v31, %v501_v29 }
 0x164   : > { %v965_v26 = vrot.slane %v964_v19, 4  ;;  %v978_v36 = vor.u32 %v977_v22, %v974_v38  ;;  %v3338_v60 = vsel %vm3327_vm5, %v951_v21, %v955_v59  ;;  %v991_v52 = vrot.slane %v989_v25, 5 }
 0x165   : > { %v995_v53 = vshll.u32 %v3317_v3, 16  ;;  %v571_v56 = vsel %vm557_vm1, %v543_v18, 0.0  ;;  %v3351_v57 = vpack.c.bf16 %v3323_v9, %v3323_v9  ;;  %v983_v63 = vrot.slane %v981_v23, 5 }
 0x166   : > { %v3355_v21 = vsel %vm3327_vm5, %v965_v26, %v969_v49  ;;  %v979_v59 = vrot.slane %v978_v36, 4  ;;  %v992_v29 = vor.u32 %v991_v52, %v988_v48  ;;  %v1002_v38 = vrot.slane %v1000_v43, 4 }
 0x167   : > { %v1005_v4 = vrot.slane %v1003_v20, 5  ;;  %v2402_v19 = vrot.slane %v3242_v15, 9  ;;  %v572_v10 = vsel %vm557_vm1, %v544_v27, 0.0  ;;  %v2364_v18 = vcombine.low %v3338_v60, %v3355_v21 }
 0x168   : > { %v3369_v22 = vsel %vm3342_vm7, %v2401_v33, %v1392_v34  ;;  %v3372_v49 = vadd.f32 %v3201_v35, %v515_v46  ;;  %v3376_v15 = vsel %vm3327_vm5, %v979_v59, %v983_v63  ;;  %v993_v16 = vrot.slane %v992_v29, 4 }
 0x169   : > { %v997_v27 = vrot.slane %v995_v53, 5  ;;  %v499_v23 = vmul.f32 %v2874_v62, %v3146_v39  ;;  %v3379_v48 = vpack.c.bf16 %v571_v56, %v571_v56  ;;  %v3383_v45 = vpack.c.bf16 %v3283_v42, %v3283_v42  ;;  %2613 = vmatprep.mubr.msk.bf16.mxu0 %vm396_vm0, %v2364_v18 }
 0x16a   : > { %v1042_v14 = vshrl.u32 %v3351_v57, 16  ;;  %v2403_v33 = vrot.slane %v3278_v41, 9  ;;  %v1006_v25 = vor.u32 %v1005_v4, %v1002_v38  ;;  %v1045_v26 = vshll.u32 %v3351_v57, 16  ;;  %v2838_v41 = vld [vmem:[%s3862_s3 + $0x48] sm:$0xff]   ;;  %v3426_v38 = vld [vmem:[%s3862_s3 + $0x70] sm:$0xff]  }
 0x16b   : > { %v3390_v34 = vsel %vm3327_vm5, %v993_v16, %v997_v27  ;;  %v1396_v39 = vrot.slane %v3274_v40, 5  ;;  %v3394_v36 = vpack.c.bf16 %v572_v10, %v572_v10  ;;  %v1400_v20 = vrot.slane %v3306_v28, 5 }
 0x16c   : > { %v3398_v43 = vcombine.low %v3376_v15, %v3390_v34  ;;  %v547_v46 = vrot.slane %v3372_v49, 7  ;;  %v2404_v52 = vrot.slane %v3299_v50, 9  ;;  %v574_v40 = vsel %vm557_vm1, %v546_v51, 0.0 }
 0x16d   : > { %v1404_v53 = vrot.slane %v3317_v3, 5  ;;  %v1009_v56 = vshll.u32 %v3379_v48, 16  ;;  %v1044_v59 = vrot.slane %v1042_v14, 4  ;;  %v513_v62 = vmul.f32 %v3195_v31, %v499_v23 }
 0x16e   : > { %2614 = vmatmul.mubr.msk.bf16.vlgmr.msra.gmra.mrb[0].mxu0 %vm396_vm0, %v3398_v43  ;;  %v1014_v28 = vshrl.u32 %v3383_v45, 16  ;;  %v1007_v63 = vrot.slane %v1006_v25, 4  ;;  %v1047_v29 = vrot.slane %v1045_v26, 5  ;;  %v3417_v50 = vsel %vm3342_vm7, %v2403_v33, %v1400_v20 }
 0x16f   : > { %2622 = vmatpush3.bf16.msra.mxu0 %v3189_v61  ;;  %v1017_v32 = vshll.u32 %v3383_v45, 16  ;;  %v527_v51 = vadd.f32 %v3201_v35, %v513_v62  ;;  %v1023_v31 = vshll.u32 %v3394_v36, 16  ;;  %v3430_v4 = vsel %vm3342_vm7, %v2402_v19, %v1396_v39 }
 0x170   : > { %v1016_v3 = vrot.slane %v1014_v28, 4  ;;  %2623 = vmatprep.subr.bf16.mxu0 %v2838_v41  ;;  %v2413_v61 = vcombine.low %v3369_v22, %v3430_v4  ;;  %v3436_v35 = vsel %vm3342_vm7, %v2404_v52, %v1404_v53  ;;  %v1011_v18 = vrot.slane %v1009_v56, 5 }
 0x171   : > { %v1019_v10 = vrot.slane %v1017_v32, 5  ;;  %v545_v16 = vrot.slane %v527_v51, 7  ;;  %v3440_v27 = vcombine.low %v3417_v50, %v3436_v35  ;;  %v3445_v23 = vsel %vm557_vm1, 0.0, %v547_v46 }
 0x172   : > { %v3447_v19 = vpack.c.bf16 %v574_v40, %v574_v40  ;;  %v1048_v14 = vor.u32 %v1047_v29, %v1044_v59  ;;  %v1012_v25 = vsel %vm3327_vm5, %v1007_v63, %v1011_v18  ;;  %v1025_v20 = vrot.slane %v1023_v31, 5 }
 0x173   : > { %v1020_v33 = vor.u32 %v1019_v10, %v1016_v3  ;;  %2624 = vmatpush3.bf16.msra.mxu0 %v2838_v41  ;;  %v564_v26 = vsel %vm557_vm1, 0.0, %v545_v16  ;;  %v573_v39 = vsel %vm557_vm1, %v545_v16, 0.0  ;;  %v2477_v41 = vpack.c.bf16 %v3232_v8, %v3219_v55 }
 0x174   : > { %2633 = vmatprep.subr.bf16.mxu0 %v3426_v38  ;;  %v2476_v52 = vpack.c.bf16 %v3323_v9, %v564_v26  ;;  %v3455_v53 = vpack.c.bf16 %v564_v26, %v564_v26  ;;  %v3457_v56 = vpack.c.bf16 %v573_v39, %v573_v39  ;;  %v1051_v59 = vshll.u32 %v3447_v19, 16 }
 0x175   : > { %v1021_v40 = vrot.slane %v1020_v33, 4  ;;  %v3469_v29 = vpack.c.bf16 %v3445_v23, %v3445_v23  ;;  %v1049_v51 = vrot.slane %v1048_v14, 4  ;;  %v2428_v31 = vcombine.low %v3430_v4, %v3417_v50 }
 0x176   : > { %2582 = vmatmul.mubr.msk.bf16.gmra.mrb[4].mxu1 %vm396_vm0, %v2476_v52  ;;  %v1028_v28 = vshrl.u32 %v3455_v53, 16  ;;  %v1031_v63 = vshll.u32 %v3455_v53, 16  ;;  %v1037_v3 = vshll.u32 %v3457_v56, 16  ;;  %v1053_v10 = vrot.slane %v1051_v59, 5 }
 0x177   : > { %v1026_v62 = vsel %vm3327_vm5, %v1021_v40, %v1025_v20  ;;  %2589 = vmatprep.mubr.msk.bf16.mxu1 %vm396_vm0, %v2477_v41  ;;  %v2478_v16 = vpack.c.bf16 %v3264_v30, %v3248_v17  ;;  %v1173_v33 = vshrl.u32 %v3469_v29, 16  ;;  %v1176_v14 = vshll.u32 %v3469_v29, 16  ;;  %v2841_v41 = vld [vmem:[%s3862_s3 + $0x68] sm:$0xff]  }
 0x178   : > { %v2366_v32 = vcombine.low %v1012_v25, %v1026_v62  ;;  %v1030_v55 = vrot.slane %v1028_v28, 4  ;;  %v1033_v8 = vrot.slane %v1031_v63, 5  ;;  %v1054_v39 = vsel %vm3327_vm5, %v1049_v51, %v1053_v10 }
 0x179   : > { %v1039_v40 = vrot.slane %v1037_v3, 5  ;;  %v2479_v28 = vpack.c.bf16 %v564_v26, %v3283_v42  ;;  %v575_v30 = vsel %vm557_vm1, %v547_v46, 0.0  ;;  %v1175_v63 = vrot.slane %v1173_v33, 4 }
 0x17a   : > { %2617 = vmatprep.mubr.msk.bf16.mxu0 %vm396_vm0, %v2366_v32  ;;  %v1034_v18 = vor.u32 %v1033_v8, %v1030_v55  ;;  %v1178_v51 = vrot.slane %v1176_v14, 5  ;;  %v2380_v55 = vcombine.low %v3355_v21, %v3376_v15  ;;  %v3497_v42 = vpack.c.bf16 %v575_v30, %v575_v30  ;;  %v2842_v21 = vld [vmem:[%s3862_s3 + $0x78] sm:$0xff]  }
 0x17b   : > { %v2480_v46 = vpack.c.bf16 %v3445_v23, %v3323_v9  ;;  %v2843_v9 = vld [vmem:[%s3862_s3 + $0x20] sm:$0xff]   ;;  %v1420_v10 = vrot.slane %v3447_v19, 5  ;;  %v2423_v33 = vrot.slane %v3469_v29, 9 }
 0x17c   : > { %v1035_v20 = vrot.slane %v1034_v18, 4  ;;  %v1179_v49 = vor.u32 %v1178_v51, %v1175_v63  ;;  %v1182_v26 = vshll.u32 %v3497_v42, 16  ;;  %v2848_v18 = vld [vmem:[%s3862_s3 + $0x88] sm:$0xff]  }
 0x17e   : > { %2590 = vmatmul.mubr.msk.bf16.vlgmr.msra.gmra.mrb[0].mxu1 %vm396_vm0, %v2478_v16  ;;  %v1040_v17 = vsel %vm3327_vm5, %v1035_v20, %v1039_v40  ;;  %v1180_v15 = vrot.slane %v1179_v49, 4  ;;  %v1184_v3 = vrot.slane %v1182_v26, 5 }
 0x17f   : > { %2593 = vmatprep.mubr.msk.bf16.mxu1 %vm396_vm0, %v2479_v28  ;;  %v2367_v59 = vcombine.low %v1040_v17, %v1054_v39  ;;  %2598 = vmatpush3.bf16.msra.mxu1 %v3295_v47  ;;  %v2381_v47 = vcombine.low %v3390_v34, %v1012_v25  ;;  %v2382_v8 = vcombine.low %v1026_v62, %v1040_v17  ;;  %v2406_v25 = vrot.slane %v3383_v45, 9 }
 0x180   : > { %2599 = vmatprep.subr.bf16.mxu1 %v2841_v41 }
 0x181   : > { %2618 = vmatmul.mubr.msk.bf16.gmra.mrb[4].mxu0 %vm396_vm0, %v2367_v59 }
 0x182   : > { %2625 = vmatprep.mubr.msk.bf16.mxu0 %vm396_vm0, %v2380_v55 }
 0x183   : > { %2600 = vmatpush3.bf16.msra.mxu1 %v2841_v41 }
 0x186   : > { %2594 = vmatmul.mubr.msk.bf16.gmra.mrb[4].mxu1 %vm396_vm0, %v2480_v46 }
 0x187   : > { %2601 = vmatprep.mubr.msk.bf16.mxu1 %vm396_vm0, %v3255_v24  ;;  %v1185_v24 = vsel %vm3327_vm5, %v1180_v15, %v1184_v3 }
 0x188   : > { %v2383_v34 = vcombine.low %v1054_v39, %v1185_v24  ;;  %v1538_v39 = vrot.slane %v3497_v42, 5 }
 0x189   : > { %2626 = vmatmul.mubr.msk.bf16.vlgmr.msra.gmra.mrb[0].mxu0 %vm396_vm0, %v2381_v47 }
 0x18a   : > { %2634 = vmatpush3.bf16.msra.mxu0 %v3426_v38  ;;  %2629 = vmatprep.mubr.msk.bf16.mxu0 %vm396_vm0, %v2382_v8  ;;  %v2481_v38 = vpack.c.bf16 %v3205_v37, %v3445_v23  ;;  %v2405_v37 = vrot.slane %v3312_v58, 9  ;;  %v1408_v23 = vrot.slane %v3379_v48, 5  ;;  %v2846_v58 = vld [vmem:[%s3862_s3 + $0x58] sm:$0xff]   ;;  %v2408_v48 = vrot.slane %v3351_v57, 9 }
 0x18b   : > { %2635 = vmatprep.subr.bf16.mxu0 %v2842_v21  ;;  %v1539_v50 = vsel %vm3342_vm7, %v2423_v33, %v1538_v39 }
 0x18c   : > { %v1409_v62 = vsel %vm3342_vm7, %v2405_v37, %v1408_v23 }
 0x18d   : > { %v2429_v19 = vcombine.low %v3436_v35, %v1409_v62  ;;  %v2442_v35 = vcombine.low %v1539_v50, %v3369_v22 }
 0x18e   : > { %2602 = vmatmul.mubr.msk.bf16.vlgmr.msra.gmra.mrb[0].mxu1 %vm396_vm0, %v3288_v44  ;;  %2636 = vmatpush3.bf16.msra.mxu0 %v2842_v21  ;;  %v2845_v44 = vld [vmem:[%s3862_s3 + $0x50] sm:$0xff]  }
 0x18f   : > { %2605 = vmatprep.mubr.msk.bf16.mxu1 %vm396_vm0, %v2476_v52  ;;  %2645 = vmatprep.subr.bf16.mxu0 %v2843_v9  ;;  %v1412_v52 = vrot.slane %v3394_v36, 5  ;;  %v2407_v36 = vrot.slane %v3455_v53, 9  ;;  %v1421_v53 = vsel %vm3342_vm7, %v2408_v48, %v1420_v10 }
 0x190   : > { %v2431_v4 = vcombine.low %v1421_v53, %v1539_v50 }
 0x191   : > { %2630 = vmatmul.mubr.msk.bf16.gmra.mrb[4].mxu0 %vm396_vm0, %v2383_v34 }
 0x192   : > { %2637 = vmatprep.mubr.msk.bf16.mxu0 %vm396_vm0, %v3398_v43  ;;  %v2394_v43 = vcombine.low %v1185_v24, %v3338_v60  ;;  %v1413_v60 = vsel %vm3342_vm7, %v2406_v25, %v1412_v52 }
 0x193   : > { %v2415_v45 = vcombine.low %v1409_v62, %v1413_v60 }
 0x196   : > { %2606 = vmatmul.mubr.msk.bf16.gmra.mrb[4].mxu1 %vm396_vm0, %v2481_v38 }
 0x199   : > { %2638 = vmatmul.mubr.msk.bf16.vlgmr.msra.gmra.mrb[0].mxu0 %vm396_vm0, %v2366_v32  ;;  %v1416_v32 = vrot.slane %v3457_v56, 5 }
 0x19a   : > { %2646 = vmatpush3.bf16.msra.mxu0 %v2843_v9  ;;  %2641 = vmatprep.mubr.msk.bf16.mxu0 %vm396_vm0, %v2367_v59 }
 0x19b   : > { %2647 = vmatprep.subr.bf16.mxu0 %v2844_v11  ;;  %v1417_v57 = vsel %vm3342_vm7, %v2407_v36, %v1416_v32 }
 0x19c   : > { %v2416_v56 = vcombine.low %v1417_v57, %v1421_v53  ;;  %v2430_v16 = vcombine.low %v1413_v60, %v1417_v57 }
 0x19e   : > { %2648 = vmatpush3.bf16.msra.mxu0 %v2844_v11 }
 0x19f   : > { %2657 = vmatprep.subr.bf16.mxu0 %v2845_v44 }
 0x1a1   : > { %2642 = vmatmul.mubr.msk.bf16.gmra.mrb[4].mxu0 %vm396_vm0, %v2394_v43 }
 0x1a2   : > { %2649 = vmatprep.mubr.msk.bf16.mxu0 %vm396_vm0, %v2413_v61  ;;  %v2847_v61 = vld [vmem:[%s3862_s3 + $0x80] sm:$0xff]  }
 0x1a9   : > { %2650 = vmatmul.mubr.msk.bf16.vlgmr.msra.gmra.mrb[0].mxu0 %vm396_vm0, %v3440_v27 }
 0x1aa   : > { %2658 = vmatpush3.bf16.msra.mxu0 %v2845_v44  ;;  %2653 = vmatprep.mubr.msk.bf16.mxu0 %vm396_vm0, %v2415_v45 }
 0x1ab   : > { %2659 = vmatprep.subr.bf16.mxu0 %v2846_v58 }
 0x1ae   : > { %2660 = vmatpush3.bf16.msra.mxu0 %v2846_v58 }
 0x1af   : > { %2669 = vmatprep.subr.bf16.mxu0 %v2847_v61 }
 0x1b1   : > { %2654 = vmatmul.mubr.msk.bf16.gmra.mrb[4].mxu0 %vm396_vm0, %v2416_v56 }
 0x1b2   : > { %2661 = vmatprep.mubr.msk.bf16.mxu0 %vm396_vm0, %v2428_v31 }
 0x1b9   : > { %2662 = vmatmul.mubr.msk.bf16.vlgmr.msra.gmra.mrb[0].mxu0 %vm396_vm0, %v2429_v19 }
 0x1ba   : > { %2670 = vmatpush3.bf16.msra.mxu0 %v2847_v61  ;;  %2665 = vmatprep.mubr.msk.bf16.mxu0 %vm396_vm0, %v2430_v16 }
 0x1bb   : > { %2671 = vmatprep.subr.bf16.mxu0 %v2848_v18 }
 0x1be   : > { %2672 = vmatpush3.bf16.msra.mxu0 %v2848_v18 }
 0x1c1   : > { %2666 = vmatmul.mubr.msk.bf16.gmra.mrb[4].mxu0 %vm396_vm0, %v2431_v4 }
 0x1c2   : > { %2673 = vmatprep.mubr.msk.bf16.mxu0 %vm396_vm0, %v3440_v27  ;;  %v2308_v27 = vld [vmem:[%s3863_s4] ss:$0 sm:$0xff] }
 0x1c9   : > { %2674 = vmatmul.mubr.msk.bf16.vlgmr.msra.gmra.mrb[0].mxu0 %vm396_vm0, %v2415_v45 }
 0x1ca   : > { %2677 = vmatprep.mubr.msk.bf16.mxu0 %vm396_vm0, %v2416_v56 }
 0x1d1   : > { %2678 = vmatmul.mubr.msk.bf16.gmra.mrb[4].mxu0 %vm396_vm0, %v2442_v35 }
 0x261   : > { %v2603_v29 = vpop.f32.mrb[0].mxu1 }
 0x262   : > { %v877_v31 = vpop.f32.mrb[1].mxu1  ;;  %v2717_v17 = vadd.f32 %v2603_v29, %v2308_v27 }
 0x263   : > { %v2604_v14 = vpop.f32.mrb[2].mxu1  ;;  %v2719_v30 = vadd.f32 %v2308_v27, %v877_v31 }
 0x264   : > { %v880_v54 = vpop.f32.mrb[3].mxu1  ;;  %v2721_v63 = vadd.f32 %v2604_v14, %v2308_v27 }
 0x265   : > { %v2723_v55 = vadd.f32 %v2308_v27, %v880_v54 }
 0x269   : > { %v2607_v20 = vpop.f32.mrb[4].mxu1 }
 0x26a   : > { %v893_v40 = vpop.f32.mrb[5].mxu1  ;;  %v2725_v9 = vadd.f32 %v2607_v20, %v2308_v27 }
 0x26b   : > { %v2608_v41 = vpop.f32.mrb[6].mxu1  ;;  %v2727_v24 = vadd.f32 %v2308_v27, %v893_v40 }
 0x26c   : > { %v896_v28 = vpop.f32.mrb[7].mxu1  ;;  %v2729_v11 = vadd.f32 %v2608_v41, %v2308_v27 }
 0x26d   : > { %v2731_v43 = vadd.f32 %v2308_v27, %v896_v28 }
 0x29c   : > { %v2675_v59 = vpop.f32.mrb[0].mxu0 }
 0x29d   : > { %v2718_v51 = vadd.f32 %v2717_v17, %v2675_v59  ;;  %v1702_v22 = vpop.f32.mrb[1].mxu0 }
 0x29e   : > { %v2720_v42 = vadd.f32 %v2719_v30, %v1702_v22  ;;  %v2676_v49 = vpop.f32.mrb[2].mxu0 }
 0x29f   : > { %v2722_v46 = vadd.f32 %v2721_v63, %v2676_v49  ;;  %v1705_v26 = vpop.f32.mrb[3].mxu0  ;;  %v3595_v15 = vadd.f32 %v2718_v51, %v3090_v1 }
 0x2a0   : > { %v3592_v47 = vadd.f32 %v2720_v42, %v3088_v0  ;;  %v2724_v21 = vadd.f32 %v2723_v55, %v1705_v26 }
 0x2a1   : > { %v3603_v34 = vadd.f32 %v2722_v46, %v3098_v5  ;;  %v1757_v23 = vsel %vm396_vm0, %v3595_v15, 0.0 }
 0x2a2   : > { %v3598_v8 = vadd.f32 %v2724_v21, %v3092_v2  ;;  %v1751_v3 = vsel %vm396_vm0, %v3592_v47, 0.0 }
 0x2a3   : > { %1752 = vadd.xlane.f32.xlu0 %v1751_v3  ;;  %v1760_v60 = vsel %vm396_vm0, %v3603_v34, 0.0 }
 0x2a4   : > { %v2679_v38 = vpop.f32.mrb[4].mxu0  ;;  %v1754_v0 = vsel %vm396_vm0, %v3598_v8, 0.0 }
 0x2a5   : > { %v2726_v44 = vadd.f32 %v2725_v9, %v2679_v38  ;;  %v1718_v1 = vpop.f32.mrb[5].mxu0  ;;  %1755 = vadd.xlane.f32.xlu1 %v1754_v0  ;;  %v2849_v0 = vld [vmem:[%s3866_s7] sm:$0xff]  }
 0x2a6   : > { %v2728_v2 = vadd.f32 %v2727_v24, %v1718_v1  ;;  %v2680_v37 = vpop.f32.mrb[6].mxu0  ;;  %2681 = vmatprep.subr.bf16.mxu1 %v2849_v0 }
 0x2a7   : > { %v2730_v25 = vadd.f32 %v2729_v11, %v2680_v37  ;;  %v1721_v52 = vpop.f32.mrb[7].mxu0  ;;  %1758 = vadd.xlane.f32.xlu0 %v1757_v23  ;;  %v3615_v58 = vadd.f32 %v2726_v44, %v3112_v12  ;;  %v2850_v11 = vld [vmem:[%s3866_s7 + $0x8] sm:$0xff]   ;;  %2682 = vmatpush3.bf16.msra.mxu1 %v2849_v0 }
 0x2a8   : > { %v3610_v5 = vadd.f32 %v2728_v2, %v3100_v6  ;;  %v2732_v62 = vadd.f32 %v2731_v43, %v1721_v52  ;;  %2683 = vmatprep.subr.bf16.mxu1 %v2850_v11 }
 0x2a9   : > { %1761 = vadd.xlane.f32.xlu1 %v1760_v60  ;;  %v3623_v36 = vadd.f32 %v2730_v25, %v3114_v13  ;;  %v1769_v32 = vsel %vm396_vm0, %v3615_v58, 0.0 }
 0x2aa   : > { %v3618_v48 = vadd.f32 %v2732_v62, %v3102_v7  ;;  %v1763_v45 = vsel %vm396_vm0, %v3610_v5, 0.0 }
 0x2ab   : > { %1764 = vadd.xlane.f32.xlu0 %v1763_v45  ;;  %v1772_v12 = vsel %vm396_vm0, %v3623_v36, 0.0  ;;  %2684 = vmatpush3.bf16.msra.mxu1 %v2850_v11 }
 0x2ac   : > { %v1766_v6 = vsel %vm396_vm0, %v3618_v48, 0.0 }
 0x2ad   : > { %1767 = vadd.xlane.f32.xlu1 %v1766_v6 }
 0x2af   : > { %1770 = vadd.xlane.f32.xlu0 %v1769_v32 }
 0x2b1   : > { %1773 = vadd.xlane.f32.xlu1 %v1772_v12 }
 0x330   : > { %v1753_v7 = vpop.xlane.xlu0 %1752 }
 0x331   : > { %v1775_v10 = vmul.f32 0.03125, %v1753_v7 }
 0x332   : > { %v1756_v61 = vpop.xlane.xlu1 %1755 }
 0x333   : > { %v3632_v57 = vsub.f32 %v3592_v47, %v1775_v10  ;;  %v1776_v13 = vmul.f32 0.03125, %v1756_v61 }
 0x334   : > { %v1759_v53 = vpop.xlane.xlu0 %1758 }
 0x335   : > { %v3635_v56 = vsub.f32 %v3598_v8, %v1776_v13  ;;  %v1777_v19 = vmul.f32 0.03125, %v1759_v53  ;;  %v1791_v18 = vmul.f32 %v3632_v57, %v3632_v57 }
 0x336   : > { %v1762_v16 = vpop.xlane.xlu1 %1761 }
 0x337   : > { %v3640_v33 = vsub.f32 %v3595_v15, %v1777_v19  ;;  %v1778_v39 = vmul.f32 0.03125, %v1762_v16  ;;  %v1799_v50 = vsel %vm396_vm0, %v1791_v18, 0.0  ;;  %v1792_v4 = vmul.f32 %v3635_v56, %v3635_v56 }
 0x338   : > { %1800 = vadd.xlane.f32.xlu0 %v1799_v50  ;;  %v1765_v35 = vpop.xlane.xlu0 %1764 }
 0x339   : > { %v3646_v29 = vsub.f32 %v3603_v34, %v1778_v39  ;;  %v1779_v31 = vmul.f32 0.03125, %v1765_v35  ;;  %v1802_v14 = vsel %vm396_vm0, %v1792_v4, 0.0  ;;  %v1793_v54 = vmul.f32 %v3640_v33, %v3640_v33  ;;  %v2449_v39 = vld [vmem:[%s3864_s5] ss:$0 sm:$0xff] }
 0x33a   : > { %1803 = vadd.xlane.f32.xlu1 %v1802_v14  ;;  %v1768_v20 = vpop.xlane.xlu1 %1767 }
 0x33b   : > { %v3652_v40 = vsub.f32 %v3610_v5, %v1779_v31  ;;  %v1780_v41 = vmul.f32 0.03125, %v1768_v20  ;;  %v1805_v28 = vsel %vm396_vm0, %v1793_v54, 0.0  ;;  %v1794_v27 = vmul.f32 %v3646_v29, %v3646_v29 }
 0x33c   : > { %1806 = vadd.xlane.f32.xlu0 %v1805_v28  ;;  %v1771_v17 = vpop.xlane.xlu0 %1770  ;;  %v2450_v28 = vld [vmem:[%s3865_s6] ss:$0 sm:$0xff] }
 0x33d   : > { %v3658_v30 = vsub.f32 %v3618_v48, %v1780_v41  ;;  %v1781_v59 = vmul.f32 0.03125, %v1771_v17  ;;  %v1808_v63 = vsel %vm396_vm0, %v1794_v27, 0.0  ;;  %v1795_v51 = vmul.f32 %v3652_v40, %v3652_v40 }
 0x33e   : > { %1809 = vadd.xlane.f32.xlu1 %v1808_v63  ;;  %v1774_v22 = vpop.xlane.xlu1 %1773 }
 0x33f   : > { %v3664_v55 = vsub.f32 %v3615_v58, %v1781_v59  ;;  %v1782_v42 = vmul.f32 0.03125, %v1774_v22  ;;  %v1811_v49 = vsel %vm396_vm0, %v1795_v51, 0.0  ;;  %v1796_v46 = vmul.f32 %v3658_v30, %v3658_v30 }
 0x340   : > { %1812 = vadd.xlane.f32.xlu0 %v1811_v49 }
 0x341   : > { %v3670_v26 = vsub.f32 %v3623_v36, %v1782_v42  ;;  %v1814_v21 = vsel %vm396_vm0, %v1796_v46, 0.0  ;;  %v1797_v3 = vmul.f32 %v3664_v55, %v3664_v55 }
 0x342   : > { %1815 = vadd.xlane.f32.xlu1 %v1814_v21 }
 0x343   : > { %v1817_v9 = vsel %vm396_vm0, %v1797_v3, 0.0  ;;  %v1798_v24 = vmul.f32 %v3670_v26, %v3670_v26 }
 0x344   : > { %1818 = vadd.xlane.f32.xlu0 %v1817_v9 }
 0x345   : > { %v1820_v38 = vsel %vm396_vm0, %v1798_v24, 0.0 }
 0x346   : > { %1821 = vadd.xlane.f32.xlu1 %v1820_v38 }
 0x3c5   : > { %v1801_v44 = vpop.xlane.xlu0 %1800 }
 0x3c6   : > { %v1823_v1 = vmul.f32 0.03125, %v1801_v44 }
 0x3c7   : > { %v1804_v43 = vpop.xlane.xlu1 %1803 }
 0x3c8   : > { %v1831_v2 = vadd.f32 1e-05, %v1823_v1  ;;  %v1824_v37 = vmul.f32 0.03125, %v1804_v43 }
 0x3c9   : > { %v1807_v23 = vpop.xlane.xlu0 %1806 }
 0x3ca   : > { %2875 = vrsqrt.f32 %v1831_v2  ;;  %v1832_v25 = vadd.f32 1e-05, %v1824_v37  ;;  %v1825_v52 = vmul.f32 0.03125, %v1807_v23 }
 0x3cb   : > { %v1810_v62 = vpop.xlane.xlu1 %1809 }
 0x3cc   : > { %2877 = vrsqrt.f32 %v1832_v25  ;;  %v1833_v60 = vadd.f32 1e-05, %v1825_v52  ;;  %v1826_v45 = vmul.f32 0.03125, %v1810_v62  ;;  %v2853_v62 = vld [vmem:[%s3868_s9 + $0x10] sm:$0xff]  }
 0x3cd   : > { %v1813_v6 = vpop.xlane.xlu0 %1812 }
 0x3ce   : > { %2879 = vrsqrt.f32 %v1833_v60  ;;  %v1834_v32 = vadd.f32 1e-05, %v1826_v45  ;;  %v1827_v12 = vmul.f32 0.03125, %v1813_v6  ;;  %v2854_v60 = vld [vmem:[%s3868_s9 + $0x18] sm:$0xff]   ;;  %v2855_v45 = vld [vmem:[%s3868_s9 + $0x20] sm:$0xff]   ;;  %v2856_v6 = vld [vmem:[%s3868_s9 + $0x28] sm:$0xff]  }
 0x3cf   : > { %v1816_v7 = vpop.xlane.xlu1 %1815 }
 0x3d0   : > { %2881 = vrsqrt.f32 %v1834_v32  ;;  %v1835_v10 = vadd.f32 1e-05, %v1827_v12  ;;  %v1828_v61 = vmul.f32 0.03125, %v1816_v7  ;;  %v2857_v32 = vld [vmem:[%s3868_s9 + $0x30] sm:$0xff]   ;;  %v2858_v12 = vld [vmem:[%s3868_s9 + $0x38] sm:$0xff]  }
 0x3d1   : > { %v1819_v13 = vpop.xlane.xlu0 %1818  ;;  %v2451_v7 = vld [vmem:[%s3867_s8] ss:$0 sm:$0xff] }
 0x3d2   : > { %2883 = vrsqrt.f32 %v1835_v10  ;;  %v1836_v53 = vadd.f32 1e-05, %v1828_v61  ;;  %v1829_v19 = vmul.f32 0.03125, %v1819_v13 }
 0x3d3   : > { %v1822_v18 = vpop.xlane.xlu1 %1821 }
 0x3d4   : > { %v2876_v16 = vpop.eup %2875  ;;  %2885 = vrsqrt.f32 %v1836_v53  ;;  %v1837_v50 = vadd.f32 1e-05, %v1829_v19  ;;  %v1830_v4 = vmul.f32 0.03125, %v1822_v18 }
 0x3d5   : > { %v1847_v35 = vmul.f32 %v2876_v16, %v3632_v57 }
 0x3d6   : > { %v2878_v31 = vpop.eup %2877  ;;  %2887 = vrsqrt.f32 %v1837_v50  ;;  %v1838_v14 = vadd.f32 1e-05, %v1830_v4 }
 0x3d7   : > { %v1848_v54 = vmul.f32 %v2878_v31, %v3635_v56  ;;  %v1861_v20 = vmul.f32 %v2449_v39, %v1847_v35 }
 0x3d8   : > { %v2880_v41 = vpop.eup %2879  ;;  %2889 = vrsqrt.f32 %v1838_v14 }
 0x3d9   : > { %v1849_v27 = vmul.f32 %v2880_v41, %v3640_v33  ;;  %v1862_v17 = vmul.f32 %v2449_v39, %v1848_v54  ;;  %v1875_v57 = vadd.f32 %v2450_v28, %v1861_v20 }
 0x3da   : > { %v2882_v59 = vpop.eup %2881 }
 0x3db   : > { %v1863_v63 = vmul.f32 %v2449_v39, %v1849_v27  ;;  %v1850_v51 = vmul.f32 %v2882_v59, %v3646_v29  ;;  %v1876_v22 = vadd.f32 %v2450_v28, %v1862_v17 }
 0x3dc   : > { %v2884_v42 = vpop.eup %2883 }
 0x3dd   : > { %v1864_v49 = vmul.f32 %v2449_v39, %v1850_v51  ;;  %v1851_v56 = vmul.f32 %v2884_v42, %v3652_v40  ;;  %v1883_v46 = vpack.c.bf16 %v1876_v22, %v1875_v57  ;;  %v1877_v3 = vadd.f32 %v2450_v28, %v1863_v63 }
 0x3de   : > { %v2886_v21 = vpop.eup %2885 }
 0x3df   : > { %v1878_v9 = vadd.f32 %v2450_v28, %v1864_v49  ;;  %v1852_v24 = vmul.f32 %v2886_v21, %v3658_v30  ;;  %2685 = vmatprep.mubr.msk.bf16.mxu1 %vm396_vm0, %v1883_v46  ;;  %v1865_v33 = vmul.f32 %v2449_v39, %v1851_v56 }
 0x3e0   : > { %v2888_v38 = vpop.eup %2887 }
 0x3e1   : > { %v1853_v0 = vmul.f32 %v2888_v38, %v3664_v55  ;;  %v1884_v11 = vpack.c.bf16 %v1878_v9, %v1877_v3  ;;  %v1866_v29 = vmul.f32 %v2449_v39, %v1852_v24  ;;  %v1879_v40 = vadd.f32 %v2450_v28, %v1865_v33  ;;  %v2851_v55 = vld [vmem:[%s3868_s9] sm:$0xff]  }
 0x3e2   : > { %v2890_v44 = vpop.eup %2889  ;;  %2693 = vmatprep.subr.bf16.mxu1 %v2851_v55 }
 0x3e3   : > { %v1854_v1 = vmul.f32 %v2890_v44, %v3670_v26  ;;  %2686 = vmatmul.mubr.msk.bf16.vlgmr.msra.gmra.mrb[8].mxu1 %vm396_vm0, %v1884_v11  ;;  %v1880_v43 = vadd.f32 %v2450_v28, %v1866_v29  ;;  %v1867_v2 = vmul.f32 %v2449_v39, %v1853_v0  ;;  %v2852_v26 = vld [vmem:[%s3868_s9 + $0x8] sm:$0xff]  }
 0x3e4   : > { %2694 = vmatpush3.bf16.msra.mxu1 %v2851_v55 }
 0x3e5   : > { %v1885_v37 = vpack.c.bf16 %v1880_v43, %v1879_v40  ;;  %v1868_v23 = vmul.f32 %v2449_v39, %v1854_v1  ;;  %v1881_v30 = vadd.f32 %v2450_v28, %v1867_v2  ;;  %2695 = vmatprep.subr.bf16.mxu1 %v2852_v26 }
 0x3e7   : > { %2689 = vmatprep.mubr.msk.bf16.mxu1 %vm396_vm0, %v1885_v37  ;;  %v1882_v25 = vadd.f32 %v2450_v28, %v1868_v23 }
 0x3e8   : > { %2696 = vmatpush3.bf16.msra.mxu1 %v2852_v26 }
 0x3e9   : > { %v1886_v52 = vpack.c.bf16 %v1882_v25, %v1881_v30  ;;  %2697 = vmatprep.subr.bf16.mxu1 %v2853_v62 }
 0x3eb   : > { %2690 = vmatmul.mubr.msk.bf16.gmra.mrb[12].mxu1 %vm396_vm0, %v1886_v52 }
 0x3ec   : > { %2698 = vmatpush3.bf16.msra.mxu1 %v2853_v62 }
 0x3ed   : > { %2699 = vmatprep.subr.bf16.mxu1 %v2854_v60 }
 0x3f0   : > { %2700 = vmatpush3.bf16.msra.mxu1 %v2854_v60 }
 0x3f1   : > { %2701 = vmatprep.subr.bf16.mxu1 %v2855_v45 }
 0x3f4   : > { %2702 = vmatpush3.bf16.msra.mxu1 %v2855_v45 }
 0x3f5   : > { %2703 = vmatprep.subr.bf16.mxu1 %v2856_v6 }
 0x3f8   : > { %2704 = vmatpush3.bf16.msra.mxu1 %v2856_v6 }
 0x3f9   : > { %2705 = vmatprep.subr.bf16.mxu1 %v2857_v32 }
 0x3fc   : > { %2706 = vmatpush3.bf16.msra.mxu1 %v2857_v32 }
 0x3fd   : > { %2707 = vmatprep.subr.bf16.mxu1 %v2858_v12 }
 0x400   : > { %2708 = vmatpush3.bf16.msra.mxu1 %v2858_v12 }
 0x4b6   : > { %v2687_v10 = vpop.f32.mrb[8].mxu1 }
 0x4b7   : > { %v3730_v61 = vadd.f32 %v2687_v10, %v2451_v7  ;;  %v1956_v13 = vpop.f32.mrb[9].mxu1 }
 0x4b8   : > { %v3732_v53 = vadd.f32 %v2451_v7, %v1956_v13  ;;  %v2688_v19 = vpop.f32.mrb[10].mxu1 }
 0x4b9   : > { %v1989_v18 = vmul.f32 %v3730_v61, %v3730_v61  ;;  %v3736_v16 = vadd.f32 %v2688_v19, %v2451_v7  ;;  %v1959_v39 = vpop.f32.mrb[11].mxu1 }
 0x4ba   : > { %v1987_v50 = vmul.f32 %v3732_v53, %v3732_v53  ;;  %v3740_v4 = vadd.f32 %v2451_v7, %v1959_v39 }
 0x4bb   : > { %v1997_v35 = vmul.f32 %v1989_v18, %v3730_v61  ;;  %v1990_v31 = vmul.f32 %v3736_v16, %v3736_v16 }
 0x4bc   : > { %v1995_v14 = vmul.f32 %v1987_v50, %v3732_v53  ;;  %v1988_v54 = vmul.f32 %v3740_v4, %v3740_v4 }
 0x4bd   : > { %v2005_v20 = vmul.f32 0.044715, %v1997_v35  ;;  %v1998_v41 = vmul.f32 %v1990_v31, %v3736_v16 }
 0x4be   : > { %v2003_v28 = vmul.f32 0.044715, %v1995_v14  ;;  %v1996_v27 = vmul.f32 %v1988_v54, %v3740_v4  ;;  %v2691_v17 = vpop.f32.mrb[12].mxu1 }
 0x4bf   : > { %v2013_v59 = vadd.f32 %v2005_v20, %v3730_v61  ;;  %v2006_v63 = vmul.f32 0.044715, %v1998_v41  ;;  %v3751_v51 = vadd.f32 %v2691_v17, %v2451_v7  ;;  %v1972_v57 = vpop.f32.mrb[13].mxu1 }
 0x4c0   : > { %v2011_v22 = vadd.f32 %v2003_v28, %v3732_v53  ;;  %v2004_v42 = vmul.f32 0.044715, %v1996_v27  ;;  %v3754_v49 = vadd.f32 %v2451_v7, %v1972_v57  ;;  %v2692_v56 = vpop.f32.mrb[14].mxu1 }
 0x4c1   : > { %v2021_v46 = vmul.f32 0.7978846, %v2013_v59  ;;  %v2014_v21 = vadd.f32 %v2006_v63, %v3736_v16  ;;  %v1993_v3 = vmul.f32 %v3751_v51, %v3751_v51  ;;  %v3759_v9 = vadd.f32 %v2692_v56, %v2451_v7  ;;  %v1975_v24 = vpop.f32.mrb[15].mxu1 }
 0x4c2   : > { %v2019_v33 = vmul.f32 0.7978846, %v2011_v22  ;;  %v2012_v38 = vadd.f32 %v2004_v42, %v3740_v4  ;;  %v1991_v0 = vmul.f32 %v3754_v49, %v3754_v49  ;;  %v3764_v11 = vadd.f32 %v2451_v7, %v1975_v24 }
 0x4c3   : > { %2891 = vtanh.f32 %v2021_v46  ;;  %v2022_v29 = vmul.f32 0.7978846, %v2014_v21  ;;  %v2001_v44 = vmul.f32 %v1993_v3, %v3751_v51  ;;  %v1994_v1 = vmul.f32 %v3759_v9, %v3759_v9 }
 0x4c4   : > { %2893 = vtanh.f32 %v2019_v33  ;;  %v2020_v40 = vmul.f32 0.7978846, %v2012_v38  ;;  %v1999_v43 = vmul.f32 %v1991_v0, %v3754_v49  ;;  %v1992_v2 = vmul.f32 %v3764_v11, %v3764_v11 }
 0x4c5   : > { %2895 = vtanh.f32 %v2022_v29  ;;  %v2009_v37 = vmul.f32 0.044715, %v2001_v44  ;;  %v2002_v23 = vmul.f32 %v1994_v1, %v3759_v9 }
 0x4c6   : > { %2897 = vtanh.f32 %v2020_v40  ;;  %v2007_v30 = vmul.f32 0.044715, %v1999_v43  ;;  %v2000_v25 = vmul.f32 %v1992_v2, %v3764_v11  ;;  %v2466_v2 = vld [vmem:[%s3869_s10] ss:$0 sm:$0xff] }
 0x4c7   : > { %v2017_v52 = vadd.f32 %v2009_v37, %v3751_v51  ;;  %v2010_v55 = vmul.f32 0.044715, %v2002_v23 }
 0x4c8   : > { %v2015_v26 = vadd.f32 %v2007_v30, %v3754_v49  ;;  %v2008_v62 = vmul.f32 0.044715, %v2000_v25 }
 0x4c9   : > { %v2025_v60 = vmul.f32 0.7978846, %v2017_v52  ;;  %v2018_v45 = vadd.f32 %v2010_v55, %v3759_v9 }
 0x4ca   : > { %v2023_v6 = vmul.f32 0.7978846, %v2015_v26  ;;  %v2016_v32 = vadd.f32 %v2008_v62, %v3764_v11 }
 0x4cb   : > { %2899 = vtanh.f32 %v2025_v60  ;;  %v2026_v12 = vmul.f32 0.7978846, %v2018_v45 }
 0x4cc   : > { %2901 = vtanh.f32 %v2023_v6  ;;  %v2024_v7 = vmul.f32 0.7978846, %v2016_v32 }
 0x4cd   : > { %v2892_v10 = vpop.eup %2891  ;;  %2903 = vtanh.f32 %v2026_v12 }
 0x4ce   : > { %v2894_v13 = vpop.eup %2893  ;;  %v2037_v19 = vadd.f32 1.0, %v2892_v10  ;;  %2905 = vtanh.f32 %v2024_v7 }
 0x4cf   : > { %v2896_v18 = vpop.eup %2895  ;;  %v2035_v39 = vadd.f32 1.0, %v2894_v13 }
 0x4d0   : > { %v2898_v50 = vpop.eup %2897  ;;  %v2045_v35 = vmul.f32 0.5, %v2037_v19  ;;  %v2038_v31 = vadd.f32 1.0, %v2896_v18 }
 0x4d1   : > { %v2036_v14 = vadd.f32 1.0, %v2898_v50  ;;  %v2043_v54 = vmul.f32 0.5, %v2035_v39 }
 0x4d2   : > { %v2046_v20 = vmul.f32 0.5, %v2038_v31  ;;  %v2053_v28 = vmul.f32 %v2045_v35, %v3730_v61 }
 0x4d3   : > { %v2044_v41 = vmul.f32 0.5, %v2036_v14  ;;  %v2051_v59 = vmul.f32 %v2043_v54, %v3732_v53 }
 0x4d4   : > { %v2054_v27 = vmul.f32 %v2046_v20, %v3736_v16 }
 0x4d5   : > { %v2900_v17 = vpop.eup %2899  ;;  %v2052_v63 = vmul.f32 %v2044_v41, %v3740_v4 }
 0x4d6   : > { %v2902_v57 = vpop.eup %2901  ;;  %v2060_v22 = vpack.c.bf16 %v2054_v27, %v2053_v28  ;;  %v2041_v42 = vadd.f32 1.0, %v2900_v17 }
 0x4d7   : > { %v2904_v56 = vpop.eup %2903  ;;  %v2059_v46 = vpack.c.bf16 %v2052_v63, %v2051_v59  ;;  %v2039_v21 = vadd.f32 1.0, %v2902_v57 }
 0x4d8   : > { %v2906_v3 = vpop.eup %2905  ;;  %v2042_v24 = vadd.f32 1.0, %v2904_v56  ;;  %v2049_v33 = vmul.f32 0.5, %v2041_v42 }
 0x4d9   : > { %2709 = vmatprep.mubr.bf16.mxu1 %v2059_v46  ;;  %v2040_v61 = vadd.f32 1.0, %v2906_v3  ;;  %v2047_v38 = vmul.f32 0.5, %v2039_v21 }
 0x4da   : > { %2710 = vmatmul.mubr.bf16.vlgmr.msra.gmra.mrb[16].mxu1 %v2060_v22  ;;  %v2050_v16 = vmul.f32 0.5, %v2042_v24  ;;  %v2057_v53 = vmul.f32 %v2049_v33, %v3751_v51 }
 0x4db   : > { %v2048_v0 = vmul.f32 0.5, %v2040_v61  ;;  %v2055_v29 = vmul.f32 %v2047_v38, %v3754_v49 }
 0x4dc   : > { %v2058_v4 = vmul.f32 %v2050_v16, %v3759_v9 }
 0x4dd   : > { %v2056_v44 = vmul.f32 %v2048_v0, %v3764_v11 }
 0x4de   : > { %v2062_v1 = vpack.c.bf16 %v2058_v4, %v2057_v53 }
 0x4df   : > { %v2061_v40 = vpack.c.bf16 %v2056_v44, %v2055_v29 }
 0x4e1   : > { %2713 = vmatprep.mubr.bf16.mxu1 %v2061_v40 }
 0x4e2   : > { %2714 = vmatmul.mubr.bf16.gmra.mrb[20].mxu1 %v2062_v1 }
 0x5ad   : > { %v2711_v43 = vpop.f32.mrb[16].mxu1 }
 0x5ae   : > { %v2194_v51 = vadd.f32 %v2711_v43, %v3595_v15  ;;  %v2161_v37 = vpop.f32.mrb[17].mxu1 }
 0x5af   : > { %v2192_v9 = vadd.f32 %v2161_v37, %v3592_v47  ;;  %v2712_v49 = vpop.f32.mrb[18].mxu1 }
 0x5b0   : > { %v2209_v23 = vadd.f32 %v2466_v2, %v2194_v51  ;;  %v2195_v11 = vadd.f32 %v2712_v49, %v3603_v34  ;;  %v2164_v30 = vpop.f32.mrb[19].mxu1 }
 0x5b1   : > { %v2207_v25 = vadd.f32 %v2466_v2, %v2192_v9  ;;  %v2193_v52 = vadd.f32 %v2164_v30, %v3598_v8 }
 0x5b2   : > { %2217 = vst.msk [vmem:[%s379_s22 + $0x10] sm:$0xff] %vm396_vm0, %v2209_v23  ;;  %v2210_v55 = vadd.f32 %v2466_v2, %v2195_v11 }
 0x5b3   : > { %2215 = vst.msk [vmem:[%s379_s22] sm:$0xff] %vm396_vm0, %v2207_v25  ;;  %v2208_v26 = vadd.f32 %v2466_v2, %v2193_v52 }
 0x5b4   : > { %2218 = vst.msk [vmem:[%s379_s22 + $0x18] sm:$0xff] %vm396_vm0, %v2210_v55 }
 0x5b5   : > { %2216 = vst.msk [vmem:[%s379_s22 + $0x8] sm:$0xff] %vm396_vm0, %v2208_v26  ;;  %v2715_v47 = vpop.f32.mrb[20].mxu1 }
 0x5b6   : > { %v2198_v15 = vadd.f32 %v2715_v47, %v3615_v58  ;;  %v2177_v34 = vpop.f32.mrb[21].mxu1 }
 0x5b7   : > { %v2196_v62 = vadd.f32 %v2177_v34, %v3610_v5  ;;  %v2716_v60 = vpop.f32.mrb[22].mxu1 }
 0x5b8   : > { %v2213_v8 = vadd.f32 %v2466_v2, %v2198_v15  ;;  %v2199_v45 = vadd.f32 %v2716_v60, %v3623_v36  ;;  %v2180_v6 = vpop.f32.mrb[23].mxu1 }
 0x5b9   : > { %v2211_v32 = vadd.f32 %v2466_v2, %v2196_v62  ;;  %v2197_v12 = vadd.f32 %v2180_v6, %v3618_v48 }
 0x5ba   : > { %2221 = vst.msk [vmem:[%s379_s22 + $0x30] sm:$0xff] %vm396_vm0, %v2213_v8  ;;  %v2214_v7 = vadd.f32 %v2466_v2, %v2199_v45 }
 0x5bb   : > { %2219 = vst.msk [vmem:[%s379_s22 + $0x20] sm:$0xff] %vm396_vm0, %v2211_v32  ;;  %v2212_v5 = vadd.f32 %v2466_v2, %v2197_v12 }
 0x5bc   : > { %2222 = vst.msk [vmem:[%s379_s22 + $0x38] sm:$0xff] %vm396_vm0, %v2214_v7 }
 0x5bd   : > { %2220 = vst.msk [vmem:[%s379_s22 + $0x28] sm:$0xff] %vm396_vm0, %v2212_v5 }
 0x5be   : > { %2920 = shalt.err (!%p2917_p3)
}
 0x5bf   : > { %s2921_s13 = scalar_lea.hbm %s3809_s12, 1024  ;;  %s2925_s30 = scalar_lea.hbm %s3870_s11, 2048 }
 0x5c0   : > { %p2922_p4 = scmp.ne.s32.totalorder %s3809_s12, %s2921_s13  ;;  %p2926_p9 = scmp.lt.u32.totalorder %s3809_s12, %s3870_s11 }
 0x5c1   : > { %p2927_p10 = scmp.lt.u32.totalorder %s2925_s30, %s2921_s13  ;;  %p2929_p12 = scmp.lt.u32.totalorder %s2921_s13, %s3809_s12 }
 0x5c2   : > { %p2923_p7 = pnand %p2922_p4, %p3073_p5 }
 0x5c3   : > { %p2928_p11 = por %p2927_p10, %p2926_p9 }
 0x5c4   : > { %p2924_p8 = pneg %p2923_p7 }
 0x5c5   : > { %p2930_p13 = por %p2929_p12, %p2928_p11 }
 0x5c7   : > { %p2931_p0 = pnand %p2930_p13, %p2924_p8 }
 0x5c9   : > { %2934 = shalt.err (!%p2931_p0)
}
 0x5ca   : > { %s2973_s14 = smov 128   ;;  %s2974_s24 = smov 8  }
 0x5cb   : > { %2789 = dma.vmem_to_hbm [thread:$0]  (%p3073_p5), %s3811_s25, 1024, %s3809_s12, %s3818_s21, %s2973_s14, %s2973_s14, %s2974_s24  }
 0x5cc PF: > { %p2795_p1 = scmp.ge.s32.totalorder %s2969_s20, 2  ;;  %s2252_s22 = sand.u32 1, %s2957_s17  }
 0x5cd   : > { %s2253_s13 = scalar_lea.sflag [#allocation3], %s2252_s22 }
 0x5ce   : > { %p2792_p2 = pnand %p2795_p1, %p3077_p6 }
 0x5d0   : > { %2952 = dma.done.wait (!%p2792_p2), %s2253_s13, 1024  }
 0x5d1   : > { %2954 = vsyncadd (!%p2792_p2), %s2253_s13, 4294966272  ;;  %p21_p3 = scmp.ge.s32.totalorder %s3060_s23, 4   ;;  %s3877_s17 = smov %s2961_s18 }
 0x5d2   : > { %s3878_s18 = smov %s2965_s19  ;;  %s3879_s19 = smov %s3071_s26 }
 0x5d3   : > { %s3880_s20 = smov %s3060_s23  ;;  %23 = sbr.rel (!%p21_p3) target bundleno = 3 (0x3), region = 107 }
 0x5da   :  { %2258 = vsyncpa [#allocation3], 1 }
 0x5db   :  { %2260 = vsyncpa [#allocation3 + $0x1], 1 }

// kernel: conv_transformer_block.3
= control target key start
LH: loop header
LB: loop body
LE: loop exit
PB: predicated region body
PF: predicated region fallthrough
CT: control target
= control target key end

     0   :  { %s6107_s25 = smov 0   ;;  %s7334_s0 = inlined_call_operand.vmem [shape: f32[16,8,32], index: 0, kind: input, shape index: {}]   ;;  %s7335_s1 = inlined_call_operand.vmem [shape: f32[1,32], index: 1, kind: input, shape index: {}]   ;;  %s7336_s2 = inlined_call_operand.vmem [shape: f32[1,32], index: 2, kind: input, shape index: {}]   ;;  %s7337_s3 = inlined_call_operand.vmem [shape: bf16[32,96], index: 3, kind: input, shape index: {}]   ;;  %s7338_s4 = inlined_call_operand.vmem [shape: f32[1,96], index: 4, kind: input, shape index: {}]   ;;  %s7339_s5 = inlined_call_operand.vmem [shape: bf16[32,32], index: 5, kind: input, shape index: {}]   ;;  %s7340_s6 = inlined_call_operand.vmem [shape: f32[1,32], index: 6, kind: input, shape index: {}]   ;;  %s7341_s7 = inlined_call_operand.vmem [shape: f32[1,32], index: 7, kind: input, shape index: {}]   ;;  %s7342_s8 = inlined_call_operand.vmem [shape: f32[1,32], index: 8, kind: input, shape index: {}]   ;;  %s7343_s9 = inlined_call_operand.vmem [shape: bf16[32,128], index: 9, kind: input, shape index: {}]   ;;  %s7344_s10 = inlined_call_operand.vmem [shape: f32[1,128], index: 10, kind: input, shape index: {}]   ;;  %s7345_s11 = inlined_call_operand.vmem [shape: bf16[128,32], index: 11, kind: input, shape index: {}]   ;;  %s7346_s12 = inlined_call_operand.vmem [shape: f32[1,32], index: 12, kind: input, shape index: {}]   ;;  %s7347_s13 = inlined_call_operand.vmem [shape: f32[16,8,32], index: 13, kind: output, shape index: {}]  }
   0x1 LB: > { %s5020_s26 = sadd.s32 4294967295, %s6019_s25   ;;  %p5024_p0 = scmp.ge.s32.totalorder %s6019_s25, 1  ;;  %s6019_s25 = sphi %s6107_s25, %s23_s25  }
   0x2   : > { %p388_p1 = scmp.lt.s32.totalorder %s6019_s25, 3 }
   0x4   : > { %p389_p2 = pnand %p5024_p0, %p388_p1 }
   0x5   : > { %s5025_s27 = sshll.u32 (!%p389_p2), %s5020_s26, 3  ;;  %vm455_vm0 = vcmask (!%p389_p2), 261120   ;;  %v5815_v56 = vld [vmem:[%s7337_s3] sm:$0xff] (!%p389_p2)   ;;  %v5816_v57 = vld [vmem:[%s7337_s3 + $0x8] sm:$0xff] (!%p389_p2)   ;;  %vm6022_vm1 = vmmov (!%p389_p2), 0   ;;  %s6023_s26 = smov (!%p389_p2), 96  }
   0x6   : > { %392 = sbr.rel (%p389_p2) target bundleno = 4582 (0x11e6), region = 72  ;;  %p433_p3 = scmp.lt.s32.totalorder (!%p389_p2), %s5025_s27, 15  ;;  %5287 = vmatprep.subr.bf16.mxu1 (!%p389_p2), %v5815_v56  ;;  %vm712_vm2 = vcmask (!%p389_p2), 64512   ;;  %vm1211_vm3 = vcmask (!%p389_p2), 1043456   ;;  %vm4359_vm4 = vcmask (!%p389_p2), 130048   ;;  %vm4368_vm5 = vcmask (!%p389_p2), 195584  }
   0x7   : > { %5288 = vmatpush3.bf16.msra.mxu1 (!%p389_p2), %v5815_v56  ;;  %s6024_s29 = smov (!%p389_p2), 64   ;;  %s6025_s30 = smov (!%p389_p2), 88  }
   0x8   : > { %5289 = vmatprep.subr.bf16.mxu1 (!%p389_p2), %v5816_v57  ;;  %s6026_s15 = smov (!%p389_p2), 120   ;;  %s6027_s16 = smov (!%p389_p2), 56  }
   0x9   : > { %s6028_s17 = smov (!%p389_p2), 80   ;;  %s6029_s18 = smov (!%p389_p2), 112  }
   0xa   : > { %s6030_s19 = smov (!%p389_p2), 48   ;;  %s6031_s20 = smov (!%p389_p2), 72  }
   0xb   : > { %5290 = vmatpush3.bf16.msra.mxu1 (!%p389_p2), %v5816_v57  ;;  %s6032_s21 = smov (!%p389_p2), 104   ;;  %s6033_s22 = smov (!%p389_p2), 40  }
   0xc   : > { %s6034_s23 = smov (!%p389_p2), 8   ;;  %s6035_s24 = smov (!%p389_p2), 16  }
   0xd   : > { %s7349_s27 = smov (!%p433_p3, %s5025_s27), 15 }
   0xe   : > { %s5026_s28 = sshll.u32 %s7349_s27, 3 }
   0xf   : > { %s6123_s14 = scalar_lea.vmem %s7334_s0, %s5026_s28 }
  0x10   : > { %v445_v0 = vld [vmem:[%s6123_s14] sm:$0xff]  ;;  %v447_v1 = vld [vmem:[%s6123_s14 + $0x10] sm:$0xff]  ;;  %v446_v2 = vld [vmem:[%s6123_s14 + $0x8] sm:$0xff] }
  0x11   : > { %v456_v3 = vsel %vm455_vm0, %v445_v0, 0.0  ;;  %v462_v4 = vsel %vm455_vm0, %v447_v1, 0.0  ;;  %v448_v5 = vld [vmem:[%s6123_s14 + $0x18] sm:$0xff]  ;;  %v459_v6 = vsel %vm455_vm0, %v446_v2, 0.0  ;;  %v449_v7 = vld [vmem:[%s6123_s14 + $0x20] sm:$0xff]  ;;  %v450_v9 = vld [vmem:[%s6123_s14 + $0x28] sm:$0xff] }
  0x12   : > { %457 = vadd.xlane.f32.xlu0 %v456_v3  ;;  %463 = vadd.xlane.f32.xlu1 %v462_v4  ;;  %v465_v8 = vsel %vm455_vm0, %v448_v5, 0.0  ;;  %v468_v10 = vsel %vm455_vm0, %v449_v7, 0.0  ;;  %v471_v11 = vsel %vm455_vm0, %v450_v9, 0.0  ;;  %v451_v12 = vld [vmem:[%s6123_s14 + $0x30] sm:$0xff]  ;;  %v452_v13 = vld [vmem:[%s6123_s14 + $0x38] sm:$0xff] }
  0x13   : > { %v474_v14 = vsel %vm455_vm0, %v451_v12, 0.0  ;;  %v477_v15 = vsel %vm455_vm0, %v452_v13, 0.0 }
  0x16   : > { %460 = vadd.xlane.f32.xlu0 %v459_v6  ;;  %466 = vadd.xlane.f32.xlu1 %v465_v8 }
  0x1a   : > { %469 = vadd.xlane.f32.xlu0 %v468_v10  ;;  %472 = vadd.xlane.f32.xlu1 %v471_v11 }
  0x1e   : > { %475 = vadd.xlane.f32.xlu0 %v474_v14  ;;  %478 = vadd.xlane.f32.xlu1 %v477_v15 }
  0x9f   : > { %v458_v16 = vpop.xlane.xlu0 %457  ;;  %v464_v17 = vpop.xlane.xlu1 %463 }
  0xa0   : > { %v481_v18 = vmul.f32 0.03125, %v458_v16  ;;  %v483_v19 = vmul.f32 0.03125, %v464_v17 }
  0xa2   : > { %v6141_v20 = vsub.f32 %v445_v0, %v481_v18  ;;  %v6143_v21 = vsub.f32 %v447_v1, %v483_v19  ;;  %v5029_v19 = vld [vmem:[%s7335_s1] ss:$0 sm:$0xff] }
  0xa3   : > { %v461_v22 = vpop.xlane.xlu0 %460  ;;  %v467_v23 = vpop.xlane.xlu1 %466 }
  0xa4   : > { %v482_v24 = vmul.f32 0.03125, %v461_v22  ;;  %v484_v25 = vmul.f32 0.03125, %v467_v23  ;;  %v497_v26 = vmul.f32 %v6141_v20, %v6141_v20  ;;  %v499_v27 = vmul.f32 %v6143_v21, %v6143_v21 }
  0xa6   : > { %v6149_v28 = vsub.f32 %v446_v2, %v482_v24  ;;  %v6151_v29 = vsub.f32 %v448_v5, %v484_v25  ;;  %v505_v30 = vsel %vm455_vm0, %v497_v26, 0.0  ;;  %v511_v33 = vsel %vm455_vm0, %v499_v27, 0.0  ;;  %v5030_v27 = vld [vmem:[%s7336_s2] ss:$0 sm:$0xff] }
  0xa7   : > { %506 = vadd.xlane.f32.xlu0 %v505_v30  ;;  %v470_v31 = vpop.xlane.xlu0 %469  ;;  %v473_v32 = vpop.xlane.xlu1 %472 }
  0xa8   : > { %v485_v34 = vmul.f32 0.03125, %v470_v31  ;;  %v486_v35 = vmul.f32 0.03125, %v473_v32  ;;  %v498_v36 = vmul.f32 %v6149_v28, %v6149_v28  ;;  %v500_v37 = vmul.f32 %v6151_v29, %v6151_v29 }
  0xaa   : > { %v6159_v38 = vsub.f32 %v449_v7, %v485_v34  ;;  %v6161_v39 = vsub.f32 %v450_v9, %v486_v35  ;;  %v508_v40 = vsel %vm455_vm0, %v498_v36, 0.0  ;;  %v514_v43 = vsel %vm455_vm0, %v500_v37, 0.0 }
  0xab   : > { %512 = vadd.xlane.f32.xlu0 %v511_v33  ;;  %509 = vadd.xlane.f32.xlu1 %v508_v40  ;;  %v476_v41 = vpop.xlane.xlu0 %475  ;;  %v479_v42 = vpop.xlane.xlu1 %478 }
  0xac   : > { %v487_v44 = vmul.f32 0.03125, %v476_v41  ;;  %v488_v45 = vmul.f32 0.03125, %v479_v42  ;;  %v501_v46 = vmul.f32 %v6159_v38, %v6159_v38  ;;  %v502_v47 = vmul.f32 %v6161_v39, %v6161_v39 }
  0xae   : > { %v6169_v48 = vsub.f32 %v451_v12, %v487_v44  ;;  %v6171_v49 = vsub.f32 %v452_v13, %v488_v45  ;;  %v517_v50 = vsel %vm455_vm0, %v501_v46, 0.0  ;;  %v520_v51 = vsel %vm455_vm0, %v502_v47, 0.0 }
  0xaf   : > { %515 = vadd.xlane.f32.xlu1 %v514_v43  ;;  %518 = vadd.xlane.f32.xlu0 %v517_v50 }
  0xb0   : > { %v503_v52 = vmul.f32 %v6169_v48, %v6169_v48  ;;  %v504_v53 = vmul.f32 %v6171_v49, %v6171_v49 }
  0xb2   : > { %v523_v54 = vsel %vm455_vm0, %v503_v52, 0.0  ;;  %v526_v55 = vsel %vm455_vm0, %v504_v53, 0.0 }
  0xb3   : > { %521 = vadd.xlane.f32.xlu1 %v520_v51  ;;  %524 = vadd.xlane.f32.xlu0 %v523_v54 }
  0xb7   : > { %527 = vadd.xlane.f32.xlu1 %v526_v55 }
 0x134   : > { %v507_v58 = vpop.xlane.xlu0 %506 }
 0x135   : > { %v529_v59 = vmul.f32 0.03125, %v507_v58  ;;  %v5031_v58 = vld [vmem:[%s7338_s4] ss:$0 sm:$0xff] }
 0x137   : > { %v537_v60 = vadd.f32 1e-05, %v529_v59 }
 0x138   : > { %v510_v61 = vpop.xlane.xlu1 %509  ;;  %v513_v62 = vpop.xlane.xlu0 %512 }
 0x139   : > { %5829 = vrsqrt.f32 %v537_v60  ;;  %v530_v63 = vmul.f32 0.03125, %v510_v61  ;;  %v531_v0 = vmul.f32 0.03125, %v513_v62 }
 0x13b   : > { %v538_v1 = vadd.f32 1e-05, %v530_v63  ;;  %v539_v2 = vadd.f32 1e-05, %v531_v0 }
 0x13c   : > { %v516_v3 = vpop.xlane.xlu1 %515  ;;  %v519_v4 = vpop.xlane.xlu0 %518 }
 0x13d   : > { %5831 = vrsqrt.f32 %v538_v1  ;;  %v532_v5 = vmul.f32 0.03125, %v516_v3  ;;  %v533_v6 = vmul.f32 0.03125, %v519_v4 }
 0x13e   : > { %5833 = vrsqrt.f32 %v539_v2 }
 0x13f   : > { %v540_v7 = vadd.f32 1e-05, %v532_v5  ;;  %v541_v8 = vadd.f32 1e-05, %v533_v6 }
 0x140   : > { %v522_v9 = vpop.xlane.xlu1 %521  ;;  %v525_v10 = vpop.xlane.xlu0 %524 }
 0x141   : > { %5835 = vrsqrt.f32 %v540_v7  ;;  %v534_v11 = vmul.f32 0.03125, %v522_v9  ;;  %v535_v12 = vmul.f32 0.03125, %v525_v10 }
 0x142   : > { %5837 = vrsqrt.f32 %v541_v8 }
 0x143   : > { %v5830_v13 = vpop.eup %5829  ;;  %v542_v14 = vadd.f32 1e-05, %v534_v11  ;;  %v543_v15 = vadd.f32 1e-05, %v535_v12 }
 0x144   : > { %v528_v16 = vpop.xlane.xlu1 %527  ;;  %v553_v17 = vmul.f32 %v5830_v13, %v6141_v20 }
 0x145   : > { %5839 = vrsqrt.f32 %v542_v14  ;;  %v536_v18 = vmul.f32 0.03125, %v528_v16 }
 0x146   : > { %5841 = vrsqrt.f32 %v543_v15  ;;  %v567_v26 = vmul.f32 %v5029_v19, %v553_v17 }
 0x147   : > { %v5832_v22 = vpop.eup %5831  ;;  %v544_v23 = vadd.f32 1e-05, %v536_v18 }
 0x148   : > { %v5834_v24 = vpop.eup %5833  ;;  %v554_v25 = vmul.f32 %v5832_v22, %v6149_v28  ;;  %v581_v33 = vadd.f32 %v5030_v27, %v567_v26 }
 0x149   : > { %5843 = vrsqrt.f32 %v544_v23  ;;  %v555_v20 = vmul.f32 %v5834_v24, %v6143_v21 }
 0x14a   : > { %v568_v30 = vmul.f32 %v5029_v19, %v554_v25 }
 0x14b   : > { %v5836_v31 = vpop.eup %5835  ;;  %v569_v36 = vmul.f32 %v5029_v19, %v555_v20 }
 0x14c   : > { %v5838_v32 = vpop.eup %5837  ;;  %v582_v34 = vadd.f32 %v5030_v27, %v568_v30  ;;  %v556_v35 = vmul.f32 %v5836_v31, %v6151_v29 }
 0x14d   : > { %v557_v37 = vmul.f32 %v5838_v32, %v6159_v38  ;;  %v583_v43 = vadd.f32 %v5030_v27, %v569_v36 }
 0x14e   : > { %v589_v40 = vpack.c.bf16 %v582_v34, %v581_v33  ;;  %v570_v28 = vmul.f32 %v5029_v19, %v556_v35 }
 0x14f   : > { %v5840_v41 = vpop.eup %5839  ;;  %v571_v45 = vmul.f32 %v5029_v19, %v557_v37 }
 0x150   : > { %v5842_v42 = vpop.eup %5841  ;;  %5291 = vmatprep.mubr.msk.bf16.mxu1 %vm455_vm0, %v589_v40  ;;  %v584_v44 = vadd.f32 %v5030_v27, %v570_v28  ;;  %v558_v21 = vmul.f32 %v5840_v41, %v6161_v39 }
 0x151   : > { %v559_v46 = vmul.f32 %v5842_v42, %v6169_v48  ;;  %v585_v29 = vadd.f32 %v5030_v27, %v571_v45  ;;  %v6021_v48 = vmov 0.0  }
 0x152   : > { %v590_v47 = vpack.c.bf16 %v584_v44, %v583_v43  ;;  %v572_v50 = vmul.f32 %v5029_v19, %v558_v21  ;;  %5299 = vmatprep.subr.bf16.mxu1 %v6021_v48  ;;  %5311 = vmatprep.subr.bf16.mxu0 %v6021_v48 }
 0x153   : > { %v5844_v51 = vpop.eup %5843  ;;  %v573_v53 = vmul.f32 %v5029_v19, %v559_v46  ;;  %5313 = vmatprep.mubr.msk.bf16.mxu0 %vm6022_vm1, %v6021_v48 }
 0x154   : > { %5292 = vmatmul.mubr.msk.bf16.vlgmr.msra.gmra.mrb[0].mxu1 %vm455_vm0, %v590_v47  ;;  %v586_v38 = vadd.f32 %v5030_v27, %v572_v50  ;;  %v560_v52 = vmul.f32 %v5844_v51, %v6171_v49 }
 0x155   : > { %v587_v56 = vadd.f32 %v5030_v27, %v573_v53 }
 0x156   : > { %v591_v54 = vpack.c.bf16 %v586_v38, %v585_v29  ;;  %v574_v55 = vmul.f32 %v5029_v19, %v560_v52 }
 0x158   : > { %5295 = vmatprep.mubr.msk.bf16.mxu1 %vm455_vm0, %v591_v54  ;;  %v588_v57 = vadd.f32 %v5030_v27, %v574_v55 }
 0x15a   : > { %v592_v39 = vpack.c.bf16 %v588_v57, %v587_v56 }
 0x15c   : > { %5296 = vmatmul.mubr.msk.bf16.gmra.mrb[4].mxu1 %vm455_vm0, %v592_v39 }
 0x15d   : > { %5301 = vmatprep.mubr.msk.bf16.mxu1 %vm6022_vm1, %v6021_v48 }
 0x227   : > { %v5293_v49 = vpop.f32.mrb[0].mxu1 }
 0x228   : > { %v662_v59 = vpop.f32.mrb[1].mxu1  ;;  %v671_v1 = vadd.f32 %v5293_v49, %v5031_v58 }
 0x229   : > { %v663_v60 = vadd.f32 %v5031_v58, %v662_v59  ;;  %v5294_v61 = vpop.f32.mrb[2].mxu1 }
 0x22a   : > { %v665_v62 = vpop.f32.mrb[3].mxu1  ;;  %v6220_v5 = vpack.c.bf16 %v671_v1, %v671_v1  ;;  %v674_v6 = vadd.f32 %v5294_v61, %v5031_v58 }
 0x22b   : > { %v6214_v63 = vpack.c.bf16 %v663_v60, %v663_v60  ;;  %v666_v0 = vadd.f32 %v5031_v58, %v665_v62 }
 0x22c   : > { %v6225_v12 = vpack.c.bf16 %v674_v6, %v674_v6 }
 0x22d   : > { %v6216_v2 = vpack.c.bf16 %v666_v0, %v666_v0  ;;  %710 = vrot.lane.b32.xlu0 %v6214_v63, %s6023_s26 }
 0x22f   : > { %760 = vrot.lane.b32.xlu1 %v6216_v2, %s6023_s26  ;;  %v5297_v3 = vpop.f32.mrb[4].mxu1 }
 0x230   : > { %v678_v4 = vpop.f32.mrb[5].mxu1  ;;  %v687_v10 = vadd.f32 %v5297_v3, %v5031_v58 }
 0x231   : > { %v679_v7 = vadd.f32 %v5031_v58, %v678_v4  ;;  %v5298_v8 = vpop.f32.mrb[6].mxu1 }
 0x232   : > { %v681_v9 = vpop.f32.mrb[7].mxu1  ;;  %v6228_v14 = vpack.c.bf16 %v687_v10, %v687_v10  ;;  %v690_v15 = vadd.f32 %v5298_v8, %v5031_v58 }
 0x233   : > { %v6222_v11 = vpack.c.bf16 %v679_v7, %v679_v7  ;;  %809 = vrot.lane.b32.xlu1 %v6220_v5, %s6023_s26  ;;  %v682_v13 = vadd.f32 %v5031_v58, %v681_v9 }
 0x234   : > { %v6235_v17 = vpack.c.bf16 %v690_v15, %v690_v15 }
 0x235   : > { %907 = vrot.lane.b32.xlu0 %v6222_v11, %s6023_s26  ;;  %v6231_v16 = vpack.c.bf16 %v682_v13, %v682_v13 }
 0x237   : > { %858 = vrot.lane.b32.xlu1 %v6225_v12, %s6023_s26 }
 0x239   : > { %1005 = vrot.lane.b32.xlu0 %v6228_v14, %s6023_s26 }
 0x23b   : > { %956 = vrot.lane.b32.xlu1 %v6231_v16, %s6023_s26 }
 0x23d   : > { %1206 = vrot.lane.b32.xlu0 %v6214_v63, %s6024_s29 }
 0x23f   : > { %1054 = vrot.lane.b32.xlu1 %v6235_v17, %s6023_s26 }
 0x243   : > { %1255 = vrot.lane.b32.xlu1 %v6216_v2, %s6024_s29 }
 0x247   : > { %1303 = vrot.lane.b32.xlu1 %v6220_v5, %s6024_s29 }
 0x24b   : > { %1351 = vrot.lane.b32.xlu1 %v6225_v12, %s6024_s29 }
 0x29f   : > { %v711_v18 = vpop.permute.xlu0 %710 }
 0x2a0   : > { %v717_v19 = vsel %vm712_vm2, %v711_v18, 0 }
 0x2a1   : > { %v761_v22 = vpop.permute.xlu1 %760  ;;  %5300 = vmatpush3.bf16.xpose.msra.mxu1 %v717_v19 }
 0x2a2   : > { %5305 = vmatprep.subr.bf16.mxu1 %v6021_v48  ;;  %v766_v25 = vsel %vm712_vm2, %v761_v22, 0 }
 0x2a5   : > { %v810_v23 = vpop.permute.xlu1 %809 }
 0x2a6   : > { %v815_v24 = vsel %vm712_vm2, %v810_v23, 0 }
 0x2a7   : > { %5312 = vmatpush3.bf16.xpose.msra.mxu0 %v815_v24  ;;  %v908_v26 = vpop.permute.xlu0 %907 }
 0x2a8   : > { %5302 = vmatmul.mubr.msk.bf16.vlgmr.msra.gmra.mrb[8].mxu1 %vm712_vm2, %v6214_v63  ;;  %5323 = vmatprep.subr.bf16.mxu0 %v6021_v48  ;;  %v913_v20 = vsel %vm712_vm2, %v908_v26, 0 }
 0x2a9   : > { %5306 = vmatpush3.bf16.xpose.msra.mxu1 %v766_v25  ;;  %5307 = vmatprep.mubr.msk.bf16.mxu1 %vm6022_vm1, %v6021_v48  ;;  %v859_v27 = vpop.permute.xlu1 %858 }
 0x2aa   : > { %5317 = vmatprep.subr.bf16.mxu1 %v6021_v48  ;;  %v864_v30 = vsel %vm712_vm2, %v859_v27, 0 }
 0x2ab   : > { %v1006_v31 = vpop.permute.xlu0 %1005 }
 0x2ac   : > { %v1011_v33 = vsel %vm712_vm2, %v1006_v31, 0 }
 0x2ad   : > { %v957_v32 = vpop.permute.xlu1 %956 }
 0x2ae   : > { %5314 = vmatmul.mubr.msk.bf16.vlgmr.msra.gmra.mrb[0].mxu0 %vm712_vm2, %v6220_v5  ;;  %v962_v34 = vsel %vm712_vm2, %v957_v32, 0 }
 0x2af   : > { %5324 = vmatpush3.bf16.xpose.msra.mxu0 %v913_v20  ;;  %5325 = vmatprep.mubr.msk.bf16.mxu0 %vm6022_vm1, %v6021_v48  ;;  %v1207_v35 = vpop.permute.xlu0 %1206 }
 0x2b0   : > { %5308 = vmatmul.mubr.msk.bf16.vlgmr.msra.gmra.mrb[12].mxu1 %vm712_vm2, %v6216_v2  ;;  %5335 = vmatprep.subr.bf16.mxu0 %v6021_v48  ;;  %v1213_v37 = vsel %vm1211_vm3, %v1207_v35, 0 }
 0x2b1   : > { %5318 = vmatpush3.bf16.xpose.msra.mxu1 %v864_v30  ;;  %5319 = vmatprep.mubr.msk.bf16.mxu1 %vm6022_vm1, %v6021_v48  ;;  %v1055_v36 = vpop.permute.xlu1 %1054 }
 0x2b2   : > { %5329 = vmatprep.subr.bf16.mxu1 %v6021_v48  ;;  %v1060_v40 = vsel %vm712_vm2, %v1055_v36, 0 }
 0x2b5   : > { %v1256_v28 = vpop.permute.xlu1 %1255 }
 0x2b6   : > { %5326 = vmatmul.mubr.msk.bf16.vlgmr.msra.gmra.mrb[4].mxu0 %vm712_vm2, %v6222_v11  ;;  %v1261_v41 = vsel %vm1211_vm3, %v1256_v28, 0 }
 0x2b7   : > { %5336 = vmatpush3.bf16.xpose.msra.mxu0 %v1011_v33  ;;  %5337 = vmatprep.mubr.msk.bf16.mxu0 %vm6022_vm1, %v6021_v48 }
 0x2b8   : > { %5320 = vmatmul.mubr.msk.bf16.vlgmr.msra.gmra.mrb[16].mxu1 %vm712_vm2, %v6225_v12  ;;  %5347 = vmatprep.subr.bf16.mxu0 %v6021_v48 }
 0x2b9   : > { %5330 = vmatpush3.bf16.xpose.msra.mxu1 %v962_v34  ;;  %5331 = vmatprep.mubr.msk.bf16.mxu1 %vm6022_vm1, %v6021_v48  ;;  %v6322_v34 = vpop.permute.xlu1 %1303 }
 0x2ba   : > { %5341 = vmatprep.subr.bf16.mxu1 %v6021_v48 }
 0x2bd   : > { %v6324_v35 = vpop.permute.xlu1 %1351 }
 0x2be   : > { %5338 = vmatmul.mubr.msk.bf16.vlgmr.msra.gmra.mrb[8].mxu0 %vm712_vm2, %v6228_v14 }
 0x2bf   : > { %5348 = vmatpush3.bf16.msra.mxu0 %v1213_v37  ;;  %5349 = vmatprep.mubr.msk.bf16.mxu0 %vm6022_vm1, %v6021_v48 }
 0x2c0   : > { %5332 = vmatmul.mubr.msk.bf16.vlgmr.msra.gmra.mrb[20].mxu1 %vm712_vm2, %v6231_v16  ;;  %5359 = vmatprep.subr.bf16.mxu0 %v6021_v48 }
 0x2c1   : > { %5342 = vmatpush3.bf16.xpose.msra.mxu1 %v1060_v40  ;;  %5343 = vmatprep.mubr.msk.bf16.mxu1 %vm6022_vm1, %v6021_v48 }
 0x2c2   : > { %5353 = vmatprep.subr.bf16.mxu1 %v6021_v48 }
 0x2c8   : > { %5344 = vmatmul.mubr.msk.bf16.vlgmr.msra.gmra.mrb[24].mxu1 %vm712_vm2, %v6235_v17 }
 0x2c9   : > { %5354 = vmatpush3.bf16.msra.mxu1 %v1261_v41  ;;  %5355 = vmatprep.mubr.msk.bf16.mxu1 %vm6022_vm1, %v6021_v48 }
 0x2ca   : > { %5365 = vmatprep.subr.bf16.mxu1 %v6021_v48 }
 0x37b   : > { %v753_v42 = vpop.f32.mrb[8].mxu1 }
 0x37c   : > { %v5303_v43 = vpop.f32.mrb[9].mxu1  ;;  %v6298_v50 = vmul.f32 0.35355338, %v753_v42 }
 0x37d   : > { %v756_v44 = vpop.f32.mrb[10].mxu1 }
 0x37e   : > { %v5304_v21 = vpop.f32.mrb[11].mxu1  ;;  %v1110_v39 = vsel %vm712_vm2, %v6298_v50, -inf }
 0x381   : > { %v851_v45 = vpop.f32.mrb[0].mxu0 }
 0x382   : > { %v1104_v46 = vmul.f32 0.35355338, %v851_v45  ;;  %v5315_v47 = vpop.f32.mrb[1].mxu0 }
 0x383   : > { %v802_v51 = vpop.f32.mrb[12].mxu1  ;;  %v854_v29 = vpop.f32.mrb[2].mxu0 }
 0x384   : > { %v1103_v38 = vmul.f32 0.35355338, %v802_v51  ;;  %v5309_v52 = vpop.f32.mrb[13].mxu1  ;;  %v5316_v53 = vpop.f32.mrb[3].mxu0  ;;  %v1116_v54 = vsel %vm712_vm2, %v1104_v46, -inf }
 0x385   : > { %1117 = vmax.xlane.f32.xlu0 %v1116_v54  ;;  %v805_v55 = vpop.f32.mrb[14].mxu1 }
 0x386   : > { %v5310_v56 = vpop.f32.mrb[15].mxu1  ;;  %v1113_v57 = vsel %vm712_vm2, %v1103_v38, -inf }
 0x387   : > { %1114 = vmax.xlane.f32.xlu1 %v1113_v57 }
 0x389   : > { %1111 = vmax.xlane.f32.xlu0 %v1110_v39  ;;  %v949_v58 = vpop.f32.mrb[4].mxu0 }
 0x38a   : > { %v1106_v49 = vmul.f32 0.35355338, %v949_v58  ;;  %v5327_v59 = vpop.f32.mrb[5].mxu0 }
 0x38b   : > { %v900_v60 = vpop.f32.mrb[16].mxu1  ;;  %v952_v61 = vpop.f32.mrb[6].mxu0 }
 0x38c   : > { %v6304_v62 = vmul.f32 0.35355338, %v900_v60  ;;  %v5321_v0 = vpop.f32.mrb[17].mxu1  ;;  %v5328_v1 = vpop.f32.mrb[7].mxu0  ;;  %v1122_v3 = vsel %vm712_vm2, %v1106_v49, -inf }
 0x38d   : > { %v903_v4 = vpop.f32.mrb[18].mxu1  ;;  %1123 = vmax.xlane.f32.xlu0 %v1122_v3 }
 0x38e   : > { %v5322_v6 = vpop.f32.mrb[19].mxu1  ;;  %v1119_v7 = vsel %vm712_vm2, %v6304_v62, -inf }
 0x391   : > { %1120 = vmax.xlane.f32.xlu0 %v1119_v7  ;;  %v1047_v8 = vpop.f32.mrb[8].mxu0 }
 0x392   : > { %v6309_v9 = vmul.f32 0.35355338, %v1047_v8  ;;  %v5339_v10 = vpop.f32.mrb[9].mxu0 }
 0x393   : > { %v998_v13 = vpop.f32.mrb[20].mxu1  ;;  %v1050_v15 = vpop.f32.mrb[10].mxu0 }
 0x394   : > { %v5333_v18 = vpop.f32.mrb[21].mxu1  ;;  %v5340_v19 = vpop.f32.mrb[11].mxu0  ;;  %v1128_v22 = vsel %vm712_vm2, %v6309_v9, -inf  ;;  %v1107_v30 = vmul.f32 0.35355338, %v998_v13 }
 0x395   : > { %v1001_v23 = vpop.f32.mrb[22].mxu1  ;;  %1129 = vmax.xlane.f32.xlu0 %v1128_v22 }
 0x396   : > { %v5334_v24 = vpop.f32.mrb[23].mxu1  ;;  %v1125_v32 = vsel %vm712_vm2, %v1107_v30, -inf }
 0x398   : > { %1447 = vrot.lane.b32.xlu1 %v6231_v16, %s6024_s29 }
 0x39b   : > { %v1096_v25 = vpop.f32.mrb[24].mxu1 }
 0x39c   : > { %v5345_v26 = vpop.f32.mrb[25].mxu1  ;;  %v6317_v31 = vmul.f32 0.35355338, %v1096_v25 }
 0x39d   : > { %v1099_v27 = vpop.f32.mrb[26].mxu1 }
 0x39e   : > { %v5346_v20 = vpop.f32.mrb[27].mxu1  ;;  %v1131_v33 = vsel %vm712_vm2, %v6317_v31, -inf }
 0x3ab   : > { %1399 = vrot.lane.b32.xlu0 %v6222_v11, %s6024_s29 }
 0x3bc   : > { %1126 = vmax.xlane.f32.xlu1 %v1125_v32  ;;  %v1357_v32 = vsel %vm1211_vm3, %v6324_v35, 0 }
 0x3c0   : > { %1132 = vmax.xlane.f32.xlu1 %v1131_v33 }
 0x412   : > { %v1118_v36 = vpop.xlane.xlu0 %1117 }
 0x413   : > { %v1136_v37 = vsub.f32 %v1104_v46, %v1118_v36 }
 0x414   : > { %v1115_v40 = vpop.xlane.xlu1 %1114 }
 0x415   : > { %v1146_v28 = vmul.f32 1.442695, %v1136_v37  ;;  %v1135_v41 = vsub.f32 %v1103_v38, %v1115_v40  ;;  %v1309_v37 = vsel %vm1211_vm3, %v6322_v34, 0 }
 0x416   : > { %v1112_v42 = vpop.xlane.xlu0 %1111 }
 0x417   : > { %5845 = vpow2.f32 %v1146_v28  ;;  %v1144_v43 = vmul.f32 1.442695, %v1135_v41  ;;  %v1134_v44 = vsub.f32 %v6298_v50, %v1112_v42 }
 0x418   : > { %v6348_v39 = vpop.permute.xlu1 %1447 }
 0x419   : > { %5847 = vpow2.f32 %v1144_v43  ;;  %v1142_v21 = vmul.f32 1.442695, %v1134_v44 }
 0x41a   : > { %v1124_v45 = vpop.xlane.xlu0 %1123 }
 0x41b   : > { %5849 = vpow2.f32 %v1142_v21  ;;  %v1138_v47 = vsub.f32 %v1106_v49, %v1124_v45 }
 0x41d   : > { %v1150_v51 = vmul.f32 1.442695, %v1138_v47 }
 0x41e   : > { %v1121_v56 = vpop.xlane.xlu0 %1120 }
 0x41f   : > { %5851 = vpow2.f32 %v1150_v51  ;;  %v1137_v57 = vsub.f32 %v6304_v62, %v1121_v56 }
 0x421   : > { %v6327_v29 = vpop.eup %5845  ;;  %v1148_v49 = vmul.f32 1.442695, %v1137_v57 }
 0x422   : > { %v1164_v46 = vsel %vm712_vm2, %v6327_v29, 0.0  ;;  %v1130_v58 = vpop.xlane.xlu0 %1129 }
 0x423   : > { %v6331_v52 = vpop.eup %5847  ;;  %1165 = vadd.xlane.f32.xlu0 %v1164_v46  ;;  %v1140_v60 = vsub.f32 %v6309_v9, %v1130_v58  ;;  %5853 = vpow2.f32 %v1148_v49 }
 0x424   : > { %v1161_v38 = vsel %vm712_vm2, %v6331_v52, 0.0 }
 0x425   : > { %v6335_v53 = vpop.eup %5849  ;;  %1162 = vadd.xlane.f32.xlu1 %v1161_v38  ;;  %v1154_v1 = vmul.f32 1.442695, %v1140_v60 }
 0x426   : > { %v1158_v50 = vsel %vm712_vm2, %v6335_v53, 0.0  ;;  %v1400_v19 = vpop.permute.xlu0 %1399 }
 0x427   : > { %1159 = vadd.xlane.f32.xlu0 %v1158_v50  ;;  %v1405_v28 = vsel %vm1211_vm3, %v1400_v19, 0 }
 0x429   : > { %v6339_v54 = vpop.eup %5851 }
 0x42a   : > { %v1170_v55 = vsel %vm712_vm2, %v6339_v54, 0.0 }
 0x42b   : > { %1171 = vadd.xlane.f32.xlu0 %v1170_v55 }
 0x42d   : > { %v6351_v3 = vpop.eup %5853 }
 0x42e   : > { %v1167_v4 = vsel %vm712_vm2, %v6351_v3, 0.0 }
 0x436   : > { %1543 = vrot.lane.b32.xlu1 %v6235_v17, %s6024_s29 }
 0x441   : > { %1495 = vrot.lane.b32.xlu0 %v6228_v14, %s6024_s29 }
 0x449   : > { %v1127_v59 = vpop.xlane.xlu1 %1126 }
 0x44a   : > { %v1139_v61 = vsub.f32 %v1107_v30, %v1127_v59 }
 0x44c   : > { %v1152_v0 = vmul.f32 1.442695, %v1139_v61 }
 0x44d   : > { %v1133_v9 = vpop.xlane.xlu1 %1132 }
 0x44e   : > { %5855 = vpow2.f32 %v1152_v0  ;;  %v1141_v10 = vsub.f32 %v6317_v31, %v1133_v9 }
 0x44f   : > { %5857 = vpow2.f32 %v1154_v1 }
 0x450   : > { %v1156_v13 = vmul.f32 1.442695, %v1141_v10 }
 0x452   : > { %5859 = vpow2.f32 %v1156_v13 }
 0x458   : > { %v6355_v6 = vpop.eup %5855 }
 0x459   : > { %v6357_v62 = vpop.eup %5857  ;;  %v1173_v7 = vsel %vm712_vm2, %v6355_v6, 0.0 }
 0x45a   : > { %1168 = vadd.xlane.f32.xlu1 %v1167_v4  ;;  %v1176_v8 = vsel %vm712_vm2, %v6357_v62, 0.0 }
 0x45c   : > { %v6377_v15 = vpop.eup %5859 }
 0x45d   : > { %v1179_v18 = vsel %vm712_vm2, %v6377_v15, 0.0 }
 0x45e   : > { %1174 = vadd.xlane.f32.xlu1 %v1173_v7 }
 0x460   : > { %1177 = vadd.xlane.f32.xlu0 %v1176_v8 }
 0x46f   : > { %1643 = vrot.lane.b32.xlu1 %v6216_v2, %s6025_s30 }
 0x476   : > { %1593 = vrot.lane.b32.xlu0 %v6214_v63, %s6025_s30 }
 0x47a   : > { %1591 = vrot.lane.b32.xlu0 %v6214_v63, %s6026_s15 }
 0x47e   : > { %1693 = vrot.lane.b32.xlu0 %v6220_v5, %s6025_s30 }
 0x482   : > { %1691 = vrot.lane.b32.xlu0 %v6220_v5, %s6026_s15 }
 0x486   : > { %1793 = vrot.lane.b32.xlu0 %v6222_v11, %s6025_s30 }
 0x48a   : > { %1791 = vrot.lane.b32.xlu0 %v6222_v11, %s6026_s15 }
 0x48e   : > { %1893 = vrot.lane.b32.xlu0 %v6228_v14, %s6025_s30 }
 0x492   : > { %1891 = vrot.lane.b32.xlu0 %v6228_v14, %s6026_s15 }
 0x493   : > { %1180 = vadd.xlane.f32.xlu1 %v1179_v18 }
 0x496   : > { %2095 = vrot.lane.b32.xlu0 %v6214_v63, %s6027_s16 }
 0x4a4   : > { %1641 = vrot.lane.b32.xlu1 %v6216_v2, %s6026_s15 }
 0x4a8   : > { %1743 = vrot.lane.b32.xlu1 %v6225_v12, %s6025_s30 }
 0x4ac   : > { %1741 = vrot.lane.b32.xlu1 %v6225_v12, %s6026_s15 }
 0x4b0   : > { %1843 = vrot.lane.b32.xlu1 %v6231_v16, %s6025_s30  ;;  %v1166_v22 = vpop.xlane.xlu0 %1165 }
 0x4b2   : > { %v1163_v23 = vpop.xlane.xlu1 %1162 }
 0x4b3   : > { %5861 = vrcp.f32 %v1163_v23 }
 0x4b4   : > { %1841 = vrot.lane.b32.xlu1 %v6231_v16, %s6026_s15  ;;  %v1160_v24 = vpop.xlane.xlu0 %1159 }
 0x4b5   : > { %5863 = vrcp.f32 %v1160_v24 }
 0x4b6   : > { %5865 = vrcp.f32 %v1166_v22  ;;  %v1544_v21 = vpop.permute.xlu1 %1543 }
 0x4b7   : > { %v1549_v61 = vsel %vm1211_vm3, %v1544_v21, 0 }
 0x4b8   : > { %1943 = vrot.lane.b32.xlu1 %v6235_v17, %s6025_s30  ;;  %v1172_v26 = vpop.xlane.xlu0 %1171  ;;  %s6036_s30 = smov 24  }
 0x4b9   : > { %5867 = vrcp.f32 %v1172_v26 }
 0x4bc   : > { %1941 = vrot.lane.b32.xlu1 %v6235_v17, %s6026_s15  ;;  %v1496_v42 = vpop.permute.xlu0 %1495 }
 0x4bd   : > { %v5862_v25 = vpop.eup %5861  ;;  %v1501_v44 = vsel %vm1211_vm3, %v1496_v42, 0 }
 0x4be   : > { %v1191_v27 = vmul.f32 %v5862_v25, %v6331_v52 }
 0x4bf   : > { %v5864_v20 = vpop.eup %5863 }
 0x4c0   : > { %2143 = vrot.lane.b32.xlu1 %v6216_v2, %s6027_s16  ;;  %v1199_v30 = vpack.c.bf16 %v1191_v27, %v1191_v27  ;;  %v1190_v31 = vmul.f32 %v5864_v20, %v6335_v53  ;;  %v5866_v36 = vpop.eup %5865 }
 0x4c1   : > { %v1192_v35 = vmul.f32 %v5866_v36, %v6327_v29 }
 0x4c2   : > { %5356 = vmatmul.mubr.msk.bf16.vlgmr.msra.gmra.mrb[28].mxu1 %vm712_vm2, %v1199_v30  ;;  %v1198_v33 = vpack.c.bf16 %v1190_v31, %v1190_v31 }
 0x4c3   : > { %5366 = vmatpush3.bf16.msra.mxu1 %v1357_v32  ;;  %5367 = vmatprep.mubr.msk.bf16.mxu1 %vm6022_vm1, %v6021_v48  ;;  %v1200_v40 = vpack.c.bf16 %v1192_v35, %v1192_v35  ;;  %v5868_v34 = vpop.eup %5867 }
 0x4c4   : > { %2191 = vrot.lane.b32.xlu1 %v6220_v5, %s6027_s16  ;;  %5350 = vmatmul.mubr.msk.bf16.vlgmr.msra.gmra.mrb[12].mxu0 %vm712_vm2, %v1198_v33  ;;  %v1194_v41 = vmul.f32 %v5868_v34, %v6339_v54  ;;  %v1453_v54 = vsel %vm1211_vm3, %v6348_v39, 0 }
 0x4c5   : > { %5360 = vmatpush3.bf16.msra.mxu0 %v1309_v37  ;;  %5361 = vmatprep.mubr.msk.bf16.mxu0 %vm6022_vm1, %v6021_v48 }
 0x4c6   : > { %5371 = vmatprep.subr.bf16.mxu0 %v6021_v48  ;;  %5377 = vmatprep.subr.bf16.mxu1 %v6021_v48  ;;  %v1202_v43 = vpack.c.bf16 %v1194_v41, %v1194_v41 }
 0x4c8   : > { %2239 = vrot.lane.b32.xlu1 %v6225_v12, %s6027_s16 }
 0x4cc   : > { %5362 = vmatmul.mubr.msk.bf16.vlgmr.msra.gmra.mrb[16].mxu0 %vm712_vm2, %v1200_v40 }
 0x4cd   : > { %5372 = vmatpush3.bf16.msra.mxu0 %v1405_v28  ;;  %5373 = vmatprep.mubr.msk.bf16.mxu0 %vm6022_vm1, %v6021_v48 }
 0x4ce   : > { %5383 = vmatprep.subr.bf16.mxu0 %v6021_v48 }
 0x4d4   : > { %5374 = vmatmul.mubr.msk.bf16.vlgmr.msra.gmra.mrb[20].mxu0 %vm712_vm2, %v1202_v43 }
 0x4d5   : > { %5384 = vmatpush3.bf16.msra.mxu0 %v1501_v44  ;;  %5385 = vmatprep.mubr.msk.bf16.mxu0 %vm6022_vm1, %v6021_v48 }
 0x4d6   : > { %5395 = vmatprep.subr.bf16.mxu0 %v6021_v48 }
 0x4e7   : > { %v1169_v45 = vpop.xlane.xlu1 %1168 }
 0x4e8   : > { %5869 = vrcp.f32 %v1169_v45 }
 0x4eb   : > { %v1175_v47 = vpop.xlane.xlu1 %1174 }
 0x4ec   : > { %5871 = vrcp.f32 %v1175_v47 }
 0x4ed   : > { %v1178_v51 = vpop.xlane.xlu0 %1177 }
 0x4ee   : > { %5873 = vrcp.f32 %v1178_v51 }
 0x4ef   : > { %v1644_v9 = vpop.permute.xlu1 %1643 }
 0x4f0   : > { %v1649_v26 = vsel %vm712_vm2, %v1644_v9, 0 }
 0x4f1   : > { %v1594_v29 = vpop.permute.xlu0 %1593 }
 0x4f2   : > { %v5870_v46 = vpop.eup %5869  ;;  %v1599_v59 = vsel %vm712_vm2, %v1594_v29, 0 }
 0x4f3   : > { %v1193_v52 = vmul.f32 %v5870_v46, %v6351_v3 }
 0x4f5   : > { %v1592_v38 = vpop.permute.xlu0 %1591  ;;  %v1201_v53 = vpack.c.bf16 %v1193_v52, %v1193_v52 }
 0x4f6   : > { %v5872_v50 = vpop.eup %5871 }
 0x4f7   : > { %5368 = vmatmul.mubr.msk.bf16.vlgmr.msra.gmra.mrb[32].mxu1 %vm712_vm2, %v1201_v53  ;;  %v1195_v58 = vmul.f32 %v5872_v50, %v6355_v6 }
 0x4f8   : > { %v5874_v55 = vpop.eup %5873  ;;  %5378 = vmatpush3.bf16.msra.mxu1 %v1453_v54  ;;  %5379 = vmatprep.mubr.msk.bf16.mxu1 %vm6022_vm1, %v6021_v48 }
 0x4f9   : > { %v1694_v56 = vpop.permute.xlu0 %1693  ;;  %v1196_v57 = vmul.f32 %v5874_v55, %v6357_v62  ;;  %5389 = vmatprep.subr.bf16.mxu1 %v6021_v48  ;;  %v1203_v60 = vpack.c.bf16 %v1195_v58, %v1195_v58 }
 0x4fa   : > { %v1699_v1 = vsel %vm712_vm2, %v1694_v56, 0 }
 0x4fb   : > { %v1204_v49 = vpack.c.bf16 %v1196_v57, %v1196_v57 }
 0x4fd   : > { %5386 = vmatmul.mubr.msk.bf16.vlgmr.msra.gmra.mrb[24].mxu0 %vm712_vm2, %v1204_v49  ;;  %v1692_v39 = vpop.permute.xlu0 %1691 }
 0x4fe   : > { %5396 = vmatpush3.bf16.xpose.msra.mxu0 %v1599_v59  ;;  %5397 = vmatprep.mubr.msk.bf16.mxu0 %vm6022_vm1, %v6021_v48 }
 0x4ff   : > { %5380 = vmatmul.mubr.msk.bf16.vlgmr.msra.gmra.mrb[36].mxu1 %vm712_vm2, %v1203_v60  ;;  %5407 = vmatprep.subr.bf16.mxu0 %v6021_v48 }
 0x500   : > { %5390 = vmatpush3.bf16.msra.mxu1 %v1549_v61  ;;  %5391 = vmatprep.mubr.msk.bf16.mxu1 %vm6022_vm1, %v6021_v48 }
 0x501   : > { %5401 = vmatprep.subr.bf16.mxu1 %v6021_v48  ;;  %v1794_v0 = vpop.permute.xlu0 %1793 }
 0x502   : > { %v1799_v4 = vsel %vm712_vm2, %v1794_v0, 0 }
 0x505   : > { %5398 = vmatmul.mubr.msk.bf16.vlgmr.msra.gmra.mrb[28].mxu0 %vm712_vm2, %v1592_v38  ;;  %v1792_v3 = vpop.permute.xlu0 %1791 }
 0x506   : > { %5408 = vmatpush3.bf16.xpose.msra.mxu0 %v1699_v1  ;;  %5409 = vmatprep.mubr.msk.bf16.mxu0 %vm6022_vm1, %v6021_v48 }
 0x507   : > { %5419 = vmatprep.subr.bf16.mxu0 %v6021_v48 }
 0x509   : > { %v1894_v6 = vpop.permute.xlu0 %1893 }
 0x50a   : > { %v1899_v7 = vsel %vm712_vm2, %v1894_v6, 0 }
 0x50d   : > { %5410 = vmatmul.mubr.msk.bf16.vlgmr.msra.gmra.mrb[32].mxu0 %vm712_vm2, %v1692_v39  ;;  %v1892_v62 = vpop.permute.xlu0 %1891 }
 0x50e   : > { %5420 = vmatpush3.bf16.xpose.msra.mxu0 %v1799_v4  ;;  %5421 = vmatprep.mubr.msk.bf16.mxu0 %vm6022_vm1, %v6021_v48 }
 0x50f   : > { %5431 = vmatprep.subr.bf16.mxu0 %v6021_v48 }
 0x511   : > { %v2096_v8 = vpop.permute.xlu0 %2095 }
 0x512   : > { %v2101_v10 = vsel %vm1211_vm3, %v2096_v8, 0 }
 0x515   : > { %5422 = vmatmul.mubr.msk.bf16.vlgmr.msra.gmra.mrb[36].mxu0 %vm712_vm2, %v1792_v3 }
 0x516   : > { %5432 = vmatpush3.bf16.xpose.msra.mxu0 %v1899_v7  ;;  %5433 = vmatprep.mubr.msk.bf16.mxu0 %vm6022_vm1, %v6021_v48 }
 0x517   : > { %5443 = vmatprep.subr.bf16.mxu0 %v6021_v48 }
 0x51d   : > { %5434 = vmatmul.mubr.msk.bf16.vlgmr.msra.gmra.mrb[40].mxu0 %vm712_vm2, %v1892_v62 }
 0x51e   : > { %5444 = vmatpush3.bf16.msra.mxu0 %v2101_v10  ;;  %5445 = vmatprep.mubr.msk.bf16.mxu0 %vm6022_vm1, %v6021_v48 }
 0x51f   : > { %5455 = vmatprep.subr.bf16.mxu0 %v6021_v48 }
 0x520   : > { %v1181_v13 = vpop.xlane.xlu1 %1180 }
 0x521   : > { %5875 = vrcp.f32 %v1181_v13 }
 0x524   : > { %v1642_v18 = vpop.permute.xlu1 %1641 }
 0x528   : > { %v1744_v19 = vpop.permute.xlu1 %1743 }
 0x529   : > { %v1749_v20 = vsel %vm712_vm2, %v1744_v19, 0 }
 0x52b   : > { %v5876_v22 = vpop.eup %5875 }
 0x52c   : > { %v1197_v23 = vmul.f32 %v5876_v22, %v6377_v15  ;;  %v1742_v25 = vpop.permute.xlu1 %1741 }
 0x52e   : > { %v1205_v24 = vpack.c.bf16 %v1197_v23, %v1197_v23 }
 0x530   : > { %5392 = vmatmul.mubr.msk.bf16.vlgmr.msra.gmra.mrb[40].mxu1 %vm712_vm2, %v1205_v24  ;;  %v1844_v27 = vpop.permute.xlu1 %1843 }
 0x531   : > { %5402 = vmatpush3.bf16.xpose.msra.mxu1 %v1649_v26  ;;  %5403 = vmatprep.mubr.msk.bf16.mxu1 %vm6022_vm1, %v6021_v48  ;;  %v1849_v30 = vsel %vm712_vm2, %v1844_v27, 0 }
 0x532   : > { %5413 = vmatprep.subr.bf16.mxu1 %v6021_v48 }
 0x534   : > { %v1842_v15 = vpop.permute.xlu1 %1841 }
 0x538   : > { %5404 = vmatmul.mubr.msk.bf16.vlgmr.msra.gmra.mrb[44].mxu1 %vm712_vm2, %v1642_v18  ;;  %v1944_v31 = vpop.permute.xlu1 %1943 }
 0x539   : > { %5414 = vmatpush3.bf16.xpose.msra.mxu1 %v1749_v20  ;;  %5415 = vmatprep.mubr.msk.bf16.mxu1 %vm6022_vm1, %v6021_v48  ;;  %v1949_v33 = vsel %vm712_vm2, %v1944_v31, 0 }
 0x53a   : > { %5425 = vmatprep.subr.bf16.mxu1 %v6021_v48 }
 0x53c   : > { %v1942_v32 = vpop.permute.xlu1 %1941 }
 0x540   : > { %5416 = vmatmul.mubr.msk.bf16.vlgmr.msra.gmra.mrb[48].mxu1 %vm712_vm2, %v1742_v25  ;;  %v2144_v36 = vpop.permute.xlu1 %2143 }
 0x541   : > { %5426 = vmatpush3.bf16.xpose.msra.mxu1 %v1849_v30  ;;  %5427 = vmatprep.mubr.msk.bf16.mxu1 %vm6022_vm1, %v6021_v48  ;;  %v2149_v37 = vsel %vm1211_vm3, %v2144_v36, 0 }
 0x542   : > { %5437 = vmatprep.subr.bf16.mxu1 %v6021_v48 }
 0x548   : > { %5428 = vmatmul.mubr.msk.bf16.vlgmr.msra.gmra.mrb[52].mxu1 %vm712_vm2, %v1842_v15 }
 0x549   : > { %5438 = vmatpush3.bf16.xpose.msra.mxu1 %v1949_v33  ;;  %5439 = vmatprep.mubr.msk.bf16.mxu1 %vm6022_vm1, %v6021_v48 }
 0x54a   : > { %5449 = vmatprep.subr.bf16.mxu1 %v6021_v48 }
 0x550   : > { %5440 = vmatmul.mubr.msk.bf16.vlgmr.msra.gmra.mrb[56].mxu1 %vm712_vm2, %v1942_v32 }
 0x551   : > { %5450 = vmatpush3.bf16.msra.mxu1 %v2149_v37  ;;  %5451 = vmatprep.mubr.msk.bf16.mxu1 %vm6022_vm1, %v6021_v48 }
 0x552   : > { %5461 = vmatprep.subr.bf16.mxu1 %v6021_v48 }
 0x595   : > { %v6491_v35 = vpop.f32.mrb[28].mxu1 }
 0x596   : > { %v5357_v40 = vpop.f32.mrb[29].mxu1 }
 0x597   : > { %v6493_v34 = vpop.f32.mrb[12].mxu0  ;;  %v1300_v28 = vpop.f32.mrb[30].mxu1 }
 0x598   : > { %v5351_v41 = vpop.f32.mrb[13].mxu0  ;;  %v5358_v42 = vpop.f32.mrb[31].mxu1 }
 0x599   : > { %v1252_v43 = vpop.f32.mrb[14].mxu0 }
 0x59a   : > { %v5352_v44 = vpop.f32.mrb[15].mxu0 }
 0x59f   : > { %v6495_v21 = vpop.f32.mrb[16].mxu0 }
 0x5a0   : > { %v5363_v45 = vpop.f32.mrb[17].mxu0 }
 0x5a1   : > { %v1348_v47 = vpop.f32.mrb[18].mxu0 }
 0x5a2   : > { %v5364_v51 = vpop.f32.mrb[19].mxu0 }
 0x5a7   : > { %v6497_v29 = vpop.f32.mrb[20].mxu0 }
 0x5a8   : > { %v5375_v46 = vpop.f32.mrb[21].mxu0 }
 0x5a9   : > { %v1444_v52 = vpop.f32.mrb[22].mxu0 }
 0x5aa   : > { %v5376_v38 = vpop.f32.mrb[23].mxu0 }
 0x5ca   : > { %v6499_v53 = vpop.f32.mrb[32].mxu1 }
 0x5cb   : > { %v5369_v50 = vpop.f32.mrb[33].mxu1 }
 0x5cc   : > { %v1396_v54 = vpop.f32.mrb[34].mxu1 }
 0x5cd   : > { %v5370_v55 = vpop.f32.mrb[35].mxu1 }
 0x5d0   : > { %v6501_v56 = vpop.f32.mrb[24].mxu0 }
 0x5d1   : > { %v5387_v57 = vpop.f32.mrb[25].mxu0 }
 0x5d2   : > { %v6503_v58 = vpop.f32.mrb[36].mxu1  ;;  %v1540_v49 = vpop.f32.mrb[26].mxu0 }
 0x5d3   : > { %v5381_v59 = vpop.f32.mrb[37].mxu1  ;;  %v5388_v39 = vpop.f32.mrb[27].mxu0 }
 0x5d4   : > { %v1492_v60 = vpop.f32.mrb[38].mxu1 }
 0x5d5   : > { %v5382_v61 = vpop.f32.mrb[39].mxu1 }
 0x5d8   : > { %v1635_v0 = vpop.f32.mrb[28].mxu0 }
 0x5d9   : > { %v6505_v1 = vmul.f32 0.35355338, %v1635_v0  ;;  %v5399_v3 = vpop.f32.mrb[29].mxu0 }
 0x5da   : > { %v1638_v4 = vpop.f32.mrb[30].mxu0 }
 0x5db   : > { %v5400_v6 = vpop.f32.mrb[31].mxu0  ;;  %v1999_v62 = vsel %vm712_vm2, %v6505_v1, -inf }
 0x5dc   : > { %2000 = vmax.xlane.f32.xlu0 %v1999_v62 }
 0x5e0   : > { %v1735_v7 = vpop.f32.mrb[32].mxu0 }
 0x5e1   : > { %v1993_v8 = vmul.f32 0.35355338, %v1735_v7  ;;  %v5411_v9 = vpop.f32.mrb[33].mxu0 }
 0x5e2   : > { %v1738_v10 = vpop.f32.mrb[34].mxu0 }
 0x5e3   : > { %v5412_v13 = vpop.f32.mrb[35].mxu0  ;;  %v2005_v18 = vsel %vm712_vm2, %v1993_v8, -inf }
 0x5e4   : > { %2006 = vmax.xlane.f32.xlu0 %v2005_v18 }
 0x5e8   : > { %v1835_v19 = vpop.f32.mrb[36].mxu0 }
 0x5e9   : > { %v5423_v22 = vpop.f32.mrb[37].mxu0  ;;  %v1995_v47 = vmul.f32 0.35355338, %v1835_v19 }
 0x5ea   : > { %v1838_v23 = vpop.f32.mrb[38].mxu0 }
 0x5eb   : > { %v5424_v24 = vpop.f32.mrb[39].mxu0  ;;  %v2011_v38 = vsel %vm712_vm2, %v1995_v47, -inf }
 0x5f0   : > { %v1935_v25 = vpop.f32.mrb[40].mxu0 }
 0x5f1   : > { %v5435_v26 = vpop.f32.mrb[41].mxu0  ;;  %v6514_v52 = vmul.f32 0.35355338, %v1935_v25  ;;  %v2192_v25 = vpop.permute.xlu1 %2191 }
 0x5f2   : > { %v1938_v27 = vpop.f32.mrb[42].mxu0 }
 0x5f3   : > { %v5436_v20 = vpop.f32.mrb[43].mxu0  ;;  %v2017_v39 = vsel %vm712_vm2, %v6514_v52, -inf }
 0x603   : > { %v6510_v15 = vpop.f32.mrb[40].mxu1 }
 0x604   : > { %v5393_v30 = vpop.f32.mrb[41].mxu1 }
 0x605   : > { %v1588_v31 = vpop.f32.mrb[42].mxu1 }
 0x606   : > { %v5394_v32 = vpop.f32.mrb[43].mxu1 }
 0x60b   : > { %v1685_v33 = vpop.f32.mrb[44].mxu1 }
 0x60c   : > { %v1992_v36 = vmul.f32 0.35355338, %v1685_v33  ;;  %v5405_v37 = vpop.f32.mrb[45].mxu1 }
 0x60d   : > { %v1688_v40 = vpop.f32.mrb[46].mxu1 }
 0x60e   : > { %v5406_v28 = vpop.f32.mrb[47].mxu1  ;;  %v2002_v41 = vsel %vm712_vm2, %v1992_v36, -inf }
 0x60f   : > { %2003 = vmax.xlane.f32.xlu1 %v2002_v41 }
 0x613   : > { %v1785_v42 = vpop.f32.mrb[48].mxu1 }
 0x614   : > { %v1994_v43 = vmul.f32 0.35355338, %v1785_v42  ;;  %v5417_v44 = vpop.f32.mrb[49].mxu1 }
 0x615   : > { %v1788_v45 = vpop.f32.mrb[50].mxu1 }
 0x616   : > { %v5418_v51 = vpop.f32.mrb[51].mxu1  ;;  %v2008_v46 = vsel %vm712_vm2, %v1994_v43, -inf }
 0x617   : > { %2009 = vmax.xlane.f32.xlu0 %v2008_v46 }
 0x61b   : > { %v1885_v50 = vpop.f32.mrb[52].mxu1  ;;  %2012 = vmax.xlane.f32.xlu0 %v2011_v38 }
 0x61c   : > { %v1996_v54 = vmul.f32 0.35355338, %v1885_v50  ;;  %v5429_v55 = vpop.f32.mrb[53].mxu1 }
 0x61d   : > { %v1888_v57 = vpop.f32.mrb[54].mxu1 }
 0x61e   : > { %v5430_v49 = vpop.f32.mrb[55].mxu1  ;;  %v2014_v59 = vsel %vm712_vm2, %v1996_v54, -inf }
 0x61f   : > { %2015 = vmax.xlane.f32.xlu1 %v2014_v59  ;;  %2018 = vmax.xlane.f32.xlu0 %v2017_v39 }
 0x623   : > { %v1985_v60 = vpop.f32.mrb[56].mxu1 }
 0x624   : > { %v5441_v61 = vpop.f32.mrb[57].mxu1  ;;  %v6524_v4 = vmul.f32 0.35355338, %v1985_v60 }
 0x625   : > { %v1988_v0 = vpop.f32.mrb[58].mxu1 }
 0x626   : > { %v5442_v3 = vpop.f32.mrb[59].mxu1  ;;  %v2020_v6 = vsel %vm712_vm2, %v6524_v4, -inf }
 0x630   : > { %2335 = vrot.lane.b32.xlu1 %v6231_v16, %s6027_s16 }
 0x635   : > { %2287 = vrot.lane.b32.xlu0 %v6222_v11, %s6027_s16 }
 0x654   : > { %2021 = vmax.xlane.f32.xlu1 %v2020_v6 }
 0x669   : > { %v2001_v62 = vpop.xlane.xlu0 %2000 }
 0x66a   : > { %v2023_v7 = vsub.f32 %v6505_v1, %v2001_v62  ;;  %v6537_v1 = vpop.permute.xlu1 %2239 }
 0x66c   : > { %v2031_v9 = vmul.f32 1.442695, %v2023_v7  ;;  %v2197_v7 = vsel %vm1211_vm3, %v2192_v25, 0 }
 0x66e   : > { %5877 = vpow2.f32 %v2031_v9 }
 0x671   : > { %v2007_v10 = vpop.xlane.xlu0 %2006 }
 0x672   : > { %v2025_v13 = vsub.f32 %v1993_v8, %v2007_v10 }
 0x674   : > { %v2035_v18 = vmul.f32 1.442695, %v2025_v13 }
 0x676   : > { %5879 = vpow2.f32 %v2035_v18 }
 0x678   : > { %v6529_v19 = vpop.eup %5877 }
 0x679   : > { %v2047_v22 = vsel %vm712_vm2, %v6529_v19, 0.0 }
 0x67a   : > { %2048 = vadd.xlane.f32.xlu0 %v2047_v22 }
 0x680   : > { %v6533_v23 = vpop.eup %5879 }
 0x681   : > { %v2053_v24 = vsel %vm712_vm2, %v6533_v23, 0.0 }
 0x682   : > { %2054 = vadd.xlane.f32.xlu0 %v2053_v24 }
 0x69c   : > { %v2004_v26 = vpop.xlane.xlu1 %2003 }
 0x69d   : > { %v2024_v27 = vsub.f32 %v1992_v36, %v2004_v26 }
 0x69f   : > { %v2033_v8 = vmul.f32 1.442695, %v2024_v27 }
 0x6a1   : > { %5881 = vpow2.f32 %v2033_v8  ;;  %v2245_v8 = vsel %vm1211_vm3, %v6537_v1, 0 }
 0x6a4   : > { %v2010_v20 = vpop.xlane.xlu0 %2009 }
 0x6a5   : > { %v2026_v30 = vsub.f32 %v1994_v43, %v2010_v20 }
 0x6a7   : > { %v2037_v31 = vmul.f32 1.442695, %v2026_v30 }
 0x6a8   : > { %v2013_v32 = vpop.xlane.xlu0 %2012 }
 0x6a9   : > { %5883 = vpow2.f32 %v2037_v31  ;;  %v2027_v33 = vsub.f32 %v1995_v47, %v2013_v32 }
 0x6ab   : > { %v6539_v37 = vpop.eup %5881  ;;  %v2039_v40 = vmul.f32 1.442695, %v2027_v33 }
 0x6ac   : > { %v2050_v28 = vsel %vm712_vm2, %v6539_v37, 0.0  ;;  %v2016_v44 = vpop.xlane.xlu1 %2015  ;;  %v2019_v47 = vpop.xlane.xlu0 %2018 }
 0x6ad   : > { %5885 = vpow2.f32 %v2039_v40  ;;  %2051 = vadd.xlane.f32.xlu1 %v2050_v28  ;;  %v2028_v45 = vsub.f32 %v1996_v54, %v2016_v44  ;;  %v2029_v46 = vsub.f32 %v6514_v52, %v2019_v47 }
 0x6af   : > { %v2041_v51 = vmul.f32 1.442695, %v2028_v45  ;;  %v2043_v38 = vmul.f32 1.442695, %v2029_v46 }
 0x6b0   : > { %v6566_v52 = vpop.permute.xlu1 %2335  ;;  %v2288_v54 = vpop.permute.xlu0 %2287 }
 0x6b1   : > { %5887 = vpow2.f32 %v2041_v51  ;;  %v2341_v1 = vsel %vm1211_vm3, %v6566_v52, 0 }
 0x6b2   : > { %5889 = vpow2.f32 %v2043_v38 }
 0x6b3   : > { %v6543_v41 = vpop.eup %5883 }
 0x6b4   : > { %v2056_v36 = vsel %vm712_vm2, %v6543_v41, 0.0 }
 0x6b5   : > { %2057 = vadd.xlane.f32.xlu1 %v2056_v36 }
 0x6b7   : > { %v6547_v42 = vpop.eup %5885 }
 0x6b8   : > { %v2059_v43 = vsel %vm712_vm2, %v6547_v42, 0.0 }
 0x6b9   : > { %2060 = vadd.xlane.f32.xlu0 %v2059_v43 }
 0x6bb   : > { %v6556_v50 = vpop.eup %5887 }
 0x6bc   : > { %v2062_v55 = vsel %vm712_vm2, %v6556_v50, 0.0  ;;  %v6560_v57 = vpop.eup %5889 }
 0x6bd   : > { %v2065_v49 = vsel %vm712_vm2, %v6560_v57, 0.0 }
 0x6c6   : > { %2431 = vrot.lane.b32.xlu1 %v6235_v17, %s6027_s16 }
 0x6cf   : > { %2383 = vrot.lane.b32.xlu0 %v6228_v14, %s6027_s16 }
 0x6e1   : > { %v2022_v59 = vpop.xlane.xlu1 %2021 }
 0x6e2   : > { %v2030_v60 = vsub.f32 %v6524_v4, %v2022_v59 }
 0x6e4   : > { %v2045_v61 = vmul.f32 1.442695, %v2030_v60 }
 0x6ea   : > { %2063 = vadd.xlane.f32.xlu1 %v2062_v55 }
 0x6ee   : > { %2066 = vadd.xlane.f32.xlu0 %v2065_v49 }
 0x6fb   : > { %2531 = vrot.lane.b32.xlu1 %v6216_v2, %s6028_s17 }
 0x704   : > { %2481 = vrot.lane.b32.xlu0 %v6214_v63, %s6028_s17 }
 0x707   : > { %v2049_v39 = vpop.xlane.xlu0 %2048 }
 0x708   : > { %5891 = vrcp.f32 %v2049_v39  ;;  %2479 = vrot.lane.b32.xlu0 %v6214_v63, %s6029_s18 }
 0x70c   : > { %2581 = vrot.lane.b32.xlu0 %v6220_v5, %s6028_s17 }
 0x70f   : > { %v2055_v0 = vpop.xlane.xlu0 %2054 }
 0x710   : > { %5893 = vrcp.f32 %v2055_v0  ;;  %2579 = vrot.lane.b32.xlu0 %v6220_v5, %s6029_s18 }
 0x711   : > { %5895 = vpow2.f32 %v2045_v61 }
 0x712   : > { %v5892_v3 = vpop.eup %5891 }
 0x713   : > { %v2079_v6 = vmul.f32 %v5892_v3, %v6529_v19  ;;  %v2293_v19 = vsel %vm1211_vm3, %v2288_v54, 0 }
 0x714   : > { %2681 = vrot.lane.b32.xlu0 %v6222_v11, %s6028_s17 }
 0x715   : > { %v2087_v62 = vpack.c.bf16 %v2079_v6, %v2079_v6 }
 0x717   : > { %5446 = vmatmul.mubr.msk.bf16.vlgmr.msra.gmra.mrb[44].mxu0 %vm712_vm2, %v2087_v62 }
 0x718   : > { %5456 = vmatpush3.bf16.msra.mxu0 %v2197_v7  ;;  %2679 = vrot.lane.b32.xlu0 %v6222_v11, %s6029_s18 }
 0x719   : > { %5457 = vmatprep.mubr.msk.bf16.mxu0 %vm6022_vm1, %v6021_v48  ;;  %5467 = vmatprep.subr.bf16.mxu0 %v6021_v48 }
 0x71a   : > { %v5894_v4 = vpop.eup %5893 }
 0x71b   : > { %v6587_v9 = vpop.eup %5895  ;;  %v2081_v10 = vmul.f32 %v5894_v4, %v6533_v23 }
 0x71c   : > { %2781 = vrot.lane.b32.xlu0 %v6228_v14, %s6028_s17  ;;  %v2068_v18 = vsel %vm712_vm2, %v6587_v9, 0.0 }
 0x71d   : > { %v2089_v13 = vpack.c.bf16 %v2081_v10, %v2081_v10 }
 0x71f   : > { %2069 = vadd.xlane.f32.xlu1 %v2068_v18  ;;  %5458 = vmatmul.mubr.msk.bf16.vlgmr.msra.gmra.mrb[48].mxu0 %vm712_vm2, %v2089_v13 }
 0x720   : > { %5468 = vmatpush3.bf16.msra.mxu0 %v2293_v19  ;;  %2779 = vrot.lane.b32.xlu0 %v6228_v14, %s6029_s18 }
 0x721   : > { %5469 = vmatprep.mubr.msk.bf16.mxu0 %vm6022_vm1, %v6021_v48  ;;  %5479 = vmatprep.subr.bf16.mxu0 %v6021_v48 }
 0x724   : > { %2983 = vrot.lane.b32.xlu0 %v6214_v63, %s6030_s19 }
 0x730   : > { %2529 = vrot.lane.b32.xlu1 %v6216_v2, %s6029_s18 }
 0x734   : > { %2631 = vrot.lane.b32.xlu1 %v6225_v12, %s6028_s17 }
 0x738   : > { %2629 = vrot.lane.b32.xlu1 %v6225_v12, %s6029_s18 }
 0x73a   : > { %v2052_v22 = vpop.xlane.xlu1 %2051 }
 0x73b   : > { %5897 = vrcp.f32 %v2052_v22 }
 0x73c   : > { %2731 = vrot.lane.b32.xlu1 %v6231_v16, %s6028_s17 }
 0x740   : > { %2729 = vrot.lane.b32.xlu1 %v6231_v16, %s6029_s18 }
 0x742   : > { %v2058_v23 = vpop.xlane.xlu1 %2057 }
 0x743   : > { %5899 = vrcp.f32 %v2058_v23 }
 0x744   : > { %2831 = vrot.lane.b32.xlu1 %v6235_v17, %s6028_s17 }
 0x745   : > { %v5898_v24 = vpop.eup %5897 }
 0x746   : > { %v2061_v25 = vpop.xlane.xlu0 %2060  ;;  %v2080_v26 = vmul.f32 %v5898_v24, %v6539_v37 }
 0x747   : > { %5901 = vrcp.f32 %v2061_v25 }
 0x748   : > { %2829 = vrot.lane.b32.xlu1 %v6235_v17, %s6029_s18  ;;  %v2088_v27 = vpack.c.bf16 %v2080_v26, %v2080_v26 }
 0x74a   : > { %5452 = vmatmul.mubr.msk.bf16.vlgmr.msra.gmra.mrb[60].mxu1 %vm712_vm2, %v2088_v27  ;;  %v2384_v37 = vpop.permute.xlu0 %2383 }
 0x74b   : > { %5462 = vmatpush3.bf16.msra.mxu1 %v2245_v8  ;;  %5463 = vmatprep.mubr.msk.bf16.mxu1 %vm6022_vm1, %v6021_v48  ;;  %v2389_v28 = vsel %vm1211_vm3, %v2384_v37, 0 }
 0x74c   : > { %3031 = vrot.lane.b32.xlu1 %v6216_v2, %s6030_s19  ;;  %5473 = vmatprep.subr.bf16.mxu1 %v6021_v48 }
 0x74d   : > { %v5900_v20 = vpop.eup %5899 }
 0x74e   : > { %v2082_v30 = vmul.f32 %v5900_v20, %v6543_v41  ;;  %v2432_v41 = vpop.permute.xlu1 %2431 }
 0x74f   : > { %v2437_v38 = vsel %vm1211_vm3, %v2432_v41, 0 }
 0x750   : > { %3079 = vrot.lane.b32.xlu1 %v6220_v5, %s6030_s19  ;;  %v2090_v31 = vpack.c.bf16 %v2082_v30, %v2082_v30 }
 0x751   : > { %v5902_v32 = vpop.eup %5901 }
 0x752   : > { %5464 = vmatmul.mubr.msk.bf16.vlgmr.msra.gmra.mrb[64].mxu1 %vm712_vm2, %v2090_v31  ;;  %v2083_v33 = vmul.f32 %v5902_v32, %v6547_v42 }
 0x753   : > { %5474 = vmatpush3.bf16.msra.mxu1 %v2341_v1  ;;  %5475 = vmatprep.mubr.msk.bf16.mxu1 %vm6022_vm1, %v6021_v48 }
 0x754   : > { %3127 = vrot.lane.b32.xlu1 %v6225_v12, %s6030_s19  ;;  %v2091_v40 = vpack.c.bf16 %v2083_v33, %v2083_v33  ;;  %5485 = vmatprep.subr.bf16.mxu1 %v6021_v48 }
 0x756   : > { %5470 = vmatmul.mubr.msk.bf16.vlgmr.msra.gmra.mrb[52].mxu0 %vm712_vm2, %v2091_v40 }
 0x757   : > { %5480 = vmatpush3.bf16.msra.mxu0 %v2389_v28  ;;  %5481 = vmatprep.mubr.msk.bf16.mxu0 %vm6022_vm1, %v6021_v48 }
 0x758   : > { %5491 = vmatprep.subr.bf16.mxu0 %v6021_v48 }
 0x777   : > { %v2064_v36 = vpop.xlane.xlu1 %2063 }
 0x778   : > { %5903 = vrcp.f32 %v2064_v36 }
 0x77b   : > { %v2067_v42 = vpop.xlane.xlu0 %2066  ;;  %v2532_v6 = vpop.permute.xlu1 %2531 }
 0x77c   : > { %5905 = vrcp.f32 %v2067_v42  ;;  %v2537_v24 = vsel %vm712_vm2, %v2532_v6, 0 }
 0x77f   : > { %v2482_v43 = vpop.permute.xlu0 %2481 }
 0x780   : > { %v2487_v54 = vsel %vm712_vm2, %v2482_v43, 0 }
 0x782   : > { %v5904_v44 = vpop.eup %5903 }
 0x783   : > { %v2480_v45 = vpop.permute.xlu0 %2479  ;;  %v2084_v47 = vmul.f32 %v5904_v44, %v6556_v50 }
 0x785   : > { %v2092_v51 = vpack.c.bf16 %v2084_v47, %v2084_v47 }
 0x786   : > { %v5906_v46 = vpop.eup %5905 }
 0x787   : > { %5476 = vmatmul.mubr.msk.bf16.vlgmr.msra.gmra.mrb[68].mxu1 %vm712_vm2, %v2092_v51  ;;  %v2582_v55 = vpop.permute.xlu0 %2581  ;;  %v2085_v49 = vmul.f32 %v5906_v46, %v6560_v57 }
 0x788   : > { %5486 = vmatpush3.bf16.msra.mxu1 %v2437_v38  ;;  %5487 = vmatprep.mubr.msk.bf16.mxu1 %vm6022_vm1, %v6021_v48  ;;  %v2587_v57 = vsel %vm712_vm2, %v2582_v55, 0 }
 0x789   : > { %v2093_v52 = vpack.c.bf16 %v2085_v49, %v2085_v49  ;;  %5497 = vmatprep.subr.bf16.mxu1 %v6021_v48 }
 0x78b   : > { %5482 = vmatmul.mubr.msk.bf16.vlgmr.msra.gmra.mrb[56].mxu0 %vm712_vm2, %v2093_v52  ;;  %v2580_v50 = vpop.permute.xlu0 %2579 }
 0x78c   : > { %5492 = vmatpush3.bf16.xpose.msra.mxu0 %v2487_v54  ;;  %5493 = vmatprep.mubr.msk.bf16.mxu0 %vm6022_vm1, %v6021_v48 }
 0x78d   : > { %5503 = vmatprep.subr.bf16.mxu0 %v6021_v48 }
 0x78f   : > { %v2682_v59 = vpop.permute.xlu0 %2681 }
 0x790   : > { %v2687_v60 = vsel %vm712_vm2, %v2682_v59, 0 }
 0x793   : > { %5494 = vmatmul.mubr.msk.bf16.vlgmr.msra.gmra.mrb[60].mxu0 %vm712_vm2, %v2480_v45  ;;  %v2680_v39 = vpop.permute.xlu0 %2679 }
 0x794   : > { %5504 = vmatpush3.bf16.xpose.msra.mxu0 %v2587_v57  ;;  %5505 = vmatprep.mubr.msk.bf16.mxu0 %vm6022_vm1, %v6021_v48 }
 0x795   : > { %5515 = vmatprep.subr.bf16.mxu0 %v6021_v48 }
 0x797   : > { %v2782_v61 = vpop.permute.xlu0 %2781 }
 0x798   : > { %v2787_v3 = vsel %vm712_vm2, %v2782_v61, 0 }
 0x79b   : > { %5506 = vmatmul.mubr.msk.bf16.vlgmr.msra.gmra.mrb[64].mxu0 %vm712_vm2, %v2580_v50  ;;  %v2780_v0 = vpop.permute.xlu0 %2779 }
 0x79c   : > { %5516 = vmatpush3.bf16.xpose.msra.mxu0 %v2687_v60  ;;  %5517 = vmatprep.mubr.msk.bf16.mxu0 %vm6022_vm1, %v6021_v48 }
 0x79d   : > { %5527 = vmatprep.subr.bf16.mxu0 %v6021_v48 }
 0x79f   : > { %v2984_v62 = vpop.permute.xlu0 %2983 }
 0x7a0   : > { %v2989_v7 = vsel %vm1211_vm3, %v2984_v62, 0 }
 0x7a3   : > { %5518 = vmatmul.mubr.msk.bf16.vlgmr.msra.gmra.mrb[68].mxu0 %vm712_vm2, %v2680_v39 }
 0x7a4   : > { %5528 = vmatpush3.bf16.xpose.msra.mxu0 %v2787_v3  ;;  %5529 = vmatprep.mubr.msk.bf16.mxu0 %vm6022_vm1, %v6021_v48 }
 0x7a5   : > { %5539 = vmatprep.subr.bf16.mxu0 %v6021_v48 }
 0x7ab   : > { %5530 = vmatmul.mubr.msk.bf16.vlgmr.msra.gmra.mrb[72].mxu0 %vm712_vm2, %v2780_v0 }
 0x7ac   : > { %5540 = vmatpush3.bf16.msra.mxu0 %v2989_v7  ;;  %v2070_v4 = vpop.xlane.xlu1 %2069  ;;  %5541 = vmatprep.mubr.msk.bf16.mxu0 %vm6022_vm1, %v6021_v48 }
 0x7ad   : > { %5907 = vrcp.f32 %v2070_v4  ;;  %5551 = vmatprep.subr.bf16.mxu0 %v6021_v48 }
 0x7b0   : > { %v2530_v10 = vpop.permute.xlu1 %2529 }
 0x7b4   : > { %v2632_v13 = vpop.permute.xlu1 %2631 }
 0x7b5   : > { %v2637_v26 = vsel %vm712_vm2, %v2632_v13, 0 }
 0x7b7   : > { %v5908_v18 = vpop.eup %5907 }
 0x7b8   : > { %v2086_v19 = vmul.f32 %v5908_v18, %v6587_v9  ;;  %v2630_v23 = vpop.permute.xlu1 %2629 }
 0x7ba   : > { %v2094_v22 = vpack.c.bf16 %v2086_v19, %v2086_v19 }
 0x7bc   : > { %5488 = vmatmul.mubr.msk.bf16.vlgmr.msra.gmra.mrb[72].mxu1 %vm712_vm2, %v2094_v22  ;;  %v2732_v25 = vpop.permute.xlu1 %2731 }
 0x7bd   : > { %5498 = vmatpush3.bf16.xpose.msra.mxu1 %v2537_v24  ;;  %5499 = vmatprep.mubr.msk.bf16.mxu1 %vm6022_vm1, %v6021_v48  ;;  %v2737_v27 = vsel %vm712_vm2, %v2732_v25, 0 }
 0x7be   : > { %5509 = vmatprep.subr.bf16.mxu1 %v6021_v48 }
 0x7c0   : > { %v2730_v9 = vpop.permute.xlu1 %2729 }
 0x7c4   : > { %5500 = vmatmul.mubr.msk.bf16.vlgmr.msra.gmra.mrb[76].mxu1 %vm712_vm2, %v2530_v10  ;;  %v2832_v8 = vpop.permute.xlu1 %2831 }
 0x7c5   : > { %5510 = vmatpush3.bf16.xpose.msra.mxu1 %v2637_v26  ;;  %5511 = vmatprep.mubr.msk.bf16.mxu1 %vm6022_vm1, %v6021_v48  ;;  %v2837_v30 = vsel %vm712_vm2, %v2832_v8, 0 }
 0x7c6   : > { %5521 = vmatprep.subr.bf16.mxu1 %v6021_v48 }
 0x7c8   : > { %v2830_v20 = vpop.permute.xlu1 %2829 }
 0x7cc   : > { %5512 = vmatmul.mubr.msk.bf16.vlgmr.msra.gmra.mrb[80].mxu1 %vm712_vm2, %v2630_v23  ;;  %v3032_v31 = vpop.permute.xlu1 %3031 }
 0x7cd   : > { %5522 = vmatpush3.bf16.xpose.msra.mxu1 %v2737_v27  ;;  %5523 = vmatprep.mubr.msk.bf16.mxu1 %vm6022_vm1, %v6021_v48  ;;  %v3037_v32 = vsel %vm1211_vm3, %v3032_v31, 0 }
 0x7ce   : > { %5533 = vmatprep.subr.bf16.mxu1 %v6021_v48 }
 0x7d4   : > { %5524 = vmatmul.mubr.msk.bf16.vlgmr.msra.gmra.mrb[84].mxu1 %vm712_vm2, %v2730_v9 }
 0x7d5   : > { %5534 = vmatpush3.bf16.xpose.msra.mxu1 %v2837_v30  ;;  %5535 = vmatprep.mubr.msk.bf16.mxu1 %vm6022_vm1, %v6021_v48 }
 0x7d6   : > { %5545 = vmatprep.subr.bf16.mxu1 %v6021_v48 }
 0x7dc   : > { %5536 = vmatmul.mubr.msk.bf16.vlgmr.msra.gmra.mrb[88].mxu1 %vm712_vm2, %v2830_v20 }
 0x7dd   : > { %5546 = vmatpush3.bf16.msra.mxu1 %v3037_v32  ;;  %5547 = vmatprep.mubr.msk.bf16.mxu1 %vm6022_vm1, %v6021_v48 }
 0x7de   : > { %5557 = vmatprep.subr.bf16.mxu1 %v6021_v48 }
 0x7ea   : > { %v6701_v1 = vpop.f32.mrb[44].mxu0 }
 0x7eb   : > { %v5447_v33 = vpop.f32.mrb[45].mxu0 }
 0x7ec   : > { %v2140_v37 = vpop.f32.mrb[46].mxu0 }
 0x7ed   : > { %v5448_v40 = vpop.f32.mrb[47].mxu0 }
 0x7f2   : > { %v6703_v28 = vpop.f32.mrb[48].mxu0 }
 0x7f3   : > { %v5459_v41 = vpop.f32.mrb[49].mxu0 }
 0x7f4   : > { %v2236_v36 = vpop.f32.mrb[50].mxu0 }
 0x7f5   : > { %v5460_v42 = vpop.f32.mrb[51].mxu0 }
 0x81d   : > { %v6705_v43 = vpop.f32.mrb[60].mxu1 }
 0x81e   : > { %v5755_v44 = vpack.i.bf16 %v6705_v43, %v6701_v1  ;;  %v5453_v45 = vpop.f32.mrb[61].mxu1 }
 0x81f   : > { %v2188_v47 = vpop.f32.mrb[62].mxu1 }
 0x820   : > { %v5454_v51 = vpop.f32.mrb[63].mxu1 }
 0x825   : > { %v6709_v46 = vpop.f32.mrb[64].mxu1 }
 0x826   : > { %v5760_v38 = vpack.i.bf16 %v6709_v46, %v6703_v28  ;;  %v5465_v55 = vpop.f32.mrb[65].mxu1 }
 0x827   : > { %v2284_v49 = vpop.f32.mrb[66].mxu1 }
 0x828   : > { %v5466_v52 = vpop.f32.mrb[67].mxu1 }
 0x829   : > { %v6713_v54 = vpop.f32.mrb[52].mxu0 }
 0x82a   : > { %v5471_v50 = vpop.f32.mrb[53].mxu0 }
 0x82b   : > { %v2332_v59 = vpop.f32.mrb[54].mxu0 }
 0x82c   : > { %v5472_v57 = vpop.f32.mrb[55].mxu0 }
 0x85a   : > { %v6715_v39 = vpop.f32.mrb[68].mxu1 }
 0x85b   : > { %v5775_v60 = vpack.i.bf16 %v6715_v39, %v6713_v54  ;;  %v5477_v61 = vpop.f32.mrb[69].mxu1 }
 0x85c   : > { %v2380_v0 = vpop.f32.mrb[70].mxu1 }
 0x85d   : > { %v5478_v3 = vpop.f32.mrb[71].mxu1 }
 0x85e   : > { %v6719_v6 = vpop.f32.mrb[56].mxu0 }
 0x85f   : > { %v5483_v62 = vpop.f32.mrb[57].mxu0 }
 0x860   : > { %v2428_v7 = vpop.f32.mrb[58].mxu0 }
 0x861   : > { %v5484_v4 = vpop.f32.mrb[59].mxu0 }
 0x866   : > { %v2523_v10 = vpop.f32.mrb[60].mxu0 }
 0x867   : > { %v6721_v13 = vmul.f32 0.35355338, %v2523_v10  ;;  %v5495_v18 = vpop.f32.mrb[61].mxu0 }
 0x868   : > { %v2526_v19 = vpop.f32.mrb[62].mxu0 }
 0x869   : > { %v5496_v22 = vpop.f32.mrb[63].mxu0  ;;  %v2887_v23 = vsel %vm712_vm2, %v6721_v13, -inf }
 0x86a   : > { %2888 = vmax.xlane.f32.xlu0 %v2887_v23 }
 0x86e   : > { %v2623_v24 = vpop.f32.mrb[64].mxu0 }
 0x86f   : > { %v2881_v25 = vmul.f32 0.35355338, %v2623_v24  ;;  %v5507_v26 = vpop.f32.mrb[65].mxu0 }
 0x870   : > { %v2626_v9 = vpop.f32.mrb[66].mxu0 }
 0x871   : > { %v5508_v27 = vpop.f32.mrb[67].mxu0  ;;  %v2893_v8 = vsel %vm712_vm2, %v2881_v25, -inf }
 0x872   : > { %2894 = vmax.xlane.f32.xlu0 %v2893_v8 }
 0x876   : > { %v2723_v20 = vpop.f32.mrb[68].mxu0 }
 0x877   : > { %v5519_v30 = vpop.f32.mrb[69].mxu0  ;;  %v2883_v7 = vmul.f32 0.35355338, %v2723_v20 }
 0x878   : > { %v2726_v31 = vpop.f32.mrb[70].mxu0 }
 0x879   : > { %v5520_v32 = vpop.f32.mrb[71].mxu0  ;;  %v2899_v19 = vsel %vm712_vm2, %v2883_v7, -inf }
 0x87e   : > { %v2823_v33 = vpop.f32.mrb[72].mxu0 }
 0x87f   : > { %v5531_v37 = vpop.f32.mrb[73].mxu0  ;;  %v6732_v18 = vmul.f32 0.35355338, %v2823_v33 }
 0x880   : > { %v2826_v40 = vpop.f32.mrb[74].mxu0 }
 0x881   : > { %v5532_v41 = vpop.f32.mrb[75].mxu0  ;;  %v2905_v8 = vsel %vm712_vm2, %v6732_v18, -inf }
 0x88f   : > { %v6726_v36 = vpop.f32.mrb[72].mxu1 }
 0x890   : > { %v5780_v42 = vpack.i.bf16 %v6726_v36, %v6719_v6  ;;  %v5489_v45 = vpop.f32.mrb[73].mxu1 }
 0x891   : > { %v2476_v47 = vpop.f32.mrb[74].mxu1 }
 0x892   : > { %v5490_v51 = vpop.f32.mrb[75].mxu1 }
 0x897   : > { %v2573_v55 = vpop.f32.mrb[76].mxu1 }
 0x898   : > { %v2880_v49 = vmul.f32 0.35355338, %v2573_v55  ;;  %v5501_v52 = vpop.f32.mrb[77].mxu1 }
 0x899   : > { %v2576_v50 = vpop.f32.mrb[78].mxu1 }
 0x89a   : > { %v5502_v59 = vpop.f32.mrb[79].mxu1  ;;  %v2890_v57 = vsel %vm712_vm2, %v2880_v49, -inf }
 0x89b   : > { %2891 = vmax.xlane.f32.xlu1 %v2890_v57 }
 0x89f   : > { %v2673_v61 = vpop.f32.mrb[80].mxu1 }
 0x8a0   : > { %v2882_v0 = vmul.f32 0.35355338, %v2673_v61  ;;  %v5513_v3 = vpop.f32.mrb[81].mxu1  ;;  %v3080_v61 = vpop.permute.xlu1 %3079 }
 0x8a1   : > { %v2676_v62 = vpop.f32.mrb[82].mxu1 }
 0x8a2   : > { %v5514_v4 = vpop.f32.mrb[83].mxu1  ;;  %v2896_v10 = vsel %vm712_vm2, %v2882_v0, -inf }
 0x8a3   : > { %2897 = vmax.xlane.f32.xlu0 %v2896_v10 }
 0x8a7   : > { %v2773_v22 = vpop.f32.mrb[84].mxu1  ;;  %2900 = vmax.xlane.f32.xlu0 %v2899_v19 }
 0x8a8   : > { %v2884_v23 = vmul.f32 0.35355338, %v2773_v22  ;;  %v5525_v24 = vpop.f32.mrb[85].mxu1 }
 0x8a9   : > { %v2776_v26 = vpop.f32.mrb[86].mxu1 }
 0x8aa   : > { %v5526_v9 = vpop.f32.mrb[87].mxu1  ;;  %v2902_v27 = vsel %vm712_vm2, %v2884_v23, -inf }
 0x8ab   : > { %2903 = vmax.xlane.f32.xlu1 %v2902_v27  ;;  %2906 = vmax.xlane.f32.xlu0 %v2905_v8 }
 0x8af   : > { %v2873_v20 = vpop.f32.mrb[88].mxu1 }
 0x8b0   : > { %v5537_v30 = vpop.f32.mrb[89].mxu1  ;;  %v6742_v33 = vmul.f32 0.35355338, %v2873_v20 }
 0x8b1   : > { %v2876_v31 = vpop.f32.mrb[90].mxu1 }
 0x8b2   : > { %v5538_v32 = vpop.f32.mrb[91].mxu1  ;;  %v2908_v37 = vsel %vm712_vm2, %v6742_v33, -inf }
 0x8bc   : > { %3223 = vrot.lane.b32.xlu1 %v6231_v16, %s6030_s19 }
 0x8c1   : > { %3175 = vrot.lane.b32.xlu0 %v6222_v11, %s6030_s19 }
 0x8e0   : > { %2909 = vmax.xlane.f32.xlu1 %v2908_v37 }
 0x8f7   : > { %v2889_v40 = vpop.xlane.xlu0 %2888 }
 0x8f8   : > { %v2911_v41 = vsub.f32 %v6721_v13, %v2889_v40  ;;  %v6755_v13 = vpop.permute.xlu1 %3127 }
 0x8fa   : > { %v2919_v45 = vmul.f32 1.442695, %v2911_v41 }
 0x8fc   : > { %5909 = vpow2.f32 %v2919_v45 }
 0x8ff   : > { %v2895_v47 = vpop.xlane.xlu0 %2894 }
 0x900   : > { %v2913_v51 = vsub.f32 %v2881_v25, %v2895_v47 }
 0x902   : > { %v2923_v55 = vmul.f32 1.442695, %v2913_v51 }
 0x904   : > { %5911 = vpow2.f32 %v2923_v55 }
 0x906   : > { %v6747_v52 = vpop.eup %5909 }
 0x907   : > { %v2935_v50 = vsel %vm712_vm2, %v6747_v52, 0.0 }
 0x908   : > { %2936 = vadd.xlane.f32.xlu0 %v2935_v50 }
 0x90e   : > { %v6751_v59 = vpop.eup %5911 }
 0x90f   : > { %v2941_v57 = vsel %vm712_vm2, %v6751_v59, 0.0 }
 0x910   : > { %2942 = vadd.xlane.f32.xlu0 %v2941_v57 }
 0x928   : > { %v2892_v3 = vpop.xlane.xlu1 %2891 }
 0x929   : > { %v2912_v62 = vsub.f32 %v2880_v49, %v2892_v3 }
 0x92b   : > { %v2921_v25 = vmul.f32 1.442695, %v2912_v62 }
 0x92d   : > { %5913 = vpow2.f32 %v2921_v25 }
 0x930   : > { %v2898_v4 = vpop.xlane.xlu0 %2897 }
 0x931   : > { %v2914_v10 = vsub.f32 %v2882_v0, %v2898_v4 }
 0x933   : > { %v2925_v19 = vmul.f32 1.442695, %v2914_v10 }
 0x934   : > { %v2901_v22 = vpop.xlane.xlu0 %2900 }
 0x935   : > { %5915 = vpow2.f32 %v2925_v19  ;;  %v2915_v24 = vsub.f32 %v2883_v7, %v2901_v22 }
 0x937   : > { %v6757_v26 = vpop.eup %5913  ;;  %v2927_v9 = vmul.f32 1.442695, %v2915_v24 }
 0x938   : > { %v2938_v27 = vsel %vm712_vm2, %v6757_v26, 0.0  ;;  %v2904_v7 = vpop.xlane.xlu1 %2903  ;;  %v2907_v31 = vpop.xlane.xlu0 %2906 }
 0x939   : > { %5917 = vpow2.f32 %v2927_v9  ;;  %2939 = vadd.xlane.f32.xlu1 %v2938_v27  ;;  %v2916_v30 = vsub.f32 %v2884_v23, %v2904_v7  ;;  %v2917_v37 = vsub.f32 %v6732_v18, %v2907_v31  ;;  %v3133_v31 = vsel %vm1211_vm3, %v6755_v13, 0 }
 0x93b   : > { %v2929_v32 = vmul.f32 1.442695, %v2916_v30  ;;  %v2931_v40 = vmul.f32 1.442695, %v2917_v37 }
 0x93c   : > { %v6784_v18 = vpop.permute.xlu1 %3223  ;;  %v3176_v23 = vpop.permute.xlu0 %3175 }
 0x93d   : > { %5919 = vpow2.f32 %v2929_v32  ;;  %v3181_v9 = vsel %vm1211_vm3, %v3176_v23, 0 }
 0x93e   : > { %5921 = vpow2.f32 %v2931_v40 }
 0x93f   : > { %v6761_v8 = vpop.eup %5915 }
 0x940   : > { %v2944_v49 = vsel %vm712_vm2, %v6761_v8, 0.0 }
 0x941   : > { %2945 = vadd.xlane.f32.xlu1 %v2944_v49 }
 0x943   : > { %v6765_v20 = vpop.eup %5917 }
 0x944   : > { %v2947_v0 = vsel %vm712_vm2, %v6765_v20, 0.0 }
 0x945   : > { %2948 = vadd.xlane.f32.xlu0 %v2947_v0 }
 0x947   : > { %v6774_v41 = vpop.eup %5919 }
 0x948   : > { %v2950_v45 = vsel %vm712_vm2, %v6774_v41, 0.0  ;;  %v6778_v47 = vpop.eup %5921 }
 0x949   : > { %v2953_v51 = vsel %vm712_vm2, %v6778_v47, 0.0 }
 0x952   : > { %3319 = vrot.lane.b32.xlu1 %v6235_v17, %s6030_s19 }
 0x95b   : > { %3271 = vrot.lane.b32.xlu0 %v6228_v14, %s6030_s19 }
 0x96d   : > { %v2910_v55 = vpop.xlane.xlu1 %2909 }
 0x96e   : > { %v2918_v50 = vsub.f32 %v6742_v33, %v2910_v55  ;;  %v3085_v33 = vsel %vm1211_vm3, %v3080_v61, 0 }
 0x970   : > { %v2933_v3 = vmul.f32 1.442695, %v2918_v50 }
 0x976   : > { %2951 = vadd.xlane.f32.xlu1 %v2950_v45  ;;  %v3229_v45 = vsel %vm1211_vm3, %v6784_v18, 0 }
 0x97a   : > { %2954 = vadd.xlane.f32.xlu0 %v2953_v51 }
 0x987   : > { %3419 = vrot.lane.b32.xlu1 %v6216_v2, %s6031_s20 }
 0x990   : > { %3369 = vrot.lane.b32.xlu0 %v6214_v63, %s6031_s20 }
 0x994   : > { %3367 = vrot.lane.b32.xlu0 %v6214_v63, %s6032_s21 }
 0x995   : > { %v2937_v57 = vpop.xlane.xlu0 %2936 }
 0x996   : > { %5923 = vrcp.f32 %v2937_v57 }
 0x997   : > { %5925 = vpow2.f32 %v2933_v3 }
 0x998   : > { %3469 = vrot.lane.b32.xlu0 %v6220_v5, %s6031_s20 }
 0x99c   : > { %3467 = vrot.lane.b32.xlu0 %v6220_v5, %s6032_s21 }
 0x99d   : > { %v2943_v62 = vpop.xlane.xlu0 %2942 }
 0x99e   : > { %5927 = vrcp.f32 %v2943_v62 }
 0x9a0   : > { %v5924_v25 = vpop.eup %5923  ;;  %3569 = vrot.lane.b32.xlu0 %v6222_v11, %s6031_s20 }
 0x9a1   : > { %v2967_v4 = vmul.f32 %v5924_v25, %v6747_v52  ;;  %v6804_v19 = vpop.eup %5925 }
 0x9a2   : > { %v2956_v24 = vsel %vm712_vm2, %v6804_v19, 0.0 }
 0x9a3   : > { %v2975_v10 = vpack.c.bf16 %v2967_v4, %v2967_v4 }
 0x9a4   : > { %3567 = vrot.lane.b32.xlu0 %v6222_v11, %s6032_s21 }
 0x9a5   : > { %5542 = vmatmul.mubr.msk.bf16.vlgmr.msra.gmra.mrb[76].mxu0 %vm712_vm2, %v2975_v10 }
 0x9a6   : > { %5552 = vmatpush3.bf16.msra.mxu0 %v3085_v33  ;;  %5553 = vmatprep.mubr.msk.bf16.mxu0 %vm6022_vm1, %v6021_v48 }
 0x9a7   : > { %5563 = vmatprep.subr.bf16.mxu0 %v6021_v48 }
 0x9a8   : > { %v5928_v22 = vpop.eup %5927  ;;  %3669 = vrot.lane.b32.xlu0 %v6228_v14, %s6031_s20 }
 0x9a9   : > { %v2969_v52 = vmul.f32 %v5928_v22, %v6751_v59 }
 0x9ab   : > { %2957 = vadd.xlane.f32.xlu1 %v2956_v24  ;;  %v2977_v61 = vpack.c.bf16 %v2969_v52, %v2969_v52 }
 0x9ac   : > { %3667 = vrot.lane.b32.xlu0 %v6228_v14, %s6032_s21 }
 0x9ad   : > { %5554 = vmatmul.mubr.msk.bf16.vlgmr.msra.gmra.mrb[80].mxu0 %vm712_vm2, %v2977_v61 }
 0x9ae   : > { %5564 = vmatpush3.bf16.msra.mxu0 %v3181_v9  ;;  %5565 = vmatprep.mubr.msk.bf16.mxu0 %vm6022_vm1, %v6021_v48 }
 0x9af   : > { %5575 = vmatprep.subr.bf16.mxu0 %v6021_v48 }
 0x9bc   : > { %3417 = vrot.lane.b32.xlu1 %v6216_v2, %s6032_s21 }
 0x9c0   : > { %3519 = vrot.lane.b32.xlu1 %v6225_v12, %s6031_s20 }
 0x9c4   : > { %3517 = vrot.lane.b32.xlu1 %v6225_v12, %s6032_s21 }
 0x9c6   : > { %v2940_v59 = vpop.xlane.xlu1 %2939 }
 0x9c7   : > { %5929 = vrcp.f32 %v2940_v59 }
 0x9c8   : > { %3619 = vrot.lane.b32.xlu1 %v6231_v16, %s6031_s20 }
 0x9cc   : > { %3617 = vrot.lane.b32.xlu1 %v6231_v16, %s6032_s21 }
 0x9ce   : > { %v2946_v27 = vpop.xlane.xlu1 %2945 }
 0x9cf   : > { %5931 = vrcp.f32 %v2946_v27 }
 0x9d0   : > { %3719 = vrot.lane.b32.xlu1 %v6235_v17, %s6031_s20  ;;  %s442_s20 = scalar_lea.vmem %s7347_s13, %s5026_s28 }
 0x9d1   : > { %v5930_v49 = vpop.eup %5929 }
 0x9d2   : > { %v2968_v0 = vmul.f32 %v5930_v49, %v6757_v26  ;;  %v2949_v7 = vpop.xlane.xlu0 %2948 }
 0x9d3   : > { %5933 = vrcp.f32 %v2949_v7 }
 0x9d4   : > { %3717 = vrot.lane.b32.xlu1 %v6235_v17, %s6032_s21  ;;  %v2976_v30 = vpack.c.bf16 %v2968_v0, %v2968_v0 }
 0x9d6   : > { %5548 = vmatmul.mubr.msk.bf16.vlgmr.msra.gmra.mrb[92].mxu1 %vm712_vm2, %v2976_v30  ;;  %v3272_v13 = vpop.permute.xlu0 %3271 }
 0x9d7   : > { %5558 = vmatpush3.bf16.msra.mxu1 %v3133_v31  ;;  %5559 = vmatprep.mubr.msk.bf16.mxu1 %vm6022_vm1, %v6021_v48  ;;  %v3277_v55 = vsel %vm1211_vm3, %v3272_v13, 0 }
 0x9d8   : > { %5569 = vmatprep.subr.bf16.mxu1 %v6021_v48 }
 0x9d9   : > { %v5932_v32 = vpop.eup %5931 }
 0x9da   : > { %v2970_v26 = vmul.f32 %v5932_v32, %v6761_v8  ;;  %v3320_v8 = vpop.permute.xlu1 %3319 }
 0x9db   : > { %v3325_v10 = vsel %vm1211_vm3, %v3320_v8, 0 }
 0x9dc   : > { %v2978_v37 = vpack.c.bf16 %v2970_v26, %v2970_v26 }
 0x9dd   : > { %v5934_v40 = vpop.eup %5933 }
 0x9de   : > { %v2971_v51 = vmul.f32 %v5934_v40, %v6765_v20  ;;  %5560 = vmatmul.mubr.msk.bf16.vlgmr.msra.gmra.mrb[96].mxu1 %vm712_vm2, %v2978_v37 }
 0x9df   : > { %5570 = vmatpush3.bf16.msra.mxu1 %v3229_v45  ;;  %5571 = vmatprep.mubr.msk.bf16.mxu1 %vm6022_vm1, %v6021_v48 }
 0x9e0   : > { %v2979_v23 = vpack.c.bf16 %v2971_v51, %v2971_v51  ;;  %5581 = vmatprep.subr.bf16.mxu1 %v6021_v48 }
 0x9e2   : > { %5566 = vmatmul.mubr.msk.bf16.vlgmr.msra.gmra.mrb[84].mxu0 %vm712_vm2, %v2979_v23 }
 0x9e3   : > { %5576 = vmatpush3.bf16.msra.mxu0 %v3277_v55  ;;  %5577 = vmatprep.mubr.msk.bf16.mxu0 %vm6022_vm1, %v6021_v48 }
 0x9e4   : > { %5587 = vmatprep.subr.bf16.mxu0 %v6021_v48 }
 0xa03   : > { %v2952_v20 = vpop.xlane.xlu1 %2951 }
 0xa04   : > { %5935 = vrcp.f32 %v2952_v20 }
 0xa07   : > { %v2955_v18 = vpop.xlane.xlu0 %2954  ;;  %v3420_v0 = vpop.permute.xlu1 %3419 }
 0xa08   : > { %5937 = vrcp.f32 %v2955_v18  ;;  %v3425_v45 = vsel %vm712_vm2, %v3420_v0, 0 }
 0xa0b   : > { %v3370_v50 = vpop.permute.xlu0 %3369 }
 0xa0c   : > { %v3375_v24 = vsel %vm712_vm2, %v3370_v50, 0 }
 0xa0e   : > { %v5936_v57 = vpop.eup %5935 }
 0xa0f   : > { %v2972_v3 = vmul.f32 %v5936_v57, %v6774_v41  ;;  %v3368_v62 = vpop.permute.xlu0 %3367 }
 0xa11   : > { %v2980_v25 = vpack.c.bf16 %v2972_v3, %v2972_v3 }
 0xa12   : > { %v5938_v4 = vpop.eup %5937 }
 0xa13   : > { %v2973_v33 = vmul.f32 %v5938_v4, %v6778_v47  ;;  %5572 = vmatmul.mubr.msk.bf16.vlgmr.msra.gmra.mrb[100].mxu1 %vm712_vm2, %v2980_v25  ;;  %v3470_v22 = vpop.permute.xlu0 %3469 }
 0xa14   : > { %5582 = vmatpush3.bf16.msra.mxu1 %v3325_v10  ;;  %5583 = vmatprep.mubr.msk.bf16.mxu1 %vm6022_vm1, %v6021_v48  ;;  %v3475_v47 = vsel %vm712_vm2, %v3470_v22, 0 }
 0xa15   : > { %v2981_v52 = vpack.c.bf16 %v2973_v33, %v2973_v33  ;;  %5593 = vmatprep.subr.bf16.mxu1 %v6021_v48 }
 0xa17   : > { %5578 = vmatmul.mubr.msk.bf16.vlgmr.msra.gmra.mrb[88].mxu0 %vm712_vm2, %v2981_v52  ;;  %v3468_v41 = vpop.permute.xlu0 %3467 }
 0xa18   : > { %5588 = vmatpush3.bf16.xpose.msra.mxu0 %v3375_v24  ;;  %5589 = vmatprep.mubr.msk.bf16.mxu0 %vm6022_vm1, %v6021_v48 }
 0xa19   : > { %5599 = vmatprep.subr.bf16.mxu0 %v6021_v48 }
 0xa1b   : > { %v3570_v61 = vpop.permute.xlu0 %3569 }
 0xa1c   : > { %v3575_v59 = vsel %vm712_vm2, %v3570_v61, 0 }
 0xa1f   : > { %5590 = vmatmul.mubr.msk.bf16.vlgmr.msra.gmra.mrb[92].mxu0 %vm712_vm2, %v3368_v62  ;;  %v3568_v9 = vpop.permute.xlu0 %3567 }
 0xa20   : > { %5600 = vmatpush3.bf16.xpose.msra.mxu0 %v3475_v47  ;;  %5601 = vmatprep.mubr.msk.bf16.mxu0 %vm6022_vm1, %v6021_v48 }
 0xa21   : > { %5611 = vmatprep.subr.bf16.mxu0 %v6021_v48 }
 0xa23   : > { %v3670_v27 = vpop.permute.xlu0 %3669 }
 0xa24   : > { %v3675_v49 = vsel %vm712_vm2, %v3670_v27, 0 }
 0xa27   : > { %5602 = vmatmul.mubr.msk.bf16.vlgmr.msra.gmra.mrb[96].mxu0 %vm712_vm2, %v3468_v41  ;;  %v3668_v7 = vpop.permute.xlu0 %3667 }
 0xa28   : > { %5612 = vmatpush3.bf16.xpose.msra.mxu0 %v3575_v59  ;;  %5613 = vmatprep.mubr.msk.bf16.mxu0 %vm6022_vm1, %v6021_v48 }
 0xa29   : > { %5623 = vmatprep.subr.bf16.mxu0 %v6021_v48 }
 0xa2f   : > { %5614 = vmatmul.mubr.msk.bf16.vlgmr.msra.gmra.mrb[100].mxu0 %vm712_vm2, %v3568_v9 }
 0xa30   : > { %5624 = vmatpush3.bf16.xpose.msra.mxu0 %v3675_v49  ;;  %5625 = vmatprep.mubr.msk.bf16.mxu0 %vm6022_vm1, %v6021_v48 }
 0xa31   : > { %5635 = vmatprep.subr.bf16.mxu0 %v6021_v48 }
 0xa37   : > { %5626 = vmatmul.mubr.msk.bf16.vlgmr.msra.gmra.mrb[104].mxu0 %vm712_vm2, %v3668_v7 }
 0xa38   : > { %v2958_v30 = vpop.xlane.xlu1 %2957  ;;  %5637 = vmatprep.mubr.msk.bf16.mxu0 %vm6022_vm1, %v6021_v48 }
 0xa39   : > { %5939 = vrcp.f32 %v2958_v30 }
 0xa3c   : > { %v3418_v31 = vpop.permute.xlu1 %3417 }
 0xa40   : > { %v3520_v37 = vpop.permute.xlu1 %3519 }
 0xa41   : > { %v3525_v13 = vsel %vm712_vm2, %v3520_v37, 0 }
 0xa43   : > { %v5940_v32 = vpop.eup %5939 }
 0xa44   : > { %v2974_v26 = vmul.f32 %v5940_v32, %v6804_v19  ;;  %v3518_v51 = vpop.permute.xlu1 %3517 }
 0xa46   : > { %v2982_v40 = vpack.c.bf16 %v2974_v26, %v2974_v26 }
 0xa48   : > { %5584 = vmatmul.mubr.msk.bf16.vlgmr.msra.gmra.mrb[104].mxu1 %vm712_vm2, %v2982_v40  ;;  %v3620_v23 = vpop.permute.xlu1 %3619 }
 0xa49   : > { %5594 = vmatpush3.bf16.xpose.msra.mxu1 %v3425_v45  ;;  %5595 = vmatprep.mubr.msk.bf16.mxu1 %vm6022_vm1, %v6021_v48  ;;  %v3625_v55 = vsel %vm712_vm2, %v3620_v23, 0 }
 0xa4a   : > { %5605 = vmatprep.subr.bf16.mxu1 %v6021_v48 }
 0xa4c   : > { %v3618_v19 = vpop.permute.xlu1 %3617 }
 0xa50   : > { %5596 = vmatmul.mubr.msk.bf16.vlgmr.msra.gmra.mrb[108].mxu1 %vm712_vm2, %v3418_v31  ;;  %v3720_v8 = vpop.permute.xlu1 %3719 }
 0xa51   : > { %5606 = vmatpush3.bf16.xpose.msra.mxu1 %v3525_v13  ;;  %5607 = vmatprep.mubr.msk.bf16.mxu1 %vm6022_vm1, %v6021_v48  ;;  %v3725_v20 = vsel %vm712_vm2, %v3720_v8, 0 }
 0xa52   : > { %5617 = vmatprep.subr.bf16.mxu1 %v6021_v48 }
 0xa54   : > { %v3718_v18 = vpop.permute.xlu1 %3717 }
 0xa58   : > { %5608 = vmatmul.mubr.msk.bf16.vlgmr.msra.gmra.mrb[112].mxu1 %vm712_vm2, %v3518_v51 }
 0xa59   : > { %5618 = vmatpush3.bf16.xpose.msra.mxu1 %v3625_v55  ;;  %5619 = vmatprep.mubr.msk.bf16.mxu1 %vm6022_vm1, %v6021_v48 }
 0xa5a   : > { %5629 = vmatprep.subr.bf16.mxu1 %v6021_v48 }
 0xa60   : > { %5620 = vmatmul.mubr.msk.bf16.vlgmr.msra.gmra.mrb[116].mxu1 %vm712_vm2, %v3618_v19 }
 0xa61   : > { %5630 = vmatpush3.bf16.xpose.msra.mxu1 %v3725_v20  ;;  %5631 = vmatprep.mubr.msk.bf16.mxu1 %vm6022_vm1, %v6021_v48 }
 0xa62   : > { %5641 = vmatprep.subr.bf16.mxu1 %v6021_v48 }
 0xa68   : > { %5632 = vmatmul.mubr.msk.bf16.vlgmr.msra.gmra.mrb[120].mxu1 %vm712_vm2, %v3718_v18 }
 0xa69   : > { %5643 = vmatprep.mubr.msk.bf16.mxu1 %vm6022_vm1, %v6021_v48 }
 0xa78   : > { %v6907_v50 = vpop.f32.mrb[76].mxu0 }
 0xa79   : > { %v5543_v57 = vpop.f32.mrb[77].mxu0 }
 0xa7a   : > { %v3028_v3 = vpop.f32.mrb[78].mxu0 }
 0xa7b   : > { %v5544_v62 = vpop.f32.mrb[79].mxu0 }
 0xa80   : > { %v6909_v25 = vpop.f32.mrb[80].mxu0 }
 0xa81   : > { %v5555_v4 = vpop.f32.mrb[81].mxu0 }
 0xa82   : > { %v3124_v10 = vpop.f32.mrb[82].mxu0 }
 0xa83   : > { %v5556_v33 = vpop.f32.mrb[83].mxu0 }
 0xaa9   : > { %v6911_v22 = vpop.f32.mrb[92].mxu1 }
 0xaaa   : > { %v5765_v52 = vpack.i.bf16 %v6911_v22, %v6907_v50  ;;  %v5549_v24 = vpop.f32.mrb[93].mxu1 }
 0xaab   : > { %v3076_v41 = vpop.f32.mrb[94].mxu1 }
 0xaac   : > { %v5550_v47 = vpop.f32.mrb[95].mxu1 }
 0xab1   : > { %v6915_v61 = vpop.f32.mrb[96].mxu1 }
 0xab2   : > { %v5770_v9 = vpack.i.bf16 %v6915_v61, %v6909_v25  ;;  %v5561_v59 = vpop.f32.mrb[97].mxu1 }
 0xab3   : > { %v3172_v27 = vpop.f32.mrb[98].mxu1 }
 0xab4   : > { %v5562_v49 = vpop.f32.mrb[99].mxu1 }
 0xab5   : > { %v6919_v0 = vpop.f32.mrb[84].mxu0 }
 0xab6   : > { %v5567_v7 = vpop.f32.mrb[85].mxu0 }
 0xab7   : > { %v3220_v30 = vpop.f32.mrb[86].mxu0 }
 0xab8   : > { %v5568_v31 = vpop.f32.mrb[87].mxu0 }
 0xae6   : > { %v6921_v32 = vpop.f32.mrb[100].mxu1 }
 0xae7   : > { %v5790_v26 = vpack.i.bf16 %v6921_v32, %v6919_v0  ;;  %v5573_v37 = vpop.f32.mrb[101].mxu1 }
 0xae8   : > { %v3268_v40 = vpop.f32.mrb[102].mxu1 }
 0xae9   : > { %v5574_v45 = vpop.f32.mrb[103].mxu1 }
 0xaea   : > { %v6925_v51 = vpop.f32.mrb[88].mxu0 }
 0xaeb   : > { %v5579_v13 = vpop.f32.mrb[89].mxu0 }
 0xaec   : > { %v3316_v23 = vpop.f32.mrb[90].mxu0 }
 0xaed   : > { %v5580_v19 = vpop.f32.mrb[91].mxu0 }
 0xaf2   : > { %v3411_v55 = vpop.f32.mrb[92].mxu0 }
 0xaf3   : > { %v6927_v8 = vmul.f32 0.35355338, %v3411_v55  ;;  %v5591_v20 = vpop.f32.mrb[93].mxu0 }
 0xaf4   : > { %v3414_v18 = vpop.f32.mrb[94].mxu0 }
 0xaf5   : > { %v5592_v57 = vpop.f32.mrb[95].mxu0  ;;  %v3775_v3 = vsel %vm712_vm2, %v6927_v8, -inf }
 0xaf6   : > { %3776 = vmax.xlane.f32.xlu0 %v3775_v3 }
 0xafa   : > { %v3511_v62 = vpop.f32.mrb[96].mxu0 }
 0xafb   : > { %v6931_v4 = vmul.f32 0.35355338, %v3511_v62  ;;  %v5603_v10 = vpop.f32.mrb[97].mxu0 }
 0xafc   : > { %v3514_v33 = vpop.f32.mrb[98].mxu0 }
 0xafd   : > { %v5604_v24 = vpop.f32.mrb[99].mxu0  ;;  %v3781_v41 = vsel %vm712_vm2, %v6931_v4, -inf }
 0xafe   : > { %3782 = vmax.xlane.f32.xlu0 %v3781_v41 }
 0xb02   : > { %v3611_v47 = vpop.f32.mrb[100].mxu0 }
 0xb03   : > { %v5615_v59 = vpop.f32.mrb[101].mxu0 }
 0xb04   : > { %v3614_v27 = vpop.f32.mrb[102].mxu0  ;;  %v3771_v59 = vmul.f32 0.35355338, %v3611_v47 }
 0xb05   : > { %v5616_v49 = vpop.f32.mrb[103].mxu0 }
 0xb0a   : > { %v3711_v7 = vpop.f32.mrb[104].mxu0 }
 0xb0b   : > { %v5627_v30 = vpop.f32.mrb[105].mxu0 }
 0xb0c   : > { %v3714_v31 = vpop.f32.mrb[106].mxu0  ;;  %v3773_v30 = vmul.f32 0.35355338, %v3711_v7 }
 0xb0d   : > { %v5628_v37 = vpop.f32.mrb[107].mxu0  ;;  %v3787_v31 = vsel %vm712_vm2, %v3771_v59, -inf }
 0xb0e   : > { %v3793_v47 = vsel %vm712_vm2, %v3773_v30, -inf }
 0xb1b   : > { %v6935_v40 = vpop.f32.mrb[104].mxu1 }
 0xb1c   : > { %v5800_v45 = vpack.i.bf16 %v6935_v40, %v6925_v51  ;;  %v5585_v13 = vpop.f32.mrb[105].mxu1 }
 0xb1d   : > { %v3364_v23 = vpop.f32.mrb[106].mxu1 }
 0xb1e   : > { %v5586_v19 = vpop.f32.mrb[107].mxu1 }
 0xb23   : > { %v3461_v55 = vpop.f32.mrb[108].mxu1 }
 0xb24   : > { %v3768_v20 = vmul.f32 0.35355338, %v3461_v55  ;;  %v5597_v18 = vpop.f32.mrb[109].mxu1 }
 0xb25   : > { %v3464_v57 = vpop.f32.mrb[110].mxu1 }
 0xb26   : > { %v5598_v3 = vpop.f32.mrb[111].mxu1  ;;  %v3778_v62 = vsel %vm712_vm2, %v3768_v20, -inf }
 0xb27   : > { %3779 = vmax.xlane.f32.xlu1 %v3778_v62 }
 0xb2b   : > { %v3561_v10 = vpop.f32.mrb[112].mxu1 }
 0xb2c   : > { %v6940_v33 = vmul.f32 0.35355338, %v3561_v10  ;;  %v5609_v24 = vpop.f32.mrb[113].mxu1 }
 0xb2d   : > { %v3564_v41 = vpop.f32.mrb[114].mxu1 }
 0xb2e   : > { %v5610_v27 = vpop.f32.mrb[115].mxu1  ;;  %v3784_v49 = vsel %vm712_vm2, %v6940_v33, -inf }
 0xb2f   : > { %3785 = vmax.xlane.f32.xlu0 %v3784_v49 }
 0xb33   : > { %v3661_v37 = vpop.f32.mrb[116].mxu1  ;;  %3788 = vmax.xlane.f32.xlu0 %v3787_v31 }
 0xb34   : > { %v6945_v13 = vmul.f32 0.35355338, %v3661_v37  ;;  %v5621_v23 = vpop.f32.mrb[117].mxu1 }
 0xb35   : > { %v3664_v19 = vpop.f32.mrb[118].mxu1 }
 0xb36   : > { %v5622_v55 = vpop.f32.mrb[119].mxu1  ;;  %v3790_v18 = vsel %vm712_vm2, %v6945_v13, -inf }
 0xb37   : > { %3791 = vmax.xlane.f32.xlu1 %v3790_v18  ;;  %3794 = vmax.xlane.f32.xlu0 %v3793_v47 }
 0xb3b   : > { %v3761_v57 = vpop.f32.mrb[120].mxu1 }
 0xb3c   : > { %v5633_v3 = vpop.f32.mrb[121].mxu1  ;;  %v6956_v10 = vmul.f32 0.35355338, %v3761_v57 }
 0xb3d   : > { %v3764_v62 = vpop.f32.mrb[122].mxu1 }
 0xb3e   : > { %v5634_v7 = vpop.f32.mrb[123].mxu1  ;;  %v3796_v24 = vsel %vm712_vm2, %v6956_v10, -inf }
 0xb48   : > { %3919 = vrot.lane.b32.xlu1 %v6216_v2, %s6033_s22 }
 0xb4c   : > { %3967 = vrot.lane.b32.xlu1 %v6220_v5, %s6033_s22 }
 0xb4d   : > { %3871 = vrot.lane.b32.xlu0 %v6214_v63, %s6033_s22 }
 0xb70   : > { %3797 = vmax.xlane.f32.xlu1 %v3796_v24 }
 0xb81   : > { %4015 = vrot.lane.b32.xlu1 %v6225_v12, %s6033_s22 }
 0xb83   : > { %v3777_v41 = vpop.xlane.xlu0 %3776 }
 0xb84   : > { %v3799_v27 = vsub.f32 %v6927_v8, %v3777_v41 }
 0xb86   : > { %v3807_v49 = vmul.f32 1.442695, %v3799_v27 }
 0xb88   : > { %5941 = vpow2.f32 %v3807_v49 }
 0xb8b   : > { %v3783_v2 = vpop.xlane.xlu0 %3782 }
 0xb8c   : > { %v3801_v5 = vsub.f32 %v6931_v4, %v3783_v2 }
 0xb8e   : > { %v3811_v31 = vmul.f32 1.442695, %v3801_v5 }
 0xb90   : > { %5943 = vpow2.f32 %v3811_v31 }
 0xb92   : > { %v6964_v63 = vpop.eup %5941 }
 0xb93   : > { %v3823_v37 = vsel %vm712_vm2, %v6964_v63, 0.0 }
 0xb94   : > { %3824 = vadd.xlane.f32.xlu0 %v3823_v37 }
 0xb9a   : > { %v6968_v23 = vpop.eup %5943 }
 0xb9b   : > { %v3829_v12 = vsel %vm712_vm2, %v6968_v23, 0.0 }
 0xb9c   : > { %3830 = vadd.xlane.f32.xlu0 %v3829_v12 }
 0xbb2   : > { %4063 = vrot.lane.b32.xlu0 %v6222_v11, %s6033_s22 }
 0xbb4   : > { %v3780_v8 = vpop.xlane.xlu1 %3779 }
 0xbb5   : > { %v3800_v19 = vsub.f32 %v3768_v20, %v3780_v8 }
 0xbb7   : > { %v3809_v4 = vmul.f32 1.442695, %v3800_v19 }
 0xbb9   : > { %5945 = vpow2.f32 %v3809_v4 }
 0xbbc   : > { %v3786_v55 = vpop.xlane.xlu0 %3785 }
 0xbbd   : > { %v3802_v37 = vsub.f32 %v6940_v33, %v3786_v55 }
 0xbbf   : > { %v3813_v12 = vmul.f32 1.442695, %v3802_v37 }
 0xbc0   : > { %v3789_v18 = vpop.xlane.xlu0 %3788 }
 0xbc1   : > { %v3803_v47 = vsub.f32 %v3771_v59, %v3789_v18 }
 0xbc3   : > { %v6974_v57 = vpop.eup %5945  ;;  %v3815_v3 = vmul.f32 1.442695, %v3803_v47 }
 0xbc4   : > { %v3792_v62 = vpop.xlane.xlu1 %3791  ;;  %v3795_v7 = vpop.xlane.xlu0 %3794  ;;  %v3826_v24 = vsel %vm712_vm2, %v6974_v57, 0.0 }
 0xbc5   : > { %5947 = vpow2.f32 %v3815_v3  ;;  %v3805_v41 = vsub.f32 %v3773_v30, %v3795_v7  ;;  %3827 = vadd.xlane.f32.xlu1 %v3826_v24  ;;  %v3804_v8 = vsub.f32 %v6945_v13, %v3792_v62 }
 0xbc7   : > { %v3819_v27 = vmul.f32 1.442695, %v3805_v41  ;;  %v3817_v19 = vmul.f32 1.442695, %v3804_v8 }
 0xbc8   : > { %v3920_v11 = vpop.permute.xlu1 %3919  ;;  %v3872_v49 = vpop.permute.xlu0 %3871 }
 0xbc9   : > { %v3925_v20 = vsel %vm1211_vm3, %v3920_v11, 0  ;;  %v3877_v2 = vsel %vm1211_vm3, %v3872_v49, 0  ;;  %5949 = vpow2.f32 %v3819_v27 }
 0xbca   : > { %5636 = vmatpush3.bf16.msra.mxu0 %v3877_v2  ;;  %5642 = vmatpush3.bf16.msra.mxu1 %v3925_v20  ;;  %5951 = vpow2.f32 %v3813_v12 }
 0xbcb   : > { %5647 = vmatprep.subr.bf16.mxu0 %v6021_v48  ;;  %5653 = vmatprep.subr.bf16.mxu1 %v6021_v48  ;;  %5953 = vpow2.f32 %v3817_v19 }
 0xbcc   : > { %v3968_v33 = vpop.permute.xlu1 %3967 }
 0xbcd   : > { %v3973_v4 = vsel %vm1211_vm3, %v3968_v33, 0 }
 0xbcf   : > { %v6982_v59 = vpop.eup %5947 }
 0xbd0   : > { %v3835_v30 = vsel %vm712_vm2, %v6982_v59, 0.0 }
 0xbd1   : > { %3836 = vadd.xlane.f32.xlu0 %v3835_v30 }
 0xbd3   : > { %v6986_v5 = vpop.eup %5949 }
 0xbd4   : > { %v3841_v31 = vsel %vm712_vm2, %v6986_v5, 0.0 }
 0xbd5   : > { %3842 = vadd.xlane.f32.xlu0 %v3841_v31 }
 0xbd6   : > { %4111 = vrot.lane.b32.xlu1 %v6231_v16, %s6033_s22  ;;  %v7003_v16 = vpop.eup %5951 }
 0xbd7   : > { %v7010_v13 = vpop.eup %5953 }
 0xbd8   : > { %v3838_v43 = vsel %vm712_vm2, %v7010_v13, 0.0 }
 0xbeb   : > { %4159 = vrot.lane.b32.xlu0 %v6228_v14, %s6033_s22  ;;  %v3832_v14 = vsel %vm712_vm2, %v7003_v16, 0.0 }
 0xbef   : > { %5756 = vrot.lane.b32.xlu0 %v5755_v44, %s6034_s23 }
 0xbf3   : > { %5766 = vrot.lane.b32.xlu0 %v5765_v52, %s6035_s24 }
 0xbf7   : > { %5776 = vrot.lane.b32.xlu0 %v5775_v60, %s6034_s23 }
 0xbfa   : > { %3833 = vadd.xlane.f32.xlu1 %v3832_v14 }
 0xbfd   : > { %v3798_v1 = vpop.xlane.xlu1 %3797 }
 0xbfe   : > { %v3806_v44 = vsub.f32 %v6956_v10, %v3798_v1  ;;  %3839 = vadd.xlane.f32.xlu1 %v3838_v43 }
 0xc00   : > { %v3821_v50 = vmul.f32 1.442695, %v3806_v44 }
 0xc02   : > { %5955 = vpow2.f32 %v3821_v50 }
 0xc0c   : > { %v7015_v22 = vpop.eup %5955 }
 0xc0d   : > { %v3844_v54 = vsel %vm712_vm2, %v7015_v22, 0.0 }
 0xc0e   : > { %3845 = vadd.xlane.f32.xlu1 %v3844_v54 }
 0xc1f   : > { %4207 = vrot.lane.b32.xlu1 %v6235_v17, %s6033_s22 }
 0xc21   : > { %v3825_v39 = vpop.xlane.xlu0 %3824 }
 0xc22   : > { %5957 = vrcp.f32 %v3825_v39 }
 0xc23   : > { %5761 = vrot.lane.b32.xlu1 %v5760_v38, %s6034_s23 }
 0xc27   : > { %5771 = vrot.lane.b32.xlu1 %v5770_v9, %s6035_s24 }
 0xc29   : > { %v3831_v60 = vpop.xlane.xlu0 %3830 }
 0xc2a   : > { %5959 = vrcp.f32 %v3831_v60 }
 0xc2b   : > { %5781 = vrot.lane.b32.xlu1 %v5780_v42, %s6034_s23  ;;  %v4016_v42 = vpop.permute.xlu1 %4015 }
 0xc2c   : > { %v5958_v52 = vpop.eup %5957  ;;  %v4021_v55 = vsel %vm1211_vm3, %v4016_v42, 0 }
 0xc2d   : > { %v3855_v17 = vmul.f32 %v5958_v52, %v6964_v63  ;;  %v4064_v38 = vpop.permute.xlu0 %4063 }
 0xc2e   : > { %v4069_v36 = vsel %vm1211_vm3, %v4064_v38, 0 }
 0xc2f   : > { %v3863_v10 = vpack.c.bf16 %v3855_v17, %v3855_v17  ;;  %v5817_v17 = vld [vmem:[%s7339_s5] sm:$0xff]  }
 0xc31   : > { %5638 = vmatmul.mubr.msk.bf16.vlgmr.msra.gmra.mrb[108].mxu0 %vm712_vm2, %v3863_v10 }
 0xc32   : > { %5648 = vmatpush3.bf16.msra.mxu0 %v3973_v4  ;;  %5649 = vmatprep.mubr.msk.bf16.mxu0 %vm6022_vm1, %v6021_v48 }
 0xc33   : > { %5659 = vmatprep.subr.bf16.mxu0 %v6021_v48 }
 0xc34   : > { %v5960_v28 = vpop.eup %5959 }
 0xc35   : > { %v3857_v46 = vmul.f32 %v5960_v28, %v6968_v23 }
 0xc37   : > { %v3865_v6 = vpack.c.bf16 %v3857_v46, %v3857_v46 }
 0xc39   : > { %5650 = vmatmul.mubr.msk.bf16.vlgmr.msra.gmra.mrb[112].mxu0 %vm712_vm2, %v3865_v6 }
 0xc3a   : > { %5660 = vmatpush3.bf16.msra.mxu0 %v4069_v36  ;;  %5661 = vmatprep.mubr.msk.bf16.mxu0 %vm6022_vm1, %v6021_v48 }
 0xc3b   : > { %5671 = vmatprep.subr.bf16.mxu0 %v6021_v48 }
 0xc52   : > { %v3828_v25 = vpop.xlane.xlu1 %3827 }
 0xc53   : > { %5961 = vrcp.f32 %v3828_v25 }
 0xc56   : > { %v4112_v11 = vpop.permute.xlu1 %4111 }
 0xc57   : > { %v4117_v37 = vsel %vm1211_vm3, %v4112_v11, 0 }
 0xc5d   : > { %v5962_v61 = vpop.eup %5961 }
 0xc5e   : > { %v3856_v9 = vmul.f32 %v5962_v61, %v6974_v57  ;;  %v3837_v63 = vpop.xlane.xlu0 %3836 }
 0xc5f   : > { %5963 = vrcp.f32 %v3837_v63  ;;  %v5818_v63 = vld [vmem:[%s7339_s5 + $0x8] sm:$0xff]  }
 0xc60   : > { %v3864_v23 = vpack.c.bf16 %v3856_v9, %v3856_v9 }
 0xc62   : > { %5644 = vmatmul.mubr.msk.bf16.vlgmr.msra.gmra.mrb[124].mxu1 %vm712_vm2, %v3864_v23  ;;  %v3843_v18 = vpop.xlane.xlu0 %3842 }
 0xc63   : > { %5654 = vmatpush3.bf16.msra.mxu1 %v4021_v55  ;;  %5655 = vmatprep.mubr.msk.bf16.mxu1 %vm6022_vm1, %v6021_v48  ;;  %5965 = vrcp.f32 %v3843_v18 }
 0xc64   : > { %5665 = vmatprep.subr.bf16.mxu1 %v6021_v48 }
 0xc66   : > { %v4160_v62 = vpop.permute.xlu0 %4159 }
 0xc67   : > { %v4165_v24 = vsel %vm1211_vm3, %v4160_v62, 0 }
 0xc69   : > { %v5964_v47 = vpop.eup %5963 }
 0xc6a   : > { %v3859_v3 = vmul.f32 %v5964_v47, %v6982_v59 }
 0xc6c   : > { %v3867_v57 = vpack.c.bf16 %v3859_v3, %v3859_v3 }
 0xc6d   : > { %v5966_v7 = vpop.eup %5965 }
 0xc6e   : > { %5662 = vmatmul.mubr.msk.bf16.vlgmr.msra.gmra.mrb[116].mxu0 %vm712_vm2, %v3867_v57  ;;  %v3861_v41 = vmul.f32 %v5966_v7, %v6986_v5 }
 0xc6f   : > { %5672 = vmatpush3.bf16.msra.mxu0 %v4165_v24  ;;  %5673 = vmatprep.mubr.msk.bf16.mxu0 %vm6022_vm1, %v6021_v48 }
 0xc70   : > { %v3869_v27 = vpack.c.bf16 %v3861_v41, %v3861_v41  ;;  %5683 = vmatprep.subr.bf16.mxu0 %v5817_v17 }
 0xc76   : > { %5674 = vmatmul.mubr.msk.bf16.vlgmr.msra.gmra.mrb[120].mxu0 %vm712_vm2, %v3869_v27 }
 0xc77   : > { %5684 = vmatpush3.bf16.msra.mxu0 %v5817_v17 }
 0xc78   : > { %5685 = vmatprep.subr.bf16.mxu0 %v5818_v63 }
 0xc7b   : > { %5686 = vmatpush3.bf16.msra.mxu0 %v5818_v63 }
 0xc87   : > { %v3834_v49 = vpop.xlane.xlu1 %3833 }
 0xc88   : > { %5967 = vrcp.f32 %v3834_v49  ;;  %v5757_v49 = vpop.permute.xlu0 %5756 }
 0xc89   : > { %v5758_v51 = vunpack.i.l.bf16 %v5757_v49 }
 0xc8b   : > { %v3840_v20 = vpop.xlane.xlu1 %3839 }
 0xc8c   : > { %5969 = vrcp.f32 %v3840_v20  ;;  %v5767_v20 = vpop.permute.xlu0 %5766 }
 0xc8d   : > { %v5769_v40 = vunpack.i.h.bf16 %v5767_v20 }
 0xc92   : > { %v5968_v2 = vpop.eup %5967 }
 0xc93   : > { %v3858_v59 = vmul.f32 %v5968_v2, %v7003_v16  ;;  %v5777_v2 = vpop.permute.xlu0 %5776 }
 0xc95   : > { %v3866_v30 = vpack.c.bf16 %v3858_v59, %v3858_v59  ;;  %v5759_v59 = vunpack.i.h.bf16 %v5757_v49 }
 0xc96   : > { %v5970_v31 = vpop.eup %5969 }
 0xc97   : > { %5656 = vmatmul.mubr.msk.bf16.vlgmr.msra.gmra.mrb[128].mxu1 %vm712_vm2, %v3866_v30  ;;  %v3860_v5 = vmul.f32 %v5970_v31, %v7010_v13  ;;  %v4352_v31 = vsel %vm712_vm2, %v6491_v35, %v5759_v59 }
 0xc98   : > { %5666 = vmatpush3.bf16.msra.mxu1 %v4117_v37  ;;  %5667 = vmatprep.mubr.msk.bf16.mxu1 %vm6022_vm1, %v6021_v48  ;;  %v4351_v37 = vsel %vm712_vm2, %v6493_v34, %v5758_v51 }
 0xc99   : > { %5677 = vmatprep.subr.bf16.mxu1 %v6021_v48  ;;  %v3868_v8 = vpack.c.bf16 %v3860_v5, %v3860_v5 }
 0xc9b   : > { %v3846_v12 = vpop.xlane.xlu1 %3845 }
 0xc9c   : > { %5971 = vrcp.f32 %v3846_v12 }
 0xc9f   : > { %5668 = vmatmul.mubr.msk.bf16.vlgmr.msra.gmra.mrb[132].mxu1 %vm712_vm2, %v3868_v8  ;;  %v4208_v19 = vpop.permute.xlu1 %4207 }
 0xca0   : > { %v4213_v16 = vsel %vm1211_vm3, %v4208_v19, 0  ;;  %5679 = vmatprep.mubr.msk.bf16.mxu1 %vm6022_vm1, %v6021_v48  ;;  %v4361_v19 = vsel %vm4359_vm4, %v4352_v31, %v5769_v40 }
 0xca1   : > { %5678 = vmatpush3.bf16.msra.mxu1 %v4213_v16 }
 0xca6   : > { %v5972_v33 = vpop.eup %5971 }
 0xca7   : > { %v3862_v14 = vmul.f32 %v5972_v33, %v7015_v22 }
 0xca9   : > { %v3870_v1 = vpack.c.bf16 %v3862_v14, %v3862_v14 }
 0xcab   : > { %5680 = vmatmul.mubr.msk.bf16.vlgmr.msra.gmra.mrb[136].mxu1 %vm712_vm2, %v3870_v1  ;;  %v5762_v1 = vpop.permute.xlu1 %5761 }
 0xcac   : > { %v5764_v35 = vunpack.i.h.bf16 %v5762_v1 }
 0xd04   : > { %v3913_v13 = vpop.f32.mrb[108].mxu0 }
 0xd05   : > { %v5639_v43 = vpop.f32.mrb[109].mxu0 }
 0xd06   : > { %v3916_v44 = vpop.f32.mrb[110].mxu0 }
 0xd07   : > { %v5640_v50 = vpop.f32.mrb[111].mxu0  ;;  %v5763_v44 = vunpack.i.l.bf16 %v5762_v1  ;;  %v6008_v1 = vld [vmem:[%s6123_s14 + $0x18] sm:$0xff] }
 0xd0c   : > { %v4009_v54 = vpop.f32.mrb[112].mxu0 }
 0xd0d   : > { %v5651_v39 = vpop.f32.mrb[113].mxu0 }
 0xd0e   : > { %v4012_v60 = vpop.f32.mrb[114].mxu0  ;;  %v4354_v39 = vsel %vm712_vm2, %v6499_v53, %v5764_v35 }
 0xd0f   : > { %v5652_v52 = vpop.f32.mrb[115].mxu0  ;;  %v4353_v60 = vsel %vm712_vm2, %v6495_v21, %v5763_v44 }
 0xd35   : > { %v3961_v48 = vpop.f32.mrb[124].mxu1 }
 0xd36   : > { %v5785_v10 = vpack.i.bf16 %v3961_v48, %v3913_v13  ;;  %v5645_v22 = vpop.f32.mrb[125].mxu1  ;;  %v5772_v13 = vpop.permute.xlu1 %5771 }
 0xd37   : > { %v3964_v4 = vpop.f32.mrb[126].mxu1  ;;  %v5774_v50 = vunpack.i.h.bf16 %v5772_v13  ;;  %v5773_v34 = vunpack.i.l.bf16 %v5772_v13 }
 0xd38   : > { %v5646_v28 = vpop.f32.mrb[127].mxu1  ;;  %5786 = vrot.lane.b32.xlu0 %v5785_v10, %s6036_s30 }
 0xd39   : > { %v4362_v48 = vsel %vm4359_vm4, %v4353_v60, %v5773_v34  ;;  %v4363_v10 = vsel %vm4359_vm4, %v4354_v39, %v5774_v50 }
 0xd3a   : > { %v5782_v43 = vpop.permute.xlu1 %5781 }
 0xd3c   : > { %5791 = vrot.lane.b32.xlu0 %v5790_v26, %s6035_s24 }
 0xd41   : > { %v4105_v46 = vpop.f32.mrb[116].mxu0 }
 0xd42   : > { %v5663_v38 = vpop.f32.mrb[117].mxu0 }
 0xd43   : > { %v4108_v6 = vpop.f32.mrb[118].mxu0  ;;  %v5779_v38 = vunpack.i.h.bf16 %v5777_v2 }
 0xd44   : > { %v5664_v36 = vpop.f32.mrb[119].mxu0  ;;  %v5778_v6 = vunpack.i.l.bf16 %v5777_v2 }
 0xd45   : > { %v4356_v21 = vsel %vm712_vm2, %v6503_v58, %v5779_v38 }
 0xd49   : > { %v4201_v42 = vpop.f32.mrb[120].mxu0 }
 0xd4a   : > { %v5675_v25 = vpop.f32.mrb[121].mxu0 }
 0xd4b   : > { %v4204_v61 = vpop.f32.mrb[122].mxu0  ;;  %v4355_v25 = vsel %vm712_vm2, %v6497_v29, %v5778_v6  ;;  %v6012_v6 = vld [vmem:[%s6123_s14 + $0x38] sm:$0xff] }
 0xd4c   : > { %v5676_v9 = vpop.f32.mrb[123].mxu0 }
 0xd6a   : > { %v4057_v23 = vpop.f32.mrb[128].mxu1 }
 0xd6b   : > { %v5795_v55 = vpack.i.bf16 %v4057_v23, %v4009_v54  ;;  %v5657_v18 = vpop.f32.mrb[129].mxu1 }
 0xd6c   : > { %v4060_v47 = vpop.f32.mrb[130].mxu1 }
 0xd6d   : > { %v5658_v0 = vpop.f32.mrb[131].mxu1  ;;  %5796 = vrot.lane.b32.xlu1 %v5795_v55, %s6036_s30 }
 0xd71   : > { %5801 = vrot.lane.b32.xlu1 %v5800_v45, %s6035_s24  ;;  %v5768_v45 = vunpack.i.l.bf16 %v5767_v20 }
 0xd72   : > { %v4153_v32 = vpop.f32.mrb[132].mxu1 }
 0xd73   : > { %v5805_v26 = vpack.i.bf16 %v4153_v32, %v4105_v46  ;;  %v5669_v3 = vpop.f32.mrb[133].mxu1  ;;  %v4360_v8 = vsel %vm4359_vm4, %v4351_v37, %v5768_v45  ;;  %v5784_v32 = vunpack.i.h.bf16 %v5782_v43 }
 0xd74   : > { %v4156_v62 = vpop.f32.mrb[134].mxu1 }
 0xd75   : > { %v5670_v57 = vpop.f32.mrb[135].mxu1  ;;  %5806 = vrot.lane.b32.xlu0 %v5805_v26, %s6036_s30  ;;  %v5783_v26 = vunpack.i.l.bf16 %v5782_v43  ;;  %v4358_v29 = vsel %vm712_vm2, %v6510_v15, %v5784_v32 }
 0xd77   : > { %v4357_v57 = vsel %vm712_vm2, %v6501_v56, %v5783_v26  ;;  %v5038_v56 = vld [vmem:[%s7340_s6] ss:$0 sm:$0xff] }
 0xd7e   : > { %v4249_v7 = vpop.f32.mrb[136].mxu1 }
 0xd7f   : > { %v5810_v24 = vpack.i.bf16 %v4249_v7, %v4201_v42  ;;  %v5681_v41 = vpop.f32.mrb[137].mxu1 }
 0xd80   : > { %v4252_v27 = vpop.f32.mrb[138].mxu1 }
 0xd81   : > { %v5682_v11 = vpop.f32.mrb[139].mxu1  ;;  %5811 = vrot.lane.b32.xlu1 %v5810_v24, %s6036_s30 }
 0xdaa   : > { %v5787_v30 = vpop.permute.xlu0 %5786 }
 0xdab   : > { %v5789_v5 = vunpack.i.h.bf16 %v5787_v30  ;;  %v5788_v12 = vunpack.i.l.bf16 %v5787_v30  ;;  %v6005_v30 = vld [vmem:[%s6123_s14] sm:$0xff] }
 0xdad   : > { %v4369_v16 = vsel %vm4368_vm5, %v4360_v8, %v5788_v12  ;;  %v4370_v33 = vsel %vm4368_vm5, %v4361_v19, %v5789_v5  ;;  %v6006_v5 = vld [vmem:[%s6123_s14 + $0x10] sm:$0xff]  ;;  %v6007_v19 = vld [vmem:[%s6123_s14 + $0x8] sm:$0xff] }
 0xdae   : > { %v4377_v14 = vpack.c.bf16 %v4370_v33, %v4369_v16  ;;  %v5792_v22 = vpop.permute.xlu0 %5791 }
 0xdaf   : > { %v5794_v36 = vunpack.i.h.bf16 %v5792_v22  ;;  %v5793_v42 = vunpack.i.l.bf16 %v5792_v22  ;;  %v6010_v22 = vld [vmem:[%s6123_s14 + $0x30] sm:$0xff] }
 0xdb0   : > { %5687 = vmatprep.mubr.msk.bf16.mxu0 %vm455_vm0, %v4377_v14 }
 0xdb1   : > { %v4364_v63 = vsel %vm4359_vm4, %v4355_v25, %v5793_v42  ;;  %v4365_v23 = vsel %vm4359_vm4, %v4356_v21, %v5794_v36 }
 0xddf   : > { %v5797_v54 = vpop.permute.xlu1 %5796 }
 0xde0   : > { %v5799_v52 = vunpack.i.h.bf16 %v5797_v54  ;;  %v5798_v17 = vunpack.i.l.bf16 %v5797_v54 }
 0xde2   : > { %v4372_v4 = vsel %vm4368_vm5, %v4363_v10, %v5799_v52  ;;  %v4371_v28 = vsel %vm4368_vm5, %v4362_v48, %v5798_v17  ;;  %v6009_v52 = vld [vmem:[%s6123_s14 + $0x20] sm:$0xff] }
 0xde3   : > { %v4378_v46 = vpack.c.bf16 %v4372_v4, %v4371_v28  ;;  %v5802_v0 = vpop.permute.xlu1 %5801  ;;  %v6011_v28 = vld [vmem:[%s6123_s14 + $0x28] sm:$0xff] }
 0xde4   : > { %v5804_v58 = vunpack.i.h.bf16 %v5802_v0  ;;  %v5803_v3 = vunpack.i.l.bf16 %v5802_v0 }
 0xde5   : > { %5688 = vmatmul.mubr.msk.bf16.vlgmr.msra.gmra.mrb[124].mxu0 %vm455_vm0, %v4378_v46 }
 0xde6   : > { %v4367_v41 = vsel %vm4359_vm4, %v4358_v29, %v5804_v58  ;;  %v4366_v27 = vsel %vm4359_vm4, %v4357_v57, %v5803_v3 }
 0xde7   : > { %v5807_v53 = vpop.permute.xlu0 %5806 }
 0xde8   : > { %v5809_v61 = vunpack.i.h.bf16 %v5807_v53  ;;  %v5808_v9 = vunpack.i.l.bf16 %v5807_v53 }
 0xdea   : > { %v4373_v55 = vsel %vm4368_vm5, %v4364_v63, %v5808_v9  ;;  %v4374_v18 = vsel %vm4368_vm5, %v4365_v23, %v5809_v61 }
 0xdeb   : > { %v4379_v47 = vpack.c.bf16 %v4374_v18, %v4373_v55 }
 0xded   : > { %5691 = vmatprep.mubr.msk.bf16.mxu0 %vm455_vm0, %v4379_v47 }
 0xdf3   : > { %v5812_v62 = vpop.permute.xlu1 %5811 }
 0xdf4   : > { %v5814_v7 = vunpack.i.h.bf16 %v5812_v62  ;;  %v5813_v24 = vunpack.i.l.bf16 %v5812_v62 }
 0xdf6   : > { %v4376_v11 = vsel %vm4368_vm5, %v4367_v41, %v5814_v7  ;;  %v4375_v49 = vsel %vm4368_vm5, %v4366_v27, %v5813_v24 }
 0xdf7   : > { %v4380_v20 = vpack.c.bf16 %v4376_v11, %v4375_v49 }
 0xdf9   : > { %5692 = vmatmul.mubr.msk.bf16.gmra.mrb[128].mxu0 %vm455_vm0, %v4380_v20 }
 0xeb8   : > { %v5689_v15 = vpop.f32.mrb[124].mxu0 }
 0xeb9   : > { %v4443_v2 = vpop.f32.mrb[125].mxu0  ;;  %v4476_v59 = vadd.f32 %v5689_v15, %v5038_v56 }
 0xeba   : > { %v4474_v51 = vadd.f32 %v5038_v56, %v4443_v2  ;;  %v5690_v40 = vpop.f32.mrb[126].mxu0 }
 0xebb   : > { %v4446_v45 = vpop.f32.mrb[127].mxu0  ;;  %v7130_v12 = vadd.f32 %v6006_v5, %v4476_v59  ;;  %v4477_v8 = vadd.f32 %v5690_v40, %v5038_v56 }
 0xebc   : > { %v7127_v31 = vadd.f32 %v6005_v30, %v4474_v51  ;;  %v4475_v37 = vadd.f32 %v5038_v56, %v4446_v45 }
 0xebd   : > { %v7140_v13 = vadd.f32 %v6008_v1, %v4477_v8  ;;  %v4498_v43 = vsel %vm455_vm0, %v7130_v12, 0.0 }
 0xebe   : > { %v7133_v16 = vadd.f32 %v6007_v19, %v4475_v37  ;;  %v4492_v33 = vsel %vm455_vm0, %v7127_v31, 0.0 }
 0xebf   : > { %4493 = vadd.xlane.f32.xlu0 %v4492_v33  ;;  %v4501_v35 = vsel %vm455_vm0, %v7140_v13, 0.0 }
 0xec0   : > { %v4495_v14 = vsel %vm455_vm0, %v7133_v16, 0.0 }
 0xec1   : > { %4496 = vadd.xlane.f32.xlu1 %v4495_v14 }
 0xec3   : > { %4499 = vadd.xlane.f32.xlu0 %v4498_v43 }
 0xec7   : > { %4502 = vadd.xlane.f32.xlu0 %v4501_v35 }
 0xecc   : > { %v5693_v44 = vpop.f32.mrb[128].mxu0 }
 0xecd   : > { %v4459_v50 = vpop.f32.mrb[129].mxu0  ;;  %v4480_v34 = vadd.f32 %v5693_v44, %v5038_v56  ;;  %v5819_v44 = vld [vmem:[%s7343_s9] sm:$0xff]  }
 0xece   : > { %v4478_v54 = vadd.f32 %v5038_v56, %v4459_v50  ;;  %v5694_v39 = vpop.f32.mrb[130].mxu0  ;;  %5695 = vmatprep.subr.bf16.mxu1 %v5819_v44  ;;  %v5820_v50 = vld [vmem:[%s7343_s9 + $0x8] sm:$0xff]  }
 0xecf   : > { %v4462_v60 = vpop.f32.mrb[131].mxu0  ;;  %v4481_v48 = vadd.f32 %v5694_v39, %v5038_v56  ;;  %v7150_v4 = vadd.f32 %v6010_v22, %v4480_v34  ;;  %5696 = vmatpush3.bf16.msra.mxu1 %v5819_v44 }
 0xed0   : > { %v7147_v17 = vadd.f32 %v6009_v52, %v4478_v54  ;;  %v4479_v10 = vadd.f32 %v5038_v56, %v4462_v60  ;;  %5697 = vmatprep.subr.bf16.mxu1 %v5820_v50 }
 0xed1   : > { %v7158_v36 = vadd.f32 %v6012_v6, %v4481_v48  ;;  %v4510_v53 = vsel %vm455_vm0, %v7150_v4, 0.0 }
 0xed2   : > { %v7153_v46 = vadd.f32 %v6011_v28, %v4479_v10  ;;  %v4504_v38 = vsel %vm455_vm0, %v7147_v17, 0.0 }
 0xed3   : > { %4505 = vadd.xlane.f32.xlu0 %v4504_v38  ;;  %v4513_v21 = vsel %vm455_vm0, %v7158_v36, 0.0  ;;  %5698 = vmatpush3.bf16.msra.mxu1 %v5820_v50 }
 0xed4   : > { %v4507_v42 = vsel %vm455_vm0, %v7153_v46, 0.0 }
 0xed5   : > { %4508 = vadd.xlane.f32.xlu1 %v4507_v42 }
 0xed7   : > { %4511 = vadd.xlane.f32.xlu0 %v4510_v53 }
 0xed9   : > { %4514 = vadd.xlane.f32.xlu1 %v4513_v21  ;;  %v5109_v21 = vld [vmem:[%s7341_s7] ss:$0 sm:$0xff] }
 0xf4c   : > { %v4494_v25 = vpop.xlane.xlu0 %4493 }
 0xf4d   : > { %v4516_v61 = vmul.f32 0.03125, %v4494_v25 }
 0xf4e   : > { %v4497_v9 = vpop.xlane.xlu1 %4496 }
 0xf4f   : > { %v7167_v63 = vsub.f32 %v7127_v31, %v4516_v61  ;;  %v4517_v23 = vmul.f32 0.03125, %v4497_v9 }
 0xf50   : > { %v4500_v55 = vpop.xlane.xlu0 %4499 }
 0xf51   : > { %v7170_v18 = vsub.f32 %v7133_v16, %v4517_v23  ;;  %v4518_v47 = vmul.f32 0.03125, %v4500_v55  ;;  %v4532_v0 = vmul.f32 %v7167_v63, %v7167_v63 }
 0xf53   : > { %v7175_v32 = vsub.f32 %v7130_v12, %v4518_v47  ;;  %v4540_v26 = vsel %vm455_vm0, %v4532_v0, 0.0  ;;  %v4533_v58 = vmul.f32 %v7170_v18, %v7170_v18  ;;  %v5110_v47 = vld [vmem:[%s7342_s8] ss:$0 sm:$0xff] }
 0xf54   : > { %v4503_v3 = vpop.xlane.xlu0 %4502  ;;  %4541 = vadd.xlane.f32.xlu0 %v4540_v26 }
 0xf55   : > { %v4519_v62 = vmul.f32 0.03125, %v4503_v3  ;;  %v4543_v29 = vsel %vm455_vm0, %v4533_v58, 0.0  ;;  %v4534_v57 = vmul.f32 %v7175_v32, %v7175_v32 }
 0xf56   : > { %4544 = vadd.xlane.f32.xlu1 %v4543_v29 }
 0xf57   : > { %v7184_v7 = vsub.f32 %v7140_v13, %v4519_v62  ;;  %v4546_v24 = vsel %vm455_vm0, %v4534_v57, 0.0 }
 0xf58   : > { %4547 = vadd.xlane.f32.xlu0 %v4546_v24 }
 0xf59   : > { %v4535_v41 = vmul.f32 %v7184_v7, %v7184_v7 }
 0xf5b   : > { %v4549_v27 = vsel %vm455_vm0, %v4535_v41, 0.0 }
 0xf5c   : > { %4550 = vadd.xlane.f32.xlu1 %v4549_v27 }
 0xf60   : > { %v4506_v11 = vpop.xlane.xlu0 %4505 }
 0xf61   : > { %v4520_v49 = vmul.f32 0.03125, %v4506_v11 }
 0xf62   : > { %v4509_v20 = vpop.xlane.xlu1 %4508 }
 0xf63   : > { %v7191_v56 = vsub.f32 %v7147_v17, %v4520_v49  ;;  %v4521_v15 = vmul.f32 0.03125, %v4509_v20 }
 0xf64   : > { %v4512_v2 = vpop.xlane.xlu0 %4511 }
 0xf65   : > { %v7194_v59 = vsub.f32 %v7153_v46, %v4521_v15  ;;  %v4522_v51 = vmul.f32 0.03125, %v4512_v2  ;;  %v4536_v40 = vmul.f32 %v7191_v56, %v7191_v56 }
 0xf66   : > { %v4515_v45 = vpop.xlane.xlu1 %4514 }
 0xf67   : > { %v7199_v30 = vsub.f32 %v7150_v4, %v4522_v51  ;;  %v4523_v37 = vmul.f32 0.03125, %v4515_v45  ;;  %v4552_v5 = vsel %vm455_vm0, %v4536_v40, 0.0  ;;  %v4537_v8 = vmul.f32 %v7194_v59, %v7194_v59 }
 0xf68   : > { %4553 = vadd.xlane.f32.xlu0 %v4552_v5 }
 0xf69   : > { %v7205_v19 = vsub.f32 %v7158_v36, %v4523_v37  ;;  %v4555_v33 = vsel %vm455_vm0, %v4537_v8, 0.0  ;;  %v4538_v14 = vmul.f32 %v7199_v30, %v7199_v30 }
 0xf6a   : > { %4556 = vadd.xlane.f32.xlu1 %v4555_v33 }
 0xf6b   : > { %v4558_v1 = vsel %vm455_vm0, %v4538_v14, 0.0  ;;  %v4539_v43 = vmul.f32 %v7205_v19, %v7205_v19 }
 0xf6c   : > { %4559 = vadd.xlane.f32.xlu0 %v4558_v1 }
 0xf6d   : > { %v4561_v35 = vsel %vm455_vm0, %v4539_v43, 0.0 }
 0xf6e   : > { %4562 = vadd.xlane.f32.xlu1 %v4561_v35 }
 0xfe1   : > { %v4542_v34 = vpop.xlane.xlu0 %4541 }
 0xfe2   : > { %v4564_v54 = vmul.f32 0.03125, %v4542_v34 }
 0xfe3   : > { %v4545_v39 = vpop.xlane.xlu1 %4544 }
 0xfe4   : > { %v4572_v60 = vadd.f32 1e-05, %v4564_v54  ;;  %v4565_v52 = vmul.f32 0.03125, %v4545_v39 }
 0xfe5   : > { %v4548_v48 = vpop.xlane.xlu0 %4547 }
 0xfe6   : > { %5973 = vrsqrt.f32 %v4572_v60  ;;  %v4573_v10 = vadd.f32 1e-05, %v4565_v52  ;;  %v4566_v22 = vmul.f32 0.03125, %v4548_v48 }
 0xfe8   : > { %5975 = vrsqrt.f32 %v4573_v10  ;;  %v4574_v28 = vadd.f32 1e-05, %v4566_v22 }
 0xfe9   : > { %v4551_v38 = vpop.xlane.xlu1 %4550 }
 0xfea   : > { %5977 = vrsqrt.f32 %v4574_v28  ;;  %v4567_v6 = vmul.f32 0.03125, %v4551_v38  ;;  %v5824_v38 = vld [vmem:[%s7345_s11 + $0x18] sm:$0xff]  }
 0xfec   : > { %v4575_v42 = vadd.f32 1e-05, %v4567_v6  ;;  %v5825_v6 = vld [vmem:[%s7345_s11 + $0x20] sm:$0xff]  }
 0xfee   : > { %5979 = vrsqrt.f32 %v4575_v42  ;;  %v5826_v42 = vld [vmem:[%s7345_s11 + $0x28] sm:$0xff]  }
 0xff0   : > { %v5974_v53 = vpop.eup %5973 }
 0xff1   : > { %v4588_v25 = vmul.f32 %v5974_v53, %v7167_v63  ;;  %v5827_v53 = vld [vmem:[%s7345_s11 + $0x30] sm:$0xff]  }
 0xff2   : > { %v5976_v61 = vpop.eup %5975 }
 0xff3   : > { %v4589_v9 = vmul.f32 %v5976_v61, %v7170_v18  ;;  %v4602_v23 = vmul.f32 %v5109_v21, %v4588_v25  ;;  %v5111_v25 = vld [vmem:[%s7344_s10] ss:$0 sm:$0xff] }
 0xff4   : > { %v5978_v55 = vpop.eup %5977 }
 0xff5   : > { %v4590_v0 = vmul.f32 %v5978_v55, %v7175_v32  ;;  %v4554_v26 = vpop.xlane.xlu0 %4553  ;;  %v4603_v58 = vmul.f32 %v5109_v21, %v4589_v9  ;;  %v4616_v29 = vadd.f32 %v5110_v47, %v4602_v23 }
 0xff6   : > { %v4568_v3 = vmul.f32 0.03125, %v4554_v26 }
 0xff7   : > { %v4557_v62 = vpop.xlane.xlu1 %4556  ;;  %v4617_v57 = vadd.f32 %v5110_v47, %v4603_v58  ;;  %v4604_v27 = vmul.f32 %v5109_v21, %v4590_v0 }
 0xff8   : > { %v5980_v24 = vpop.eup %5979  ;;  %v4576_v41 = vadd.f32 1e-05, %v4568_v3  ;;  %v4569_v63 = vmul.f32 0.03125, %v4557_v62 }
 0xff9   : > { %v4591_v18 = vmul.f32 %v5980_v24, %v7184_v7  ;;  %v4560_v11 = vpop.xlane.xlu0 %4559  ;;  %v4624_v49 = vpack.c.bf16 %v4617_v57, %v4616_v29  ;;  %v4618_v45 = vadd.f32 %v5110_v47, %v4604_v27 }
 0xffa   : > { %5981 = vrsqrt.f32 %v4576_v41  ;;  %v4577_v20 = vadd.f32 1e-05, %v4569_v63  ;;  %v4570_v15 = vmul.f32 0.03125, %v4560_v11 }
 0xffb   : > { %v4605_v2 = vmul.f32 %v5109_v21, %v4591_v18  ;;  %5699 = vmatprep.mubr.msk.bf16.mxu1 %vm455_vm0, %v4624_v49  ;;  %v4563_v32 = vpop.xlane.xlu1 %4562 }
 0xffc   : > { %5983 = vrsqrt.f32 %v4577_v20  ;;  %v4578_v51 = vadd.f32 1e-05, %v4570_v15  ;;  %v4571_v40 = vmul.f32 0.03125, %v4563_v32 }
 0xffd   : > { %v4619_v37 = vadd.f32 %v5110_v47, %v4605_v2 }
 0xffe   : > { %5985 = vrsqrt.f32 %v4578_v51  ;;  %v4579_v5 = vadd.f32 1e-05, %v4571_v40 }
 0xfff   : > { %v4625_v8 = vpack.c.bf16 %v4619_v37, %v4618_v45 }
0x1000   : > { %5987 = vrsqrt.f32 %v4579_v5 }
0x1001   : > { %5700 = vmatmul.mubr.msk.bf16.vlgmr.msra.gmra.mrb[140].mxu1 %vm455_vm0, %v4625_v8 }
0x1004   : > { %v5982_v7 = vpop.eup %5981 }
0x1005   : > { %v4592_v33 = vmul.f32 %v5982_v7, %v7191_v56 }
0x1006   : > { %v5984_v14 = vpop.eup %5983 }
0x1007   : > { %v4593_v1 = vmul.f32 %v5984_v14, %v7194_v59  ;;  %v4606_v43 = vmul.f32 %v5109_v21, %v4592_v33  ;;  %v5821_v59 = vld [vmem:[%s7345_s11] sm:$0xff]  }
0x1008   : > { %v5986_v35 = vpop.eup %5985  ;;  %5707 = vmatprep.subr.bf16.mxu0 %v5821_v59 }
0x1009   : > { %v4594_v44 = vmul.f32 %v5986_v35, %v7199_v30  ;;  %v4607_v50 = vmul.f32 %v5109_v21, %v4593_v1  ;;  %v4620_v39 = vadd.f32 %v5110_v47, %v4606_v43  ;;  %5708 = vmatpush3.bf16.msra.mxu0 %v5821_v59  ;;  %v5822_v30 = vld [vmem:[%s7345_s11 + $0x8] sm:$0xff]  }
0x100a   : > { %v5988_v34 = vpop.eup %5987  ;;  %5709 = vmatprep.subr.bf16.mxu0 %v5822_v30 }
0x100b   : > { %v4595_v54 = vmul.f32 %v5988_v34, %v7205_v19  ;;  %v4621_v60 = vadd.f32 %v5110_v47, %v4607_v50  ;;  %v4608_v52 = vmul.f32 %v5109_v21, %v4594_v44  ;;  %v5823_v19 = vld [vmem:[%s7345_s11 + $0x10] sm:$0xff]  }
0x100d   : > { %v4626_v48 = vpack.c.bf16 %v4621_v60, %v4620_v39  ;;  %v4609_v10 = vmul.f32 %v5109_v21, %v4595_v54  ;;  %v4622_v22 = vadd.f32 %v5110_v47, %v4608_v52  ;;  %5710 = vmatpush3.bf16.msra.mxu0 %v5822_v30  ;;  %v5828_v21 = vld [vmem:[%s7345_s11 + $0x38] sm:$0xff]  }
0x100e   : > { %5711 = vmatprep.subr.bf16.mxu0 %v5823_v19 }
0x100f   : > { %5703 = vmatprep.mubr.msk.bf16.mxu1 %vm455_vm0, %v4626_v48  ;;  %v4623_v56 = vadd.f32 %v5110_v47, %v4609_v10 }
0x1011   : > { %v4627_v28 = vpack.c.bf16 %v4623_v56, %v4622_v22  ;;  %5712 = vmatpush3.bf16.msra.mxu0 %v5823_v19 }
0x1012   : > { %5713 = vmatprep.subr.bf16.mxu0 %v5824_v38 }
0x1013   : > { %5704 = vmatmul.mubr.msk.bf16.gmra.mrb[144].mxu1 %vm455_vm0, %v4627_v28 }
0x1015   : > { %5714 = vmatpush3.bf16.msra.mxu0 %v5824_v38 }
0x1016   : > { %5715 = vmatprep.subr.bf16.mxu0 %v5825_v6 }
0x1019   : > { %5716 = vmatpush3.bf16.msra.mxu0 %v5825_v6 }
0x101a   : > { %5717 = vmatprep.subr.bf16.mxu0 %v5826_v42 }
0x101d   : > { %5718 = vmatpush3.bf16.msra.mxu0 %v5826_v42 }
0x101e   : > { %5719 = vmatprep.subr.bf16.mxu0 %v5827_v53 }
0x1021   : > { %5720 = vmatpush3.bf16.msra.mxu0 %v5827_v53 }
0x1022   : > { %5721 = vmatprep.subr.bf16.mxu0 %v5828_v21 }
0x1025   : > { %5722 = vmatpush3.bf16.msra.mxu0 %v5828_v21 }
0x10d4   : > { %v5701_v61 = vpop.f32.mrb[140].mxu1 }
0x10d5   : > { %v7265_v9 = vadd.f32 %v5701_v61, %v5111_v25  ;;  %v4697_v23 = vpop.f32.mrb[141].mxu1 }
0x10d6   : > { %v7267_v55 = vadd.f32 %v5111_v25, %v4697_v23  ;;  %v5702_v47 = vpop.f32.mrb[142].mxu1 }
0x10d7   : > { %v4730_v0 = vmul.f32 %v7265_v9, %v7265_v9  ;;  %v7271_v26 = vadd.f32 %v5702_v47, %v5111_v25  ;;  %v4700_v58 = vpop.f32.mrb[143].mxu1 }
0x10d8   : > { %v4728_v3 = vmul.f32 %v7267_v55, %v7267_v55  ;;  %v7275_v62 = vadd.f32 %v5111_v25, %v4700_v58 }
0x10d9   : > { %v4738_v29 = vmul.f32 %v4730_v0, %v7265_v9  ;;  %v4731_v57 = vmul.f32 %v7271_v26, %v7271_v26 }
0x10da   : > { %v4736_v24 = vmul.f32 %v4728_v3, %v7267_v55  ;;  %v4729_v41 = vmul.f32 %v7275_v62, %v7275_v62 }
0x10db   : > { %v4746_v63 = vmul.f32 0.044715, %v4738_v29  ;;  %v4739_v27 = vmul.f32 %v4731_v57, %v7271_v26 }
0x10dc   : > { %v4744_v18 = vmul.f32 0.044715, %v4736_v24  ;;  %v4737_v11 = vmul.f32 %v4729_v41, %v7275_v62 }
0x10dd   : > { %v4754_v49 = vadd.f32 %v4746_v63, %v7265_v9  ;;  %v4747_v20 = vmul.f32 0.044715, %v4739_v27 }
0x10de   : > { %v4752_v15 = vadd.f32 %v4744_v18, %v7267_v55  ;;  %v4745_v2 = vmul.f32 0.044715, %v4737_v11 }
0x10df   : > { %v4762_v32 = vmul.f32 0.7978846, %v4754_v49  ;;  %v4755_v51 = vadd.f32 %v4747_v20, %v7271_v26 }
0x10e0   : > { %v4760_v40 = vmul.f32 0.7978846, %v4752_v15  ;;  %v4753_v45 = vadd.f32 %v4745_v2, %v7275_v62 }
0x10e1   : > { %5989 = vtanh.f32 %v4762_v32  ;;  %v4763_v37 = vmul.f32 0.7978846, %v4755_v51 }
0x10e2   : > { %5991 = vtanh.f32 %v4760_v40  ;;  %v4761_v5 = vmul.f32 0.7978846, %v4753_v45 }
0x10e3   : > { %5993 = vtanh.f32 %v4763_v37 }
0x10e4   : > { %5995 = vtanh.f32 %v4761_v5 }
0x10e6   : > { %v5705_v8 = vpop.f32.mrb[144].mxu1 }
0x10e7   : > { %v7289_v7 = vadd.f32 %v5705_v8, %v5111_v25  ;;  %v4713_v33 = vpop.f32.mrb[145].mxu1 }
0x10e8   : > { %v7291_v14 = vadd.f32 %v5111_v25, %v4713_v33  ;;  %v5706_v1 = vpop.f32.mrb[146].mxu1 }
0x10e9   : > { %v4734_v43 = vmul.f32 %v7289_v7, %v7289_v7  ;;  %v4725_v35 = vadd.f32 %v5706_v1, %v5111_v25  ;;  %v4716_v44 = vpop.f32.mrb[147].mxu1 }
0x10ea   : > { %v4732_v50 = vmul.f32 %v7291_v14, %v7291_v14  ;;  %v4717_v34 = vadd.f32 %v5111_v25, %v4716_v44 }
0x10eb   : > { %v5990_v54 = vpop.eup %5989  ;;  %v4742_v39 = vmul.f32 %v4734_v43, %v7289_v7  ;;  %v4735_v60 = vmul.f32 %v4725_v35, %v4725_v35 }
0x10ec   : > { %v5992_v52 = vpop.eup %5991  ;;  %v4778_v48 = vadd.f32 1.0, %v5990_v54  ;;  %v4740_v10 = vmul.f32 %v4732_v50, %v7291_v14  ;;  %v4733_v22 = vmul.f32 %v4717_v34, %v4717_v34 }
0x10ed   : > { %v5994_v56 = vpop.eup %5993  ;;  %v4750_v28 = vmul.f32 0.044715, %v4742_v39  ;;  %v4743_v59 = vmul.f32 %v4735_v60, %v4725_v35  ;;  %v4776_v30 = vadd.f32 1.0, %v5992_v52  ;;  %v5126_v52 = vld [vmem:[%s7346_s12] ss:$0 sm:$0xff] }
0x10ee   : > { %v5996_v19 = vpop.eup %5995  ;;  %v4786_v38 = vmul.f32 0.5, %v4778_v48  ;;  %v4779_v6 = vadd.f32 1.0, %v5994_v56  ;;  %v4748_v42 = vmul.f32 0.044715, %v4740_v10  ;;  %v4741_v53 = vmul.f32 %v4733_v22, %v4717_v34 }
0x10ef   : > { %v4758_v21 = vadd.f32 %v4750_v28, %v7289_v7  ;;  %v4751_v25 = vmul.f32 0.044715, %v4743_v59  ;;  %v4777_v61 = vadd.f32 1.0, %v5996_v19  ;;  %v4784_v23 = vmul.f32 0.5, %v4776_v30 }
0x10f0   : > { %v4787_v47 = vmul.f32 0.5, %v4779_v6  ;;  %v4756_v0 = vadd.f32 %v4748_v42, %v7291_v14  ;;  %v4749_v58 = vmul.f32 0.044715, %v4741_v53  ;;  %v4794_v24 = vmul.f32 %v4786_v38, %v7265_v9 }
0x10f1   : > { %v4766_v3 = vmul.f32 0.7978846, %v4758_v21  ;;  %v4759_v29 = vadd.f32 %v4751_v25, %v4725_v35  ;;  %v4785_v57 = vmul.f32 0.5, %v4777_v61  ;;  %v4792_v11 = vmul.f32 %v4784_v23, %v7267_v55 }
0x10f2   : > { %v4795_v41 = vmul.f32 %v4787_v47, %v7271_v26  ;;  %v4764_v63 = vmul.f32 0.7978846, %v4756_v0  ;;  %v4757_v27 = vadd.f32 %v4749_v58, %v4717_v34 }
0x10f3   : > { %5997 = vtanh.f32 %v4766_v3  ;;  %v4767_v18 = vmul.f32 0.7978846, %v4759_v29  ;;  %v4793_v49 = vmul.f32 %v4785_v57, %v7275_v62 }
0x10f4   : > { %v4801_v20 = vpack.c.bf16 %v4795_v41, %v4794_v24  ;;  %5999 = vtanh.f32 %v4764_v63  ;;  %v4765_v15 = vmul.f32 0.7978846, %v4757_v27 }
0x10f5   : > { %6001 = vtanh.f32 %v4767_v18  ;;  %v4800_v2 = vpack.c.bf16 %v4793_v49, %v4792_v11 }
0x10f6   : > { %6003 = vtanh.f32 %v4765_v15 }
0x10f7   : > { %5723 = vmatprep.mubr.bf16.mxu0 %v4800_v2 }
0x10f8   : > { %5724 = vmatmul.mubr.bf16.vlgmr.msra.gmra.mrb[132].mxu0 %v4801_v20 }
0x10fd   : > { %v5998_v32 = vpop.eup %5997 }
0x10fe   : > { %v6000_v9 = vpop.eup %5999  ;;  %v4782_v51 = vadd.f32 1.0, %v5998_v32 }
0x10ff   : > { %v6002_v26 = vpop.eup %6001  ;;  %v4780_v40 = vadd.f32 1.0, %v6000_v9 }
0x1100   : > { %v6004_v45 = vpop.eup %6003  ;;  %v4783_v37 = vadd.f32 1.0, %v6002_v26  ;;  %v4790_v5 = vmul.f32 0.5, %v4782_v51 }
0x1101   : > { %v4781_v8 = vadd.f32 1.0, %v6004_v45  ;;  %v4788_v55 = vmul.f32 0.5, %v4780_v40 }
0x1102   : > { %v4791_v62 = vmul.f32 0.5, %v4783_v37  ;;  %v4798_v1 = vmul.f32 %v4790_v5, %v7289_v7 }
0x1103   : > { %v4789_v33 = vmul.f32 0.5, %v4781_v8  ;;  %v4796_v44 = vmul.f32 %v4788_v55, %v7291_v14 }
0x1104   : > { %v4799_v43 = vmul.f32 %v4791_v62, %v4725_v35 }
0x1105   : > { %v4797_v50 = vmul.f32 %v4789_v33, %v4717_v34 }
0x1106   : > { %v4803_v54 = vpack.c.bf16 %v4799_v43, %v4798_v1 }
0x1107   : > { %v4802_v39 = vpack.c.bf16 %v4797_v50, %v4796_v44 }
0x1109   : > { %5727 = vmatprep.mubr.bf16.mxu0 %v4802_v39 }
0x110a   : > { %5728 = vmatmul.mubr.bf16.gmra.mrb[136].mxu0 %v4803_v54 }
0x11cb   : > { %v5725_v60 = vpop.f32.mrb[132].mxu0 }
0x11cc   : > { %v4935_v48 = vadd.f32 %v5725_v60, %v7130_v12  ;;  %v4902_v10 = vpop.f32.mrb[133].mxu0 }
0x11cd   : > { %v4933_v7 = vadd.f32 %v4902_v10, %v7127_v31  ;;  %v5726_v14 = vpop.f32.mrb[134].mxu0 }
0x11ce   : > { %v4950_v35 = vadd.f32 %v5126_v52, %v4935_v48  ;;  %v4936_v34 = vadd.f32 %v5726_v14, %v7140_v13  ;;  %v4905_v22 = vpop.f32.mrb[135].mxu0 }
0x11cf   : > { %v4948_v56 = vadd.f32 %v5126_v52, %v4933_v7  ;;  %v4934_v28 = vadd.f32 %v4905_v22, %v7133_v16 }
0x11d0   : > { %4958 = vst.msk [vmem:[%s442_s20 + $0x10] sm:$0xff] %vm455_vm0, %v4950_v35  ;;  %v4951_v59 = vadd.f32 %v5126_v52, %v4936_v34 }
0x11d1   : > { %4956 = vst.msk [vmem:[%s442_s20] sm:$0xff] %vm455_vm0, %v4948_v56  ;;  %v4949_v12 = vadd.f32 %v5126_v52, %v4934_v28 }
0x11d2   : > { %4959 = vst.msk [vmem:[%s442_s20 + $0x18] sm:$0xff] %vm455_vm0, %v4951_v59 }
0x11d3   : > { %4957 = vst.msk [vmem:[%s442_s20 + $0x8] sm:$0xff] %vm455_vm0, %v4949_v12 }
0x11dd   : > { %v5729_v30 = vpop.f32.mrb[136].mxu0 }
0x11de   : > { %v4939_v31 = vadd.f32 %v5729_v30, %v7150_v4  ;;  %v4918_v19 = vpop.f32.mrb[137].mxu0 }
0x11df   : > { %v4937_v13 = vadd.f32 %v4918_v19, %v7147_v17  ;;  %v5730_v38 = vpop.f32.mrb[138].mxu0 }
0x11e0   : > { %v4954_v6 = vadd.f32 %v5126_v52, %v4939_v31  ;;  %v4940_v16 = vadd.f32 %v5730_v38, %v7158_v36  ;;  %v4921_v42 = vpop.f32.mrb[139].mxu0 }
0x11e1   : > { %v4952_v53 = vadd.f32 %v5126_v52, %v4937_v13  ;;  %v4938_v21 = vadd.f32 %v4921_v42, %v7153_v46 }
0x11e2   : > { %4962 = vst.msk [vmem:[%s442_s20 + $0x30] sm:$0xff] %vm455_vm0, %v4954_v6  ;;  %v4955_v25 = vadd.f32 %v5126_v52, %v4940_v16 }
0x11e3   : > { %4960 = vst.msk [vmem:[%s442_s20 + $0x20] sm:$0xff] %vm455_vm0, %v4952_v53  ;;  %v4953_v61 = vadd.f32 %v5126_v52, %v4938_v21 }
0x11e4   : > { %4963 = vst.msk [vmem:[%s442_s20 + $0x38] sm:$0xff] %vm455_vm0, %v4955_v25 }
0x11e5   : > { %4961 = vst.msk [vmem:[%s442_s20 + $0x28] sm:$0xff] %vm455_vm0, %v4953_v61 }
0x11e6 PF: > { %s23_s25 = sadd.s32 1, %s6019_s25  }
0x11e7   : > { %p20_p4 = scmp.ge.s32.totalorder %s23_s25, 4  }
0x11e9   :  { %22 = sbr.rel (!%p20_p4) target bundleno = 1 (0x1), region = 102 }

</bundles_post_ra>
